<compile_context>
chip_gen: v7x
topology: tpu7x:2x2x1
jax: 0.10.0
libtpu: 0.0.40
codegen_flags: <defaults>
</compile_context>

<pallas_src>
import jax
import jax.numpy as jnp
import numpy as np
from jax.experimental import pallas as pl
from jax.experimental.pallas import tpu as pltpu

# ---------------- hyperparameters (small, consistent with the module) -------------
N_GRAPHS        = 32   # graphs per forward call (batched)
GRAPHS_PER_STEP = 16   # graphs per grid step -> BM = 256 rows, nb = 2 (both v7x TCs busy);
                       # set 32 (nb = 1) on single-TC v5e/v6e for minimum step overhead.
N_NODES         = 16   # nodes per graph
N_ATOM_FEAT     = 18   # fixed by module
N_BOND_FEAT     = 6    # fixed by module
N_NODE_HIDDEN   = 32
N_EDGE_HIDDEN   = 16
N_LAYERS        = 2
VOCAB_SIZE      = 8

COMPUTE_DTYPE = jnp.bfloat16   # MXU operand dtype (f32 accumulation everywhere)


# ----------------------------------------------------------------------------------
# Kernel: one grid step processes GRAPHS_PER_STEP graphs stacked into BM rows.
# ----------------------------------------------------------------------------------
def fragment_dqn_kernel(
    slab_ref, eflat_ref, epi_ref,                                   # per-step streams
    w_ne_ref, w_ee_ref, w_self_ref, w_msg_ref, w_e2n_ref,           # resident params
    w1_ref, w2_ref, expand_ref, bd_ref, bias_ref,
    out_ref,
):
    f32 = jnp.float32
    cd = w_ne_ref.dtype                      # compute (MXU operand) dtype
    Fa = w_ne_ref.shape[0]                   # 18 atom features
    Hn = w_ne_ref.shape[1]
    NHe = w_ee_ref.shape[1]                  # N * He (lane-dense edge width)
    L = w_self_ref.shape[0]
    Vp = w2_ref.shape[1]                     # vocab + 1 (padded baseline lane)
    N = expand_ref.shape[0]

    slab = slab_ref[...]                     # [BM, Fa+N] bf16
    nfeat = slab[:, :Fa]
    adjr = slab[:, Fa:Fa + N]                # compact adjacency rows (0/1)

    bias = bias_ref[...]                     # [4+L, NHe] packed biases (f32)
    b_ne = bias[0:1, :Hn]
    b_ee = bias[1:2, :NHe]
    b1 = bias[2:3, :Hn]
    b2 = bias[3:4, :Vp]

    # --- rebuild adjacency expansions in-kernel (one tiny MXU matmul, no HBM DMA) ---
    exp_all = jnp.dot(adjr, expand_ref[...], preferred_element_type=f32)   # [BM, NHe+BM]
    adj_exp = exp_all[:, :NHe].astype(cd)            # per-edge-slot 0/1 mask (lane-dense)
    adj_bd = exp_all[:, NHe:].astype(cd) * bd_ref[...]   # block-diagonal adjacency [BM, BM]

    # --- node embedding --------------------------------------------------------------
    h = jnp.maximum(
        jnp.dot(nfeat, w_ne_ref[...], preferred_element_type=f32) + b_ne, 0.0
    )                                        # [BM, Hn] f32

    # --- edge embedding + adjacency masking (done ONCE; w_e2n is linear so it
    #     commutes with the adjacency-weighted neighbor sum) --------------------------
    e = jnp.maximum(
        jnp.dot(eflat_ref[...], w_ee_ref[...], preferred_element_type=f32) + b_ee, 0.0
    )                                        # [BM, NHe] f32
    e_w = e.astype(cd) * adj_exp             # bf16 masked edge embeddings (exact: 0/1 adj)

    # --- message-passing layers (static unroll, L is small) ---------------------------
    for l in range(L):
        hcd = h.astype(cd)
        self_part = jnp.dot(hcd, w_self_ref[l], preferred_element_type=f32)
        msg = jnp.dot(hcd, w_msg_ref[l], preferred_element_type=f32)
        nbr = jnp.dot(adj_bd, msg.astype(cd), preferred_element_type=f32)
        e_contrib = jnp.dot(e_w, w_e2n_ref[l], preferred_element_type=f32)
        h = jnp.maximum(
            self_part + nbr + e_contrib + bias[4 + l:5 + l, :Hn], 0.0
        )

    # --- MLP head ----------------------------------------------------------------------
    z = jnp.maximum(jnp.dot(h.astype(cd), w1_ref[...], preferred_element_type=f32) + b1, 0.0)
    vals = jnp.dot(z.astype(cd), w2_ref[...], preferred_element_type=f32) + b2   # [BM, Vp]
    # w2/b2 column V is zero -> vals[:, V] == 0.

    # --- FragmentDQN glue: values += baseline; concat baseline; mask -> -inf ------------
    epi = epi_ref[...]                       # [BM, 1+Vp] f32
    baseline = epi[:, :1]
    mask = epi[:, 1:]
    result = vals + baseline                 # last lane becomes pure baseline
    out_ref[...] = jnp.where(mask > 0, result, jnp.float32(-jnp.inf))   # one full-block store


# ----------------------------------------------------------------------------------
# One-time parameter packing (hoisted OUT of the per-call path).
# ----------------------------------------------------------------------------------
def prepare_params(params, *, graphs_per_step=GRAPHS_PER_STEP, n_nodes=N_NODES):
    cd, f32 = COMPUTE_DTYPE, jnp.float32
    N = n_nodes
    Hn = params["w_ne"].shape[1]
    He = params["w_ee"].shape[1]
    L = params["w_msg"].shape[0]
    V = params["w2"].shape[1]
    NHe = N * He
    BM = graphs_per_step * N

    w_ne = params["w_ne"].astype(cd)
    w_ee_bd = jnp.kron(jnp.eye(N, dtype=f32), params["w_ee"]).astype(cd)       # [N*6, N*He]
    w_self = params["w_self"].astype(cd)                                        # [L, Hn, Hn]
    w_msg = params["w_msg"].astype(cd)                                          # [L, Hn, Hn]
    w_e2n_t = jnp.tile(params["w_e2n"], (1, N, 1)).astype(cd)                   # [L, N*He, Hn]
    w1 = params["w1"].astype(cd)
    w2_pad = jnp.pad(params["w2"], ((0, 0), (0, 1))).astype(cd)                 # [Hn, V+1]

    # 0/1 expansion constants: adj rows -> (lane-dense edge mask | lane-tiled adjacency)
    eyeN = jnp.eye(N, dtype=f32)
    E1 = jnp.repeat(eyeN, He, axis=1)                       # [N, N*He]
    E2 = jnp.tile(eyeN, (1, graphs_per_step))               # [N, BM]
    expand_cat = jnp.concatenate([E1, E2], axis=1).astype(cd)   # [N, N*He + BM]

    # block-diagonal (per-graph) mask for the neighbor-aggregation matmul
    blk = jnp.arange(BM) // N
    bd_mask = (blk[:, None] == blk[None, :]).astype(cd)     # [BM, BM]

    def row(v):                                             # pad a 1-row bias to NHe lanes
        v = v.reshape(1, -1).astype(f32)
        return jnp.pad(v, ((0, 0), (0, NHe - v.shape[1])))

    b2_pad = jnp.pad(params["b2"].reshape(1, -1), ((0, 0), (0, 1)))   # zero bias, baseline lane
    bias_pack = jnp.concatenate(
        [row(params["b_ne"]),
         jnp.tile(params["b_ee"].reshape(1, -1), (1, N)).astype(f32),
         row(params["b1"]),
         row(b2_pad)]
        + [row(params["b_layer"][l]) for l in range(L)], axis=0).astype(f32)   # [4+L, NHe]

    packed = dict(w_ne=w_ne, w_ee_bd=w_ee_bd, w_self=w_self, w_msg=w_msg,
                  w_e2n_t=w_e2n_t, w1=w1, w2_pad=w2_pad,
                  expand_cat=expand_cat, bd_mask=bd_mask, bias_pack=bias_pack)
    return jax.tree_util.tree_map(jnp.asarray, packed)


# ----------------------------------------------------------------------------------
# Wrapper: stacks B graphs node-major and launches the gridded pallas_call.
# ----------------------------------------------------------------------------------
def fragment_dqn_forward(packed, n_feat, e_feat, adj, baseline, mask,
                         *, graphs_per_step=GRAPHS_PER_STEP):
    B, N, Fa = n_feat.shape
    Fb = e_feat.shape[-1]
    assert B % graphs_per_step == 0
    nb = B // graphs_per_step
    BM = graphs_per_step * N
    assert packed["bd_mask"].shape[0] == BM, "prepare_params graphs_per_step mismatch"
    cd, f32 = COMPUTE_DTYPE, jnp.float32
    Vp = packed["w2_pad"].shape[1]           # vocab + 1

    # ---- per-graph tensors, node-major; tiny casts/concats only (no big broadcasts) ---
    slab = jnp.concatenate(
        [n_feat.reshape(B * N, Fa).astype(cd),
         adj.reshape(B * N, N).astype(cd)], axis=1)                 # [B*N, Fa+N] bf16
    eflat = e_feat.reshape(B * N, N * Fb).astype(cd)                # [B*N, N*Fb] bf16
    epi = jnp.concatenate(
        [baseline.reshape(B * N, 1).astype(f32),
         mask.reshape(B * N, Vp).astype(f32)], axis=1)              # [B*N, 1+Vp] f32

    graph2 = lambda b: (b, 0)
    const2 = lambda b: (0, 0)
    const3 = lambda b: (0, 0, 0)

    in_specs = [
        pl.BlockSpec((BM, Fa + N), graph2),              # nfeat | adj rows   (per step)
        pl.BlockSpec((BM, N * Fb), graph2),              # edge features      (per step)
        pl.BlockSpec((BM, 1 + Vp), graph2),              # baseline | mask    (per step)
        pl.BlockSpec(packed["w_ne"].shape, const2),      # -- resident params from here --
        pl.BlockSpec(packed["w_ee_bd"].shape, const2),
        pl.BlockSpec(packed["w_self"].shape, const3),
        pl.BlockSpec(packed["w_msg"].shape, const3),
        pl.BlockSpec(packed["w_e2n_t"].shape, const3),
        pl.BlockSpec(packed["w1"].shape, const2),
        pl.BlockSpec(packed["w2_pad"].shape, const2),
        pl.BlockSpec(packed["expand_cat"].shape, const2),
        pl.BlockSpec(packed["bd_mask"].shape, const2),
        pl.BlockSpec(packed["bias_pack"].shape, const2),
    ]
    out_spec = pl.BlockSpec((BM, Vp), graph2)

    return pl.pallas_call(
        fragment_dqn_kernel,
        out_shape=jax.ShapeDtypeStruct((B * N, Vp), jnp.float32),
        grid=(nb,),
        in_specs=in_specs,
        out_specs=out_spec,
        compiler_params=pltpu.CompilerParams(
            dimension_semantics=("parallel",)),   # batch steps -> split across TCs on v7x
    )(slab, eflat, epi,
      packed["w_ne"], packed["w_ee_bd"], packed["w_self"], packed["w_msg"],
      packed["w_e2n_t"], packed["w1"], packed["w2_pad"],
      packed["expand_cat"], packed["bd_mask"], packed["bias_pack"])


# ----------------------------------------------------------------------------------
# Plain-JAX reference in the "natural" (per-edge / per-layer) formulation, with the
# same bf16-operand / f32-accumulation casting as the kernel.
# ----------------------------------------------------------------------------------
def ref_forward(params, n_feat, e_feat, adj, baseline, mask):
    cd, f32 = COMPUTE_DTYPE, jnp.float32

    def mm(a, b):
        return jnp.einsum("...i,ij->...j", a.astype(cd), b.astype(cd),
                          preferred_element_type=f32)

    h = jax.nn.relu(mm(n_feat, params["w_ne"]) + params["b_ne"])          # [B,N,Hn]
    e = jax.nn.relu(mm(e_feat, params["w_ee"]) + params["b_ee"])          # [B,N,N,He]
    adj_c = adj.astype(cd)
    for l in range(N_LAYERS):
        msg_n = mm(h, params["w_msg"][l])
        nbr = jnp.einsum("bij,bjh->bih", adj_c, msg_n.astype(cd),
                         preferred_element_type=f32)
        msg_e = mm(e, params["w_e2n"][l])                                  # [B,N,N,Hn]
        e_contrib = (adj[..., None] * msg_e).sum(axis=2)                   # [B,N,Hn]
        h = jax.nn.relu(mm(h, params["w_self"][l]) + nbr + e_contrib + params["b_layer"][l])
    z = jax.nn.relu(mm(h, params["w1"]) + params["b1"])
    values = mm(z, params["w2"]) + params["b2"]
    values = values + baseline
    out = jnp.concatenate([values, baseline], axis=-1)
    out = jnp.where(mask > 0, out, -jnp.inf)
    return out.reshape(-1, out.shape[-1])


def init_params(key):
    ks = jax.random.split(key, 8)
    s = 0.1
    Hn, He = N_NODE_HIDDEN, N_EDGE_HIDDEN
    return {
        "w_ne":    s * jax.random.normal(ks[0], (N_ATOM_FEAT, Hn), jnp.float32),
        "b_ne":    jnp.zeros((1, Hn), jnp.float32),
        "w_ee":    s * jax.random.normal(ks[1], (N_BOND_FEAT, He), jnp.float32),
        "b_ee":    jnp.zeros((1, He), jnp.float32),
        "w_msg":   s * jax.random.normal(ks[2], (N_LAYERS, Hn, Hn), jnp.float32),
        "w_e2n":   s * jax.random.normal(ks[3], (N_LAYERS, He, Hn), jnp.float32),
        "w_self":  s * jax.random.normal(ks[4], (N_LAYERS, Hn, Hn), jnp.float32),
        "b_layer": jnp.zeros((N_LAYERS, 1, Hn), jnp.float32),
        "w1":      s * jax.random.normal(ks[5], (Hn, Hn), jnp.float32),
        "b1":      jnp.zeros((1, Hn), jnp.float32),
        "w2":      s * jax.random.normal(ks[6], (Hn, VOCAB_SIZE), jnp.float32),
        "b2":      jnp.zeros((1, VOCAB_SIZE), jnp.float32),
    }


if __name__ == "__main__":
    key = jax.random.PRNGKey(0)
    k_p, k_x, k_e, k_a, k_b, k_m = jax.random.split(key, 6)

    params = init_params(k_p)
    packed = prepare_params(params, graphs_per_step=GRAPHS_PER_STEP)   # one-time packing

    B, N, V = N_GRAPHS, N_NODES, VOCAB_SIZE
    n_feat = jax.random.normal(k_x, (B, N, N_ATOM_FEAT), jnp.float32)

    # random undirected adjacencies (no self loops); edge features zeroed off-edge
    u = jax.random.uniform(k_a, (B, N, N))
    adj = jnp.triu((u < 0.3).astype(jnp.float32), 1)
    adj = adj + jnp.swapaxes(adj, 1, 2)
    e_feat = jax.random.normal(k_e, (B, N, N, N_BOND_FEAT), jnp.float32) * adj[..., None]

    baseline = jax.random.normal(k_b, (B, N, 1), jnp.float32)
    mask = (jax.random.uniform(k_m, (B, N, V + 1)) < 0.8).astype(jnp.float32)

    fwd = jax.jit(fragment_dqn_forward)
    out = fwd(packed, n_feat, e_feat, adj, baseline, mask)
    out = jax.block_until_ready(out)

    ref = ref_forward(params, n_feat, e_feat, adj, baseline, mask)

    assert out.shape == (B * N, V + 1)
    out_np, ref_np = np.asarray(out), np.asarray(ref)
    assert np.array_equal(np.isneginf(out_np), np.isneginf(ref_np)), \
        "mask (-inf) placement mismatch"
    fin = np.isfinite(ref_np)
    assert np.allclose(out_np[fin], ref_np[fin], rtol=1e-2, atol=1e-2), \
        "Pallas kernel output mismatch vs JAX reference"

    print("KERNEL_OK")
</pallas_src>

<mosaic_0001>
module attributes {stable_mosaic.version = 11 : i64} {
  func.func @fragment_dqn_kernel(%arg0: i32, %arg1: memref<256x34xbf16, #tpu.memory_space<vmem>>, %arg2: memref<256x96xbf16, #tpu.memory_space<vmem>>, %arg3: memref<256x10xf32, #tpu.memory_space<vmem>>, %arg4: memref<18x32xbf16, #tpu.memory_space<vmem>>, %arg5: memref<96x256xbf16, #tpu.memory_space<vmem>>, %arg6: memref<2x32x32xbf16, #tpu.memory_space<vmem>>, %arg7: memref<2x32x32xbf16, #tpu.memory_space<vmem>>, %arg8: memref<2x256x32xbf16, #tpu.memory_space<vmem>>, %arg9: memref<32x32xbf16, #tpu.memory_space<vmem>>, %arg10: memref<32x9xbf16, #tpu.memory_space<vmem>>, %arg11: memref<16x512xbf16, #tpu.memory_space<vmem>>, %arg12: memref<256x256xbf16, #tpu.memory_space<vmem>>, %arg13: memref<6x256xf32, #tpu.memory_space<vmem>>, %arg14: memref<256x9xf32, #tpu.memory_space<vmem>>) attributes {dimension_semantics = [#tpu.dimension_semantics<parallel>], iteration_bounds = array<i64: 2>, scalar_prefetch = 0 : i64, scratch_operands = 0 : i64, tpu.core_type = #tpu.core_type<tc>, window_params = [{transform_indices = @transform_0, window_bounds = array<i64: 256, 34>}, {transform_indices = @transform_1, window_bounds = array<i64: 256, 96>}, {transform_indices = @transform_2, window_bounds = array<i64: 256, 10>}, {pipeline_mode = #tpu.pipeline_mode<synchronous>, transform_indices = @transform_3, window_bounds = array<i64: 18, 32>}, {pipeline_mode = #tpu.pipeline_mode<synchronous>, transform_indices = @transform_4, window_bounds = array<i64: 96, 256>}, {pipeline_mode = #tpu.pipeline_mode<synchronous>, transform_indices = @transform_5, window_bounds = array<i64: 2, 32, 32>}, {pipeline_mode = #tpu.pipeline_mode<synchronous>, transform_indices = @transform_6, window_bounds = array<i64: 2, 32, 32>}, {pipeline_mode = #tpu.pipeline_mode<synchronous>, transform_indices = @transform_7, window_bounds = array<i64: 2, 256, 32>}, {pipeline_mode = #tpu.pipeline_mode<synchronous>, transform_indices = @transform_8, window_bounds = array<i64: 32, 32>}, {pipeline_mode = #tpu.pipeline_mode<synchronous>, transform_indices = @transform_9, window_bounds = array<i64: 32, 9>}, {pipeline_mode = #tpu.pipeline_mode<synchronous>, transform_indices = @transform_10, window_bounds = array<i64: 16, 512>}, {pipeline_mode = #tpu.pipeline_mode<synchronous>, transform_indices = @transform_11, window_bounds = array<i64: 256, 256>}, {pipeline_mode = #tpu.pipeline_mode<synchronous>, transform_indices = @transform_12, window_bounds = array<i64: 6, 256>}, {transform_indices = @transform_13, window_bounds = array<i64: 256, 9>}]} {
    %c0 = arith.constant 0 : index
    %c0_0 = arith.constant 0 : index
    %0 = vector.load %arg1[%c0, %c0_0] : memref<256x34xbf16, #tpu.memory_space<vmem>>, vector<256x34xbf16>
    %1 = vector.extract_strided_slice %0 {offsets = [0, 0], sizes = [256, 18], strides = [1, 1]} : vector<256x34xbf16> to vector<256x18xbf16>
    %2 = vector.extract_strided_slice %0 {offsets = [0, 18], sizes = [256, 16], strides = [1, 1]} : vector<256x34xbf16> to vector<256x16xbf16>
    %c0_1 = arith.constant 0 : index
    %c0_2 = arith.constant 0 : index
    %3 = vector.load %arg13[%c0_1, %c0_2] : memref<6x256xf32, #tpu.memory_space<vmem>>, vector<6x256xf32>
    %4 = vector.extract_strided_slice %3 {offsets = [0, 0], sizes = [1, 32], strides = [1, 1]} : vector<6x256xf32> to vector<1x32xf32>
    %5 = vector.extract_strided_slice %3 {offsets = [1, 0], sizes = [1, 256], strides = [1, 1]} : vector<6x256xf32> to vector<1x256xf32>
    %6 = vector.extract_strided_slice %3 {offsets = [2, 0], sizes = [1, 32], strides = [1, 1]} : vector<6x256xf32> to vector<1x32xf32>
    %7 = vector.extract_strided_slice %3 {offsets = [3, 0], sizes = [1, 9], strides = [1, 1]} : vector<6x256xf32> to vector<1x9xf32>
    %c0_3 = arith.constant 0 : index
    %c0_4 = arith.constant 0 : index
    %8 = vector.load %arg11[%c0_3, %c0_4] : memref<16x512xbf16, #tpu.memory_space<vmem>>, vector<16x512xbf16>
    %cst = arith.constant dense<0.000000e+00> : vector<256x512xf32>
    %9 = tpu.matmul %2, %8, %cst {dimension_numbers = #tpu.dot_dimension_numbers<[1], [0], [0], [1], [0, 0, 1, 1], [], []>} : vector<256x16xbf16>, vector<16x512xbf16>, vector<256x512xf32> -> vector<256x512xf32>
    %10 = vector.extract_strided_slice %9 {offsets = [0, 0], sizes = [256, 256], strides = [1, 1]} : vector<256x512xf32> to vector<256x256xf32>
    %11 = arith.truncf %10 : vector<256x256xf32> to vector<256x256xbf16>
    %12 = vector.extract_strided_slice %9 {offsets = [0, 256], sizes = [256, 256], strides = [1, 1]} : vector<256x512xf32> to vector<256x256xf32>
    %13 = arith.truncf %12 : vector<256x256xf32> to vector<256x256xbf16>
    %c0_5 = arith.constant 0 : index
    %c0_6 = arith.constant 0 : index
    %14 = vector.load %arg12[%c0_5, %c0_6] : memref<256x256xbf16, #tpu.memory_space<vmem>>, vector<256x256xbf16>
    %15 = arith.mulf %13, %14 : vector<256x256xbf16>
    %c0_7 = arith.constant 0 : index
    %c0_8 = arith.constant 0 : index
    %16 = vector.load %arg4[%c0_7, %c0_8] : memref<18x32xbf16, #tpu.memory_space<vmem>>, vector<18x32xbf16>
    %cst_9 = arith.constant dense<0.000000e+00> : vector<256x32xf32>
    %17 = tpu.matmul %1, %16, %cst_9 {dimension_numbers = #tpu.dot_dimension_numbers<[1], [0], [0], [1], [0, 0, 1, 1], [], []>} : vector<256x18xbf16>, vector<18x32xbf16>, vector<256x32xf32> -> vector<256x32xf32>
    %18 = vector.broadcast %4 : vector<1x32xf32> to vector<256x32xf32>
    %19 = arith.addf %17, %18 : vector<256x32xf32>
    %cst_10 = arith.constant 0.000000e+00 : f32
    %20 = vector.broadcast %cst_10 : f32 to vector<256x32xf32>
    %21 = arith.maximumf %19, %20 : vector<256x32xf32>
    %c0_11 = arith.constant 0 : index
    %c0_12 = arith.constant 0 : index
    %22 = vector.load %arg2[%c0_11, %c0_12] : memref<256x96xbf16, #tpu.memory_space<vmem>>, vector<256x96xbf16>
    %c0_13 = arith.constant 0 : index
    %c0_14 = arith.constant 0 : index
    %23 = vector.load %arg5[%c0_13, %c0_14] : memref<96x256xbf16, #tpu.memory_space<vmem>>, vector<96x256xbf16>
    %cst_15 = arith.constant dense<0.000000e+00> : vector<256x256xf32>
    %24 = tpu.matmul %22, %23, %cst_15 {dimension_numbers = #tpu.dot_dimension_numbers<[1], [0], [0], [1], [0, 0, 1, 1], [], []>} : vector<256x96xbf16>, vector<96x256xbf16>, vector<256x256xf32> -> vector<256x256xf32>
    %25 = vector.broadcast %5 : vector<1x256xf32> to vector<256x256xf32>
    %26 = arith.addf %24, %25 : vector<256x256xf32>
    %cst_16 = arith.constant 0.000000e+00 : f32
    %27 = vector.broadcast %cst_16 : f32 to vector<256x256xf32>
    %28 = arith.maximumf %26, %27 : vector<256x256xf32>
    %29 = arith.truncf %28 : vector<256x256xf32> to vector<256x256xbf16>
    %30 = arith.mulf %29, %11 : vector<256x256xbf16>
    %31 = arith.truncf %21 : vector<256x32xf32> to vector<256x32xbf16>
    %c0_17 = arith.constant 0 : index
    %c0_18 = arith.constant 0 : index
    %c0_19 = arith.constant 0 : index
    %32 = vector.load %arg6[%c0_17, %c0_18, %c0_19] : memref<2x32x32xbf16, #tpu.memory_space<vmem>>, vector<1x32x32xbf16>
    %33 = vector.shape_cast %32 : vector<1x32x32xbf16> to vector<32x32xbf16>
    %cst_20 = arith.constant dense<0.000000e+00> : vector<256x32xf32>
    %34 = tpu.matmul %31, %33, %cst_20 {dimension_numbers = #tpu.dot_dimension_numbers<[1], [0], [0], [1], [0, 0, 1, 1], [], []>} : vector<256x32xbf16>, vector<32x32xbf16>, vector<256x32xf32> -> vector<256x32xf32>
    %c0_21 = arith.constant 0 : index
    %c0_22 = arith.constant 0 : index
    %c0_23 = arith.constant 0 : index
    %35 = vector.load %arg7[%c0_21, %c0_22, %c0_23] : memref<2x32x32xbf16, #tpu.memory_space<vmem>>, vector<1x32x32xbf16>
    %36 = vector.shape_cast %35 : vector<1x32x32xbf16> to vector<32x32xbf16>
    %cst_24 = arith.constant dense<0.000000e+00> : vector<256x32xf32>
    %37 = tpu.matmul %31, %36, %cst_24 {dimension_numbers = #tpu.dot_dimension_numbers<[1], [0], [0], [1], [0, 0, 1, 1], [], []>} : vector<256x32xbf16>, vector<32x32xbf16>, vector<256x32xf32> -> vector<256x32xf32>
    %38 = arith.truncf %37 : vector<256x32xf32> to vector<256x32xbf16>
    %cst_25 = arith.constant dense<0.000000e+00> : vector<256x32xf32>
    %39 = tpu.matmul %15, %38, %cst_25 {dimension_numbers = #tpu.dot_dimension_numbers<[1], [0], [0], [1], [0, 0, 1, 1], [], []>} : vector<256x256xbf16>, vector<256x32xbf16>, vector<256x32xf32> -> vector<256x32xf32>
    %c0_26 = arith.constant 0 : index
    %c0_27 = arith.constant 0 : index
    %c0_28 = arith.constant 0 : index
    %40 = vector.load %arg8[%c0_26, %c0_27, %c0_28] : memref<2x256x32xbf16, #tpu.memory_space<vmem>>, vector<1x256x32xbf16>
    %41 = vector.shape_cast %40 : vector<1x256x32xbf16> to vector<256x32xbf16>
    %cst_29 = arith.constant dense<0.000000e+00> : vector<256x32xf32>
    %42 = tpu.matmul %30, %41, %cst_29 {dimension_numbers = #tpu.dot_dimension_numbers<[1], [0], [0], [1], [0, 0, 1, 1], [], []>} : vector<256x256xbf16>, vector<256x32xbf16>, vector<256x32xf32> -> vector<256x32xf32>
    %43 = arith.addf %34, %39 : vector<256x32xf32>
    %44 = arith.addf %43, %42 : vector<256x32xf32>
    %45 = vector.extract_strided_slice %3 {offsets = [4, 0], sizes = [1, 32], strides = [1, 1]} : vector<6x256xf32> to vector<1x32xf32>
    %46 = vector.broadcast %45 : vector<1x32xf32> to vector<256x32xf32>
    %47 = arith.addf %44, %46 : vector<256x32xf32>
    %cst_30 = arith.constant 0.000000e+00 : f32
    %48 = vector.broadcast %cst_30 : f32 to vector<256x32xf32>
    %49 = arith.maximumf %47, %48 : vector<256x32xf32>
    %50 = arith.truncf %49 : vector<256x32xf32> to vector<256x32xbf16>
    %c1 = arith.constant 1 : index
    %c0_31 = arith.constant 0 : index
    %c0_32 = arith.constant 0 : index
    %51 = vector.load %arg6[%c1, %c0_31, %c0_32] : memref<2x32x32xbf16, #tpu.memory_space<vmem>>, vector<1x32x32xbf16>
    %52 = vector.shape_cast %51 : vector<1x32x32xbf16> to vector<32x32xbf16>
    %cst_33 = arith.constant dense<0.000000e+00> : vector<256x32xf32>
    %53 = tpu.matmul %50, %52, %cst_33 {dimension_numbers = #tpu.dot_dimension_numbers<[1], [0], [0], [1], [0, 0, 1, 1], [], []>} : vector<256x32xbf16>, vector<32x32xbf16>, vector<256x32xf32> -> vector<256x32xf32>
    %c1_34 = arith.constant 1 : index
    %c0_35 = arith.constant 0 : index
    %c0_36 = arith.constant 0 : index
    %54 = vector.load %arg7[%c1_34, %c0_35, %c0_36] : memref<2x32x32xbf16, #tpu.memory_space<vmem>>, vector<1x32x32xbf16>
    %55 = vector.shape_cast %54 : vector<1x32x32xbf16> to vector<32x32xbf16>
    %cst_37 = arith.constant dense<0.000000e+00> : vector<256x32xf32>
    %56 = tpu.matmul %50, %55, %cst_37 {dimension_numbers = #tpu.dot_dimension_numbers<[1], [0], [0], [1], [0, 0, 1, 1], [], []>} : vector<256x32xbf16>, vector<32x32xbf16>, vector<256x32xf32> -> vector<256x32xf32>
    %57 = arith.truncf %56 : vector<256x32xf32> to vector<256x32xbf16>
    %cst_38 = arith.constant dense<0.000000e+00> : vector<256x32xf32>
    %58 = tpu.matmul %15, %57, %cst_38 {dimension_numbers = #tpu.dot_dimension_numbers<[1], [0], [0], [1], [0, 0, 1, 1], [], []>} : vector<256x256xbf16>, vector<256x32xbf16>, vector<256x32xf32> -> vector<256x32xf32>
    %c1_39 = arith.constant 1 : index
    %c0_40 = arith.constant 0 : index
    %c0_41 = arith.constant 0 : index
    %59 = vector.load %arg8[%c1_39, %c0_40, %c0_41] : memref<2x256x32xbf16, #tpu.memory_space<vmem>>, vector<1x256x32xbf16>
    %60 = vector.shape_cast %59 : vector<1x256x32xbf16> to vector<256x32xbf16>
    %cst_42 = arith.constant dense<0.000000e+00> : vector<256x32xf32>
    %61 = tpu.matmul %30, %60, %cst_42 {dimension_numbers = #tpu.dot_dimension_numbers<[1], [0], [0], [1], [0, 0, 1, 1], [], []>} : vector<256x256xbf16>, vector<256x32xbf16>, vector<256x32xf32> -> vector<256x32xf32>
    %62 = arith.addf %53, %58 : vector<256x32xf32>
    %63 = arith.addf %62, %61 : vector<256x32xf32>
    %64 = vector.extract_strided_slice %3 {offsets = [5, 0], sizes = [1, 32], strides = [1, 1]} : vector<6x256xf32> to vector<1x32xf32>
    %65 = vector.broadcast %64 : vector<1x32xf32> to vector<256x32xf32>
    %66 = arith.addf %63, %65 : vector<256x32xf32>
    %cst_43 = arith.constant 0.000000e+00 : f32
    %67 = vector.broadcast %cst_43 : f32 to vector<256x32xf32>
    %68 = arith.maximumf %66, %67 : vector<256x32xf32>
    %69 = arith.truncf %68 : vector<256x32xf32> to vector<256x32xbf16>
    %c0_44 = arith.constant 0 : index
    %c0_45 = arith.constant 0 : index
    %70 = vector.load %arg9[%c0_44, %c0_45] : memref<32x32xbf16, #tpu.memory_space<vmem>>, vector<32x32xbf16>
    %cst_46 = arith.constant dense<0.000000e+00> : vector<256x32xf32>
    %71 = tpu.matmul %69, %70, %cst_46 {dimension_numbers = #tpu.dot_dimension_numbers<[1], [0], [0], [1], [0, 0, 1, 1], [], []>} : vector<256x32xbf16>, vector<32x32xbf16>, vector<256x32xf32> -> vector<256x32xf32>
    %72 = vector.broadcast %6 : vector<1x32xf32> to vector<256x32xf32>
    %73 = arith.addf %71, %72 : vector<256x32xf32>
    %cst_47 = arith.constant 0.000000e+00 : f32
    %74 = vector.broadcast %cst_47 : f32 to vector<256x32xf32>
    %75 = arith.maximumf %73, %74 : vector<256x32xf32>
    %76 = arith.truncf %75 : vector<256x32xf32> to vector<256x32xbf16>
    %c0_48 = arith.constant 0 : index
    %c0_49 = arith.constant 0 : index
    %77 = vector.load %arg10[%c0_48, %c0_49] : memref<32x9xbf16, #tpu.memory_space<vmem>>, vector<32x9xbf16>
    %cst_50 = arith.constant dense<0.000000e+00> : vector<256x9xf32>
    %78 = tpu.matmul %76, %77, %cst_50 {dimension_numbers = #tpu.dot_dimension_numbers<[1], [0], [0], [1], [0, 0, 1, 1], [], []>} : vector<256x32xbf16>, vector<32x9xbf16>, vector<256x9xf32> -> vector<256x9xf32>
    %79 = vector.broadcast %7 : vector<1x9xf32> to vector<256x9xf32>
    %80 = arith.addf %78, %79 : vector<256x9xf32>
    %c0_51 = arith.constant 0 : index
    %c0_52 = arith.constant 0 : index
    %81 = vector.load %arg3[%c0_51, %c0_52] : memref<256x10xf32, #tpu.memory_space<vmem>>, vector<256x10xf32>
    %82 = vector.extract_strided_slice %81 {offsets = [0, 0], sizes = [256, 1], strides = [1, 1]} : vector<256x10xf32> to vector<256x1xf32>
    %83 = vector.extract_strided_slice %81 {offsets = [0, 1], sizes = [256, 9], strides = [1, 1]} : vector<256x10xf32> to vector<256x9xf32>
    %84 = vector.broadcast %82 : vector<256x1xf32> to vector<256x9xf32>
    %85 = arith.addf %80, %84 : vector<256x9xf32>
    %cst_53 = arith.constant 0.000000e+00 : f32
    %86 = vector.broadcast %cst_53 : f32 to vector<256x9xf32>
    %87 = arith.cmpf ogt, %83, %86 : vector<256x9xf32>
    %cst_54 = arith.constant 0xFF800000 : f32
    %88 = vector.broadcast %cst_54 : f32 to vector<256x9xf32>
    %89 = arith.select %87, %85, %88 : vector<256x9xi1>, vector<256x9xf32>
    %c0_55 = arith.constant 0 : index
    %c0_56 = arith.constant 0 : index
    %90 = vector.load %arg14[%c0_55, %c0_56] : memref<256x9xf32, #tpu.memory_space<vmem>>, vector<256x9xf32>
    tpu.vector_store %arg14[%c0_55, %c0_56], %89 {strides = array<i32>} : memref<256x9xf32, #tpu.memory_space<vmem>>, vector<256x9xf32>,
    return
  }
  func.func @transform_0(%arg0: i32) -> (i32, i32) {
    %c0_i32 = arith.constant 0 : i32
    %c0_i32_0 = arith.constant 0 : i32
    return %arg0, %c0_i32 : i32, i32
  }
  func.func @transform_1(%arg0: i32) -> (i32, i32) {
    %c0_i32 = arith.constant 0 : i32
    %c0_i32_0 = arith.constant 0 : i32
    return %arg0, %c0_i32 : i32, i32
  }
  func.func @transform_2(%arg0: i32) -> (i32, i32) {
    %c0_i32 = arith.constant 0 : i32
    %c0_i32_0 = arith.constant 0 : i32
    return %arg0, %c0_i32 : i32, i32
  }
  func.func @transform_3(%arg0: i32) -> (i32, i32) {
    %c0_i32 = arith.constant 0 : i32
    %c0_i32_0 = arith.constant 0 : i32
    %c0_i32_1 = arith.constant 0 : i32
    return %c0_i32, %c0_i32_0 : i32, i32
  }
  func.func @transform_4(%arg0: i32) -> (i32, i32) {
    %c0_i32 = arith.constant 0 : i32
    %c0_i32_0 = arith.constant 0 : i32
    %c0_i32_1 = arith.constant 0 : i32
    return %c0_i32, %c0_i32_0 : i32, i32
  }
  func.func @transform_5(%arg0: i32) -> (i32, i32, i32) {
    %c0_i32 = arith.constant 0 : i32
    %c0_i32_0 = arith.constant 0 : i32
    %c0_i32_1 = arith.constant 0 : i32
    %c0_i32_2 = arith.constant 0 : i32
    return %c0_i32, %c0_i32_0, %c0_i32_1 : i32, i32, i32
  }
  func.func @transform_6(%arg0: i32) -> (i32, i32, i32) {
    %c0_i32 = arith.constant 0 : i32
    %c0_i32_0 = arith.constant 0 : i32
    %c0_i32_1 = arith.constant 0 : i32
    %c0_i32_2 = arith.constant 0 : i32
    return %c0_i32, %c0_i32_0, %c0_i32_1 : i32, i32, i32
  }
  func.func @transform_7(%arg0: i32) -> (i32, i32, i32) {
    %c0_i32 = arith.constant 0 : i32
    %c0_i32_0 = arith.constant 0 : i32
    %c0_i32_1 = arith.constant 0 : i32
    %c0_i32_2 = arith.constant 0 : i32
    return %c0_i32, %c0_i32_0, %c0_i32_1 : i32, i32, i32
  }
  func.func @transform_8(%arg0: i32) -> (i32, i32) {
    %c0_i32 = arith.constant 0 : i32
    %c0_i32_0 = arith.constant 0 : i32
    %c0_i32_1 = arith.constant 0 : i32
    return %c0_i32, %c0_i32_0 : i32, i32
  }
  func.func @transform_9(%arg0: i32) -> (i32, i32) {
    %c0_i32 = arith.constant 0 : i32
    %c0_i32_0 = arith.constant 0 : i32
    %c0_i32_1 = arith.constant 0 : i32
    return %c0_i32, %c0_i32_0 : i32, i32
  }
  func.func @transform_10(%arg0: i32) -> (i32, i32) {
    %c0_i32 = arith.constant 0 : i32
    %c0_i32_0 = arith.constant 0 : i32
    %c0_i32_1 = arith.constant 0 : i32
    return %c0_i32, %c0_i32_0 : i32, i32
  }
  func.func @transform_11(%arg0: i32) -> (i32, i32) {
    %c0_i32 = arith.constant 0 : i32
    %c0_i32_0 = arith.constant 0 : i32
    %c0_i32_1 = arith.constant 0 : i32
    return %c0_i32, %c0_i32_0 : i32, i32
  }
  func.func @transform_12(%arg0: i32) -> (i32, i32) {
    %c0_i32 = arith.constant 0 : i32
    %c0_i32_0 = arith.constant 0 : i32
    %c0_i32_1 = arith.constant 0 : i32
    return %c0_i32, %c0_i32_0 : i32, i32
  }
  func.func @transform_13(%arg0: i32) -> (i32, i32) {
    %c0_i32 = arith.constant 0 : i32
    %c0_i32_0 = arith.constant 0 : i32
    return %arg0, %c0_i32 : i32, i32
  }
}

</mosaic_0001>

<bundles_post_ra>
// kernel: fragment_dqn_forward.1
= control target key start
LH: loop header
LB: loop body
LE: loop exit
PB: predicated region body
PF: predicated region fallthrough
CT: control target
= control target key end

     0   :  { %s6775_s25 = smov 0   ;;  %s9373_s0 = inlined_call_operand.vmem [shape: bf16[512,34], index: 0, kind: input, shape index: {}]   ;;  %s9374_s1 = inlined_call_operand.vmem [shape: bf16[512,96], index: 1, kind: input, shape index: {}]   ;;  %s9375_s2 = inlined_call_operand.vmem [shape: f32[512,10], index: 2, kind: input, shape index: {}]   ;;  %s9376_s3 = inlined_call_operand.vmem [shape: bf16[18,32], index: 3, kind: input, shape index: {}]   ;;  %s9377_s4 = inlined_call_operand.vmem [shape: bf16[96,256], index: 4, kind: input, shape index: {}]   ;;  %s9378_s5 = inlined_call_operand.vmem [shape: bf16[2,32,32], index: 5, kind: input, shape index: {}]   ;;  %s9379_s6 = inlined_call_operand.vmem [shape: bf16[2,32,32], index: 6, kind: input, shape index: {}]   ;;  %s9380_s7 = inlined_call_operand.vmem [shape: bf16[2,256,32], index: 7, kind: input, shape index: {}]   ;;  %s9381_s8 = inlined_call_operand.vmem [shape: bf16[32,32], index: 8, kind: input, shape index: {}]   ;;  %s9382_s9 = inlined_call_operand.vmem [shape: bf16[32,9], index: 9, kind: input, shape index: {}]   ;;  %s9383_s10 = inlined_call_operand.vmem [shape: bf16[16,512], index: 10, kind: input, shape index: {}]   ;;  %s9384_s11 = inlined_call_operand.vmem [shape: bf16[256,256], index: 11, kind: input, shape index: {}]   ;;  %s9385_s12 = inlined_call_operand.vmem [shape: f32[6,256], index: 12, kind: input, shape index: {}]   ;;  %s9386_s13 = inlined_call_operand.vmem [shape: f32[512,9], index: 13, kind: output, shape index: {}]  }
   0x1 LB: > { %s5357_s26 = sadd.s32 4294967295, %s6699_s25   ;;  %p5361_p0 = scmp.ge.s32.totalorder %s6699_s25, 1  ;;  %s6699_s25 = sphi %s6775_s25, %s23_s25  }
   0x2   : > { %p410_p1 = scmp.lt.s32.totalorder %s6699_s25, 3 }
   0x4   : > { %p411_p2 = pnand %p5361_p0, %p410_p1 }
   0x6   : > { %414 = sbr.rel (%p411_p2) target bundleno = 2459 (0x99b), region = 72 }
   0xd   : > { %s5362_s27 = sshll.u32 %s5357_s26, 5  ;;  %v6557_v0 = vld [vmem:[%s9383_s10 + $0x4] ss:$16 sps:$4 sm:$0xff]   ;;  %v6559_v1 = vld [vmem:[%s9383_s10] ss:$16 sps:$4 sm:$0xff]   ;;  %v9387_v2 = vmov 0  }
   0xe   : > { %p465_p3 = scmp.lt.s32.totalorder %s5362_s27, 63  ;;  %708 = vmatprep.subr.bf16.mxu0 %v6557_v0  ;;  %740 = vmatprep.mubr.bf16.mxu0 %v9387_v2  ;;  %s6702_s19 = smov 110   ;;  %v6560_v16 = vld [vmem:[%s9376_s3] sm:$0xff]   ;;  %v6563_v20 = vld [vmem:[%s9383_s10 + $0xc] ss:$16 sps:$4 sm:$0xff]   ;;  %vm659_vm0 = vcmask 130048  }
   0xf   : > { %709 = vmatpush1.bf16.msra.mxu0 %v6559_v1  ;;  %6524 = vmatprep.subr.bf16.mxu1 %v6557_v0  ;;  %v6564_v21 = vld [vmem:[%s9376_s3 + $0x8] ss:$0 sps:$4 sm:$0x11]   ;;  %vm1447_vm1 = vcmask 1040384   ;;  %v6567_v38 = vld [vmem:[%s9377_s4 + $0x4] ss:$8 sps:$4 sm:$0xff]  }
  0x10   : > { %s10000_s27 = smov (!%p465_p3, %s5362_s27), 63  ;;  %6525 = vmatpush1.bf16.msra.mxu1 %v6559_v1  ;;  %860 = vmatprep.mubr.bf16.mxu1 %v9387_v2  ;;  %v1449_v24 = vsel %vm1447_vm1, %v6564_v21, 0  ;;  %v6561_v34 = vld [vmem:[%s9383_s10 + $0x8] ss:$16 sps:$4 sm:$0xff]   ;;  %v6570_v42 = vld [vmem:[%s9377_s4 + $0x14] ss:$8 sps:$4 sm:$0xff]  }
  0x11   : > { %s5363_s15 = sshll.u32 %s10000_s27, 2  ;;  %6540 = vset.pattern.permute.xlu1 %v9387_v2  ;;  %6539 = vset.pattern.permute.xlu0 %v9387_v2  ;;  %v6565_v41 = vld [vmem:[%s9377_s4] ss:$8 sps:$4 sm:$0xff]   ;;  %v6568_v43 = vld [vmem:[%s9377_s4 + $0x10] ss:$8 sps:$4 sm:$0xff]   ;;  %vm1398_vm2 = vcmask 146432  }
  0x12   : > { %s6799_s18 = scalar_lea.vmem %s9373_s0, %s5363_s15  ;;  %s6845_s22 = scalar_lea.vmem %s9374_s1, %s5363_s15  ;;  %6272 = vmatprep.subr.bf16.mxu0 %v6560_v16  ;;  %901 = vmatprep.subr.bf16.mxu1 %v6563_v20  ;;  %v6573_v44 = vld [vmem:[%s9377_s4 + $0x24] ss:$8 sps:$4 sm:$0xff]   ;;  %v6571_v45 = vld [vmem:[%s9377_s4 + $0x20] ss:$8 sps:$4 sm:$0xff]   ;;  %v6576_v46 = vld [vmem:[%s9377_s4 + $0x34] ss:$8 sps:$4 sm:$0xff]  }
  0x13   : > { %v6802_v3 = vld [vmem:[%s6799_s18] sm:$0xff]   ;;  %v6805_v4 = vld [vmem:[%s6799_s18 + $0x8] sm:$0xff]   ;;  %v6810_v5 = vld [vmem:[%s6799_s18 + $0x10] sm:$0xff]   ;;  %vm1836_vm3 = vcmask 785408   ;;  %vm2242_vm4 = vcmask 261120   ;;  %s5367_s24 = sshll.u32 %s10000_s27, 3 }
  0x14   : > { %607 = vrot.lane.b32.xlu0 %v6802_v3, %s6702_s19  ;;  %611 = vrot.lane.b32.xlu1 %v6810_v5, %s6702_s19  ;;  %v6815_v6 = vld [vmem:[%s6799_s18 + $0x18] sm:$0xff]   ;;  %v6820_v7 = vld [vmem:[%s6799_s18 + $0x20] sm:$0xff]   ;;  %s8985_s29 = scalar_lea.vmem %s9375_s2, %s5367_s24  ;;  %s6703_s30 = smov 1  }
  0x15   : > { %v6825_v8 = vld [vmem:[%s6799_s18 + $0x28] sm:$0xff]   ;;  %v6830_v9 = vld [vmem:[%s6799_s18 + $0x30] sm:$0xff]   ;;  %v6835_v10 = vld [vmem:[%s6799_s18 + $0x38] sm:$0xff]   ;;  %s6704_s14 = smov 127   ;;  %s9304_s17 = scalar_lea.vmem %s9386_s13, %s5367_s24 }
  0x16   : > { %v6840_v11 = vld [vmem:[%s6799_s18 + $0x40] sm:$0xff]   ;;  %v6848_v12 = vld [vmem:[%s6799_s18 + $0x48] sm:$0xff]   ;;  %v6853_v13 = vld [vmem:[%s6799_s18 + $0x50] sm:$0xff]  }
  0x17   : > { %v6858_v14 = vld [vmem:[%s6799_s18 + $0x58] sm:$0xff]   ;;  %v6863_v15 = vld [vmem:[%s6799_s18 + $0x60] sm:$0xff]   ;;  %v6871_v17 = vld [vmem:[%s6799_s18 + $0x68] sm:$0xff]  }
  0x18   : > { %609 = vrot.lane.b32.xlu0 %v6805_v4, %s6702_s19  ;;  %613 = vrot.lane.b32.xlu1 %v6815_v6, %s6702_s19  ;;  %v6876_v18 = vld [vmem:[%s6799_s18 + $0x70] sm:$0xff]   ;;  %v6881_v19 = vld [vmem:[%s6799_s18 + $0x78] sm:$0xff]  }
  0x19   : > { %v6574_v47 = vld [vmem:[%s9377_s4 + $0x30] ss:$8 sps:$4 sm:$0xff]   ;;  %v6579_v48 = vld [vmem:[%s9377_s4 + $0x44] ss:$8 sps:$4 sm:$0xff]   ;;  %v6577_v49 = vld [vmem:[%s9377_s4 + $0x40] ss:$8 sps:$4 sm:$0xff]  }
  0x1a   : > { %v6582_v50 = vld [vmem:[%s9377_s4 + $0x54] ss:$8 sps:$4 sm:$0xff]   ;;  %v6580_v51 = vld [vmem:[%s9377_s4 + $0x50] ss:$8 sps:$4 sm:$0xff]   ;;  %v6597_v52 = vld [vmem:[%s9379_s6] sm:$0xff]  }
  0x1b   : > { %v6583_v53 = vld [vmem:[%s6845_s22] sm:$0xff]   ;;  %v6601_v54 = vld [vmem:[%s9379_s6 + $0x8] sm:$0xff]   ;;  %v6585_v56 = vld [vmem:[%s6845_s22 + $0x10] sm:$0xff]  }
  0x1c   : > { %615 = vrot.lane.b32.xlu0 %v6820_v7, %s6702_s19  ;;  %617 = vrot.lane.b32.xlu1 %v6825_v8, %s6702_s19  ;;  %v6584_v55 = vld [vmem:[%s6845_s22 + $0x8] sm:$0xff]   ;;  %v6586_v57 = vld [vmem:[%s6845_s22 + $0x18] sm:$0xff]  }
  0x1d   : > { %v6587_v60 = vld [vmem:[%s6845_s22 + $0x20] sm:$0xff]  }
  0x20   : > { %619 = vrot.lane.b32.xlu0 %v6830_v9, %s6702_s19  ;;  %621 = vrot.lane.b32.xlu1 %v6835_v10, %s6702_s19 }
  0x24   : > { %623 = vrot.lane.b32.xlu0 %v6840_v11, %s6702_s19  ;;  %625 = vrot.lane.b32.xlu1 %v6848_v12, %s6702_s19 }
  0x28   : > { %627 = vrot.lane.b32.xlu0 %v6853_v13, %s6702_s19  ;;  %629 = vrot.lane.b32.xlu1 %v6858_v14, %s6702_s19 }
  0x2c   : > { %631 = vrot.lane.b32.xlu0 %v6863_v15, %s6702_s19  ;;  %633 = vrot.lane.b32.xlu1 %v6871_v17, %s6702_s19 }
  0x30   : > { %635 = vrot.lane.b32.xlu0 %v6876_v18, %s6702_s19  ;;  %637 = vrot.lane.b32.xlu1 %v6881_v19, %s6702_s19 }
  0x86   : > { %v608_v22 = vpop.permute.xlu0 %607  ;;  %v6896_v23 = vpop.permute.xlu1 %611 }
  0x87   : > { %5390 = vmatmul.mubr.msk.bf16.vlgmr.msra.gmra.mrb[0].mxu0 %vm659_vm0, %v608_v22 }
  0x88   : > { %750 = vmatprep.mubr.bf16.mxu0 %v9387_v2  ;;  %6273 = vmatpush3.bf16.msra.mxu0 %v6560_v16 }
  0x89   : > { %6526 = vmatprep.subr.msk.bf16.mxu0 %vm1447_vm1, %v6564_v21 }
  0x8a   : > { %v610_v25 = vpop.permute.xlu0 %609  ;;  %v6899_v26 = vpop.permute.xlu1 %613 }
  0x8c   : > { %6275 = vmatpush3.bf16.msra.mxu0 %v1449_v24 }
  0x8d   : > { %6308 = vmatprep.subr.bf16.mxu0 %v6597_v52 }
  0x8e   : > { %v6901_v27 = vpop.permute.xlu0 %615  ;;  %v6904_v28 = vpop.permute.xlu1 %617 }
  0x8f   : > { %5391 = vmatmul.mubr.msk.bf16.gmra.mrb[4].mxu0 %vm659_vm0, %v610_v25 }
  0x90   : > { %760 = vmatprep.mubr.bf16.mxu0 %v9387_v2 }
  0x92   : > { %v6907_v29 = vpop.permute.xlu0 %619  ;;  %v6909_v30 = vpop.permute.xlu1 %621 }
  0x96   : > { %v6911_v31 = vpop.permute.xlu0 %623  ;;  %v6915_v32 = vpop.permute.xlu1 %625 }
  0x97   : > { %5392 = vmatmul.mubr.msk.bf16.gmra.mrb[8].mxu0 %vm659_vm0, %v6896_v23 }
  0x98   : > { %770 = vmatprep.mubr.bf16.mxu0 %v9387_v2 }
  0x9a   : > { %v6918_v33 = vpop.permute.xlu0 %627  ;;  %v6925_v36 = vpop.permute.xlu1 %629 }
  0x9e   : > { %v6923_v35 = vpop.permute.xlu0 %631  ;;  %v6933_v37 = vpop.permute.xlu1 %633 }
  0x9f   : > { %5393 = vmatmul.mubr.msk.bf16.gmra.mrb[12].mxu0 %vm659_vm0, %v6899_v26  ;;  %5402 = vmatmul.mubr.msk.bf16.vlgmr.msra.gmra.mrb[0].mxu1 %vm659_vm0, %v6923_v35 }
  0xa0   : > { %780 = vmatprep.mubr.bf16.mxu0 %v9387_v2  ;;  %870 = vmatprep.mubr.bf16.mxu1 %v9387_v2 }
  0xa1   : > { %902 = vmatpush1.bf16.msra.mxu1 %v6561_v34 }
  0xa2   : > { %1885 = vmatprep.subr.bf16.mxu1 %v6567_v38  ;;  %v6944_v39 = vpop.permute.xlu0 %635  ;;  %v6952_v40 = vpop.permute.xlu1 %637 }
  0xa7   : > { %5394 = vmatmul.mubr.msk.bf16.gmra.mrb[16].mxu0 %vm659_vm0, %v6901_v27  ;;  %5403 = vmatmul.mubr.msk.bf16.gmra.mrb[4].mxu1 %vm659_vm0, %v6933_v37 }
  0xa8   : > { %790 = vmatprep.mubr.bf16.mxu0 %v9387_v2  ;;  %880 = vmatprep.mubr.bf16.mxu1 %v9387_v2 }
  0xaf   : > { %5395 = vmatmul.mubr.msk.bf16.gmra.mrb[20].mxu0 %vm659_vm0, %v6904_v28  ;;  %5404 = vmatmul.mubr.msk.bf16.gmra.mrb[8].mxu1 %vm659_vm0, %v6944_v39 }
  0xb0   : > { %800 = vmatprep.mubr.bf16.mxu0 %v9387_v2  ;;  %890 = vmatprep.mubr.bf16.mxu1 %v9387_v2 }
  0xb7   : > { %5396 = vmatmul.mubr.msk.bf16.gmra.mrb[24].mxu0 %vm659_vm0, %v6907_v29  ;;  %5405 = vmatmul.mubr.msk.bf16.gmra.mrb[12].mxu1 %vm659_vm0, %v6952_v40 }
  0xb8   : > { %810 = vmatprep.mubr.bf16.mxu0 %v9387_v2  ;;  %933 = vmatprep.mubr.bf16.mxu1 %v9387_v2 }
  0xbf   : > { %5397 = vmatmul.mubr.msk.bf16.gmra.mrb[28].mxu0 %vm659_vm0, %v6909_v30  ;;  %5406 = vmatmul.mubr.msk.bf16.vlgmr.msra.gmra.mrb[16].mxu1 %vm659_vm0, %v608_v22 }
  0xc0   : > { %820 = vmatprep.mubr.bf16.mxu0 %v9387_v2  ;;  %943 = vmatprep.mubr.bf16.mxu1 %v9387_v2 }
  0xc1   : > { %1886 = vmatpush1.bf16.msra.mxu1 %v6565_v41  ;;  %v6617_v41 = vld [vmem:[%s9380_s7 + $0x30] sm:$0xff]  }
  0xc2   : > { %1887 = vmatprep.subr.bf16.mxu1 %v6570_v42  ;;  %v6614_v42 = vld [vmem:[%s9380_s7 + $0x68] sm:$0xff]  }
  0xc5   : > { %1888 = vmatpush1.bf16.msra.mxu1 %v6568_v43  ;;  %v6605_v43 = vld [vmem:[%s9380_s7] sm:$0xff]  }
  0xc6   : > { %1889 = vmatprep.subr.bf16.mxu1 %v6573_v44  ;;  %v6606_v44 = vld [vmem:[%s9380_s7 + $0x48] sm:$0xff]  }
  0xc7   : > { %5398 = vmatmul.mubr.msk.bf16.gmra.mrb[32].mxu0 %vm659_vm0, %v6911_v31  ;;  %5407 = vmatmul.mubr.msk.bf16.gmra.mrb[20].mxu1 %vm659_vm0, %v610_v25  ;;  %v6615_v25 = vld [vmem:[%s9380_s7 + $0x28] sm:$0xff]  }
  0xc8   : > { %830 = vmatprep.mubr.bf16.mxu0 %v9387_v2  ;;  %953 = vmatprep.mubr.bf16.mxu1 %v9387_v2 }
  0xc9   : > { %1890 = vmatpush1.bf16.msra.mxu1 %v6571_v45  ;;  %v6607_v45 = vld [vmem:[%s9380_s7 + $0x8] sm:$0xff]  }
  0xca   : > { %1891 = vmatprep.subr.bf16.mxu1 %v6576_v46  ;;  %v6608_v46 = vld [vmem:[%s9380_s7 + $0x50] sm:$0xff]  }
  0xcd   : > { %1892 = vmatpush1.bf16.msra.mxu1 %v6574_v47 }
  0xce   : > { %1893 = vmatprep.subr.bf16.mxu1 %v6579_v48 }
  0xcf   : > { %5399 = vmatmul.mubr.msk.bf16.gmra.mrb[36].mxu0 %vm659_vm0, %v6915_v32  ;;  %5408 = vmatmul.mubr.msk.bf16.gmra.mrb[24].mxu1 %vm659_vm0, %v6896_v23 }
  0xd0   : > { %840 = vmatprep.mubr.bf16.mxu0 %v9387_v2  ;;  %963 = vmatprep.mubr.bf16.mxu1 %v9387_v2 }
  0xd1   : > { %1894 = vmatpush1.bf16.msra.mxu1 %v6577_v49 }
  0xd2   : > { %1895 = vmatprep.subr.bf16.mxu1 %v6582_v50  ;;  %v6592_v50 = vld [vmem:[%s6845_s22 + $0x48] sm:$0xff]  }
  0xd5   : > { %1896 = vmatpush1.bf16.msra.mxu1 %v6580_v51 }
  0xd7   : > { %5400 = vmatmul.mubr.msk.bf16.gmra.mrb[40].mxu0 %vm659_vm0, %v6918_v33  ;;  %5409 = vmatmul.mubr.msk.bf16.gmra.mrb[28].mxu1 %vm659_vm0, %v6899_v26 }
  0xd8   : > { %850 = vmatprep.mubr.bf16.mxu0 %v9387_v2  ;;  %973 = vmatprep.mubr.bf16.mxu1 %v9387_v2 }
  0xdf   : > { %5401 = vmatmul.mubr.msk.bf16.gmra.mrb[44].mxu0 %vm659_vm0, %v6925_v36  ;;  %5410 = vmatmul.mubr.msk.bf16.gmra.mrb[32].mxu1 %vm659_vm0, %v6901_v27 }
  0xe0   : > { %983 = vmatprep.mubr.bf16.mxu1 %v9387_v2  ;;  %6276 = vmatprep.mubr.msk.bf16.mxu0 %vm1398_vm2, %v6802_v3 }
  0xe7   : > { %5411 = vmatmul.mubr.msk.bf16.gmra.mrb[36].mxu1 %vm659_vm0, %v6904_v28  ;;  %6277 = vmatmul.mubr.msk.bf16.vlgmr.msra.gmra.mrb[48].mxu0 %vm1398_vm2, %v6805_v4  ;;  %v6588_v4 = vld [vmem:[%s6845_s22 + $0x28] sm:$0xff]   ;;  %v6613_v28 = vld [vmem:[%s9380_s7 + $0x20] sm:$0xff]  }
  0xe8   : > { %993 = vmatprep.mubr.bf16.mxu1 %v9387_v2  ;;  %6280 = vmatprep.mubr.msk.bf16.mxu0 %vm1398_vm2, %v6810_v5 }
  0xe9   : > { %6309 = vmatpush3.bf16.msra.mxu0 %v6597_v52 }
  0xea   : > { %6310 = vmatprep.subr.bf16.mxu0 %v6601_v54 }
  0xed   : > { %6311 = vmatpush3.bf16.msra.mxu0 %v6601_v54  ;;  %v6609_v54 = vld [vmem:[%s9380_s7 + $0x10] sm:$0xff]  }
  0xef   : > { %5412 = vmatmul.mubr.msk.bf16.gmra.mrb[40].mxu1 %vm659_vm0, %v6907_v29  ;;  %6281 = vmatmul.mubr.msk.bf16.gmra.mrb[52].mxu0 %vm1398_vm2, %v6815_v6 }
  0xf0   : > { %1003 = vmatprep.mubr.bf16.mxu1 %v9387_v2  ;;  %6284 = vmatprep.mubr.msk.bf16.mxu0 %vm1398_vm2, %v6820_v7 }
  0xf7   : > { %5413 = vmatmul.mubr.msk.bf16.gmra.mrb[44].mxu1 %vm659_vm0, %v6909_v30  ;;  %6285 = vmatmul.mubr.msk.bf16.gmra.mrb[56].mxu0 %vm1398_vm2, %v6825_v8  ;;  %v6619_v8 = vld [vmem:[%s9380_s7 + $0x38] sm:$0xff]  }
  0xf8   : > { %1013 = vmatprep.mubr.bf16.mxu1 %v9387_v2  ;;  %6288 = vmatprep.mubr.msk.bf16.mxu0 %vm1398_vm2, %v6830_v9 }
  0xff   : > { %5414 = vmatmul.mubr.msk.bf16.gmra.mrb[48].mxu1 %vm659_vm0, %v6911_v31  ;;  %6289 = vmatmul.mubr.msk.bf16.gmra.mrb[60].mxu0 %vm1398_vm2, %v6835_v10 }
 0x100   : > { %1023 = vmatprep.mubr.bf16.mxu1 %v9387_v2  ;;  %6292 = vmatprep.mubr.msk.bf16.mxu0 %vm1398_vm2, %v6840_v11  ;;  %v6589_v11 = vld [vmem:[%s6845_s22 + $0x30] sm:$0xff]  }
 0x107   : > { %5415 = vmatmul.mubr.msk.bf16.gmra.mrb[52].mxu1 %vm659_vm0, %v6915_v32  ;;  %6293 = vmatmul.mubr.msk.bf16.gmra.mrb[64].mxu0 %vm1398_vm2, %v6848_v12  ;;  %v6591_v32 = vld [vmem:[%s6845_s22 + $0x40] sm:$0xff]  }
 0x108   : > { %1033 = vmatprep.mubr.bf16.mxu1 %v9387_v2  ;;  %6296 = vmatprep.mubr.msk.bf16.mxu0 %vm1398_vm2, %v6853_v13 }
 0x10f   : > { %5416 = vmatmul.mubr.msk.bf16.gmra.mrb[56].mxu1 %vm659_vm0, %v6918_v33  ;;  %6297 = vmatmul.mubr.msk.bf16.gmra.mrb[68].mxu0 %vm1398_vm2, %v6858_v14 }
 0x110   : > { %1043 = vmatprep.mubr.bf16.mxu1 %v9387_v2  ;;  %6300 = vmatprep.mubr.msk.bf16.mxu0 %vm1398_vm2, %v6863_v15 }
 0x117   : > { %5417 = vmatmul.mubr.msk.bf16.gmra.mrb[60].mxu1 %vm659_vm0, %v6925_v36  ;;  %6301 = vmatmul.mubr.msk.bf16.gmra.mrb[72].mxu0 %vm1398_vm2, %v6871_v17  ;;  %v6618_v36 = vld [vmem:[%s9380_s7 + $0x78] sm:$0xff]  }
 0x118   : > { %1053 = vmatprep.mubr.bf16.mxu1 %v9387_v2  ;;  %6304 = vmatprep.mubr.msk.bf16.mxu0 %vm1398_vm2, %v6876_v18 }
 0x11f   : > { %5418 = vmatmul.mubr.msk.bf16.gmra.mrb[64].mxu1 %vm659_vm0, %v6923_v35  ;;  %6305 = vmatmul.mubr.msk.bf16.gmra.mrb[76].mxu0 %vm1398_vm2, %v6881_v19  ;;  %v6590_v19 = vld [vmem:[%s6845_s22 + $0x38] sm:$0xff]  }
 0x120   : > { %1063 = vmatprep.mubr.bf16.mxu1 %v9387_v2 }
 0x127   : > { %5419 = vmatmul.mubr.msk.bf16.gmra.mrb[68].mxu1 %vm659_vm0, %v6933_v37 }
 0x128   : > { %1073 = vmatprep.mubr.bf16.mxu1 %v9387_v2 }
 0x12f   : > { %5420 = vmatmul.mubr.msk.bf16.gmra.mrb[72].mxu1 %vm659_vm0, %v6944_v39 }
 0x130   : > { %1083 = vmatprep.mubr.bf16.mxu1 %v9387_v2 }
 0x137   : > { %5421 = vmatmul.mubr.msk.bf16.gmra.mrb[76].mxu1 %vm659_vm0, %v6952_v40  ;;  %v6604_v40 = vld [vmem:[%s9380_s7 + $0x40] sm:$0xff]  }
 0x138   : > { %1917 = vmatprep.mubr.bf16.mxu1 %v9387_v2  ;;  %5846 = vmatprep.subr.bf16.mxu1 %v6604_v40 }
 0x13f   : > { %5500 = vmatmul.mubr.msk.bf16.vlgmr.msra.gmra.mrb[80].mxu1 %vm1836_vm3, %v6583_v53 }
 0x140   : > { %1927 = vmatprep.mubr.bf16.mxu1 %v9387_v2  ;;  %5847 = vmatpush3.bf16.msra.mxu1 %v6605_v43 }
 0x141   : > { %5848 = vmatprep.subr.bf16.mxu1 %v6606_v44 }
 0x144   : > { %5849 = vmatpush3.bf16.msra.mxu1 %v6607_v45 }
 0x145   : > { %5850 = vmatprep.subr.bf16.mxu1 %v6608_v46  ;;  %v6593_v46 = vld [vmem:[%s6845_s22 + $0x50] sm:$0xff]  }
 0x147   : > { %5501 = vmatmul.mubr.msk.bf16.gmra.mrb[84].mxu1 %vm1836_vm3, %v6584_v55 }
 0x148   : > { %1937 = vmatprep.mubr.bf16.mxu1 %v9387_v2  ;;  %5851 = vmatpush3.bf16.msra.mxu1 %v6609_v54 }
 0x14f   : > { %5502 = vmatmul.mubr.msk.bf16.gmra.mrb[88].mxu1 %vm1836_vm3, %v6585_v56 }
 0x150   : > { %1947 = vmatprep.mubr.bf16.mxu1 %v9387_v2 }
 0x157   : > { %5503 = vmatmul.mubr.msk.bf16.gmra.mrb[92].mxu1 %vm1836_vm3, %v6586_v57 }
 0x158   : > { %1957 = vmatprep.mubr.bf16.mxu1 %v9387_v2 }
 0x15a   : > { %v7103_v58 = vpop.f32.mrb[0].mxu0 }
 0x15b   : > { %v7105_v59 = vpop.f32.mrb[1].mxu0 }
 0x15c   : > { %v7108_v61 = vpop.f32.mrb[2].mxu0 }
 0x15d   : > { %v7112_v63 = vpop.f32.mrb[3].mxu0 }
 0x15f   : > { %5504 = vmatmul.mubr.msk.bf16.gmra.mrb[96].mxu1 %vm1836_vm3, %v6587_v60 }
 0x160   : > { %1967 = vmatprep.mubr.bf16.mxu1 %v9387_v2 }
 0x162   : > { %v7118_v1 = vpop.f32.mrb[4].mxu0 }
 0x163   : > { %v7120_v3 = vpop.f32.mrb[5].mxu0 }
 0x164   : > { %v7123_v5 = vpop.f32.mrb[6].mxu0 }
 0x165   : > { %v7127_v7 = vpop.f32.mrb[7].mxu0 }
 0x167   : > { %5505 = vmatmul.mubr.msk.bf16.gmra.mrb[100].mxu1 %vm1836_vm3, %v6588_v4  ;;  %v6610_v4 = vld [vmem:[%s9380_s7 + $0x58] sm:$0xff]  }
 0x168   : > { %1977 = vmatprep.mubr.bf16.mxu1 %v9387_v2  ;;  %5852 = vmatprep.subr.bf16.mxu1 %v6610_v4 }
 0x16a   : > { %v7133_v9 = vpop.f32.mrb[8].mxu0 }
 0x16b   : > { %v7135_v10 = vpop.f32.mrb[9].mxu0 }
 0x16c   : > { %v7138_v12 = vpop.f32.mrb[10].mxu0 }
 0x16d   : > { %v7142_v14 = vpop.f32.mrb[11].mxu0 }
 0x16f   : > { %5506 = vmatmul.mubr.msk.bf16.gmra.mrb[104].mxu1 %vm1836_vm3, %v6589_v11 }
 0x170   : > { %1987 = vmatprep.mubr.bf16.mxu1 %v9387_v2 }
 0x172   : > { %v7148_v16 = vpop.f32.mrb[12].mxu0  ;;  %v7150_v17 = vpop.f32.mrb[0].mxu1 }
 0x173   : > { %9554 = vst [vmem:[#allocation2_spill] sm:$0xff] %v7150_v17  ;;  %v7152_v18 = vpop.f32.mrb[13].mxu0  ;;  %v7155_v20 = vpop.f32.mrb[1].mxu1 }
 0x174   : > { %9555 = vst [vmem:[#allocation3_spill] sm:$0xff] %v7155_v20  ;;  %v7157_v21 = vpop.f32.mrb[14].mxu0  ;;  %v7159_v22 = vpop.f32.mrb[2].mxu1 }
 0x175   : > { %9556 = vst [vmem:[#allocation4_spill] sm:$0xff] %v7159_v22  ;;  %v7163_v24 = vpop.f32.mrb[15].mxu0  ;;  %v7167_v26 = vpop.f32.mrb[3].mxu1 }
 0x176   : > { %9557 = vst [vmem:[#allocation5_spill] sm:$0xff] %v7167_v26 }
 0x177   : > { %5507 = vmatmul.mubr.msk.bf16.gmra.mrb[108].mxu1 %vm1836_vm3, %v6590_v19 }
 0x178   : > { %1997 = vmatprep.mubr.bf16.mxu1 %v9387_v2 }
 0x17a   : > { %v7175_v29 = vpop.f32.mrb[16].mxu0  ;;  %v7177_v30 = vpop.f32.mrb[4].mxu1 }
 0x17b   : > { %9558 = vst [vmem:[#allocation6_spill] sm:$0xff] %v7177_v30  ;;  %v7179_v31 = vpop.f32.mrb[17].mxu0  ;;  %v7182_v33 = vpop.f32.mrb[5].mxu1 }
 0x17c   : > { %9559 = vst [vmem:[#allocation7_spill] sm:$0xff] %v7182_v33  ;;  %v7184_v34 = vpop.f32.mrb[18].mxu0  ;;  %v7186_v35 = vpop.f32.mrb[6].mxu1 }
 0x17d   : > { %9560 = vst [vmem:[#allocation8_spill] sm:$0xff] %v7186_v35  ;;  %v7190_v37 = vpop.f32.mrb[19].mxu0  ;;  %v7194_v39 = vpop.f32.mrb[7].mxu1 }
 0x17e   : > { %9561 = vst [vmem:[#allocation9_spill] sm:$0xff] %v7194_v39 }
 0x17f   : > { %5508 = vmatmul.mubr.msk.bf16.gmra.mrb[112].mxu1 %vm1836_vm3, %v6591_v32  ;;  %v6611_v32 = vld [vmem:[%s9380_s7 + $0x18] sm:$0xff]  }
 0x180   : > { %2007 = vmatprep.mubr.bf16.mxu1 %v9387_v2  ;;  %5853 = vmatpush3.bf16.msra.mxu1 %v6611_v32 }
 0x182   : > { %v7217_v47 = vpop.f32.mrb[20].mxu0  ;;  %v7219_v48 = vpop.f32.mrb[8].mxu1 }
 0x183   : > { %9562 = vst [vmem:[#allocation10_spill] sm:$0xff] %v7219_v48  ;;  %v7221_v49 = vpop.f32.mrb[21].mxu0  ;;  %v7224_v51 = vpop.f32.mrb[9].mxu1 }
 0x184   : > { %9563 = vst [vmem:[#allocation11_spill] sm:$0xff] %v7224_v51  ;;  %v7226_v52 = vpop.f32.mrb[22].mxu0  ;;  %v7228_v53 = vpop.f32.mrb[10].mxu1 }
 0x185   : > { %9564 = vst [vmem:[#allocation12_spill] sm:$0xff] %v7228_v53  ;;  %v7235_v56 = vpop.f32.mrb[23].mxu0  ;;  %v7239_v60 = vpop.f32.mrb[11].mxu1  ;;  %v6602_v53 = vld [vmem:[%s6845_s22 + $0x78] sm:$0xff]  }
 0x186   : > { %9565 = vst [vmem:[#allocation13_spill] sm:$0xff] %v7239_v60 }
 0x187   : > { %5509 = vmatmul.mubr.msk.bf16.gmra.mrb[116].mxu1 %vm1836_vm3, %v6592_v50  ;;  %v6612_v50 = vld [vmem:[%s9380_s7 + $0x60] sm:$0xff]  }
 0x188   : > { %2017 = vmatprep.mubr.bf16.mxu1 %v9387_v2  ;;  %5854 = vmatprep.subr.bf16.mxu1 %v6612_v50 }
 0x189   : > { %5855 = vmatpush3.bf16.msra.mxu1 %v6613_v28 }
 0x18a   : > { %v7253_v40 = vpop.f32.mrb[24].mxu0  ;;  %v7255_v43 = vpop.f32.mrb[12].mxu1  ;;  %5856 = vmatprep.subr.bf16.mxu1 %v6614_v42  ;;  %v6616_v42 = vld [vmem:[%s9380_s7 + $0x70] sm:$0xff]  }
 0x18b   : > { %9566 = vst [vmem:[#allocation14_spill] sm:$0xff] %v7255_v43  ;;  %v7257_v44 = vpop.f32.mrb[25].mxu0  ;;  %v7259_v45 = vpop.f32.mrb[13].mxu1 }
 0x18c   : > { %9567 = vst [vmem:[#allocation15_spill] sm:$0xff] %v7259_v45  ;;  %v7265_v19 = vpop.f32.mrb[26].mxu0  ;;  %v7267_v54 = vpop.f32.mrb[14].mxu1  ;;  %v9576_v45 = vmov 0  }
 0x18d   : > { %9568 = vst [vmem:[#allocation16_spill] sm:$0xff] %v7267_v54  ;;  %v7271_v57 = vpop.f32.mrb[27].mxu0  ;;  %v7275_v38 = vpop.f32.mrb[15].mxu1  ;;  %5857 = vmatpush3.bf16.msra.mxu1 %v6615_v25 }
 0x18e   : > { %9569 = vst [vmem:[#allocation17_spill] sm:$0xff] %v7275_v38  ;;  %5858 = vmatprep.subr.bf16.mxu1 %v6616_v42 }
 0x18f   : > { %5510 = vmatmul.mubr.msk.bf16.gmra.mrb[120].mxu1 %vm1836_vm3, %v6593_v46  ;;  %v6596_v46 = vld [vmem:[%s6845_s22 + $0x58] sm:$0xff]  }
 0x190   : > { %2027 = vmatprep.mubr.bf16.mxu1 %v9387_v2 }
 0x191   : > { %5859 = vmatpush3.bf16.msra.mxu1 %v6617_v41 }
 0x192   : > { %v7289_v50 = vpop.f32.mrb[28].mxu0  ;;  %v7291_v4 = vpop.f32.mrb[16].mxu1  ;;  %5860 = vmatprep.subr.bf16.mxu1 %v6618_v36 }
 0x193   : > { %9570 = vst [vmem:[#allocation18_spill] sm:$0xff] %v7291_v4  ;;  %v7296_v11 = vpop.f32.mrb[29].mxu0  ;;  %v7298_v32 = vpop.f32.mrb[17].mxu1 }
 0x194   : > { %v7301_v55 = vpop.f32.mrb[30].mxu0  ;;  %v7303_v28 = vpop.f32.mrb[18].mxu1 }
 0x195   : > { %9571 = vst [vmem:[#allocation19_spill] sm:$0xff] %v7303_v28  ;;  %v7309_v27 = vpop.f32.mrb[31].mxu0  ;;  %v7311_v23 = vpop.f32.mrb[19].mxu1  ;;  %5861 = vmatpush3.bf16.msra.mxu1 %v6619_v8 }
 0x197   : > { %5511 = vmatmul.mubr.msk.bf16.gmra.mrb[124].mxu1 %vm1836_vm3, %v6596_v46  ;;  %v6598_v46 = vld [vmem:[%s6845_s22 + $0x60] sm:$0xff]  }
 0x198   : > { %2037 = vmatprep.mubr.bf16.mxu1 %v9387_v2 }
 0x19a   : > { %v7328_v13 = vpop.f32.mrb[32].mxu0  ;;  %v7330_v15 = vpop.f32.mrb[20].mxu1 }
 0x19b   : > { %9572 = vst [vmem:[#allocation20_spill] sm:$0xff] %v7330_v15  ;;  %v7335_v6 = vpop.f32.mrb[33].mxu0  ;;  %v7337_v0 = vpop.f32.mrb[21].mxu1  ;;  %v6599_v15 = vld [vmem:[%s6845_s22 + $0x68] sm:$0xff]  }
 0x19c   : > { %9573 = vst [vmem:[#allocation21_spill] sm:$0xff] %v7337_v0  ;;  %v7340_v41 = vpop.f32.mrb[34].mxu0  ;;  %v7342_v42 = vpop.f32.mrb[22].mxu1 }
 0x19d   : > { %9574 = vst [vmem:[#allocation22_spill] sm:$0xff] %v7342_v42  ;;  %v7348_v2 = vpop.f32.mrb[35].mxu0  ;;  %v7350_v4 = vpop.f32.mrb[23].mxu1 }
 0x19e   : > { %9575 = vst [vmem:[#allocation23_spill] sm:$0xff] %v7350_v4 }
 0x19f   : > { %5512 = vmatmul.mubr.msk.bf16.gmra.mrb[128].mxu1 %vm1836_vm3, %v6598_v46 }
 0x1a0   : > { %2047 = vmatprep.mubr.bf16.mxu1 %v9576_v45 }
 0x1a2   : > { %v7358_v8 = vpop.f32.mrb[36].mxu0  ;;  %v7360_v62 = vpop.f32.mrb[24].mxu1 }
 0x1a3   : > { %9577 = vst [vmem:[#allocation24_spill] sm:$0xff] %v7360_v62  ;;  %v7362_v38 = vpop.f32.mrb[37].mxu0  ;;  %v7364_v25 = vpop.f32.mrb[25].mxu1  ;;  %v1385_v62 = vlaneseq }
 0x1a4   : > { %9578 = vst [vmem:[#allocation25_spill] sm:$0xff] %v7364_v25  ;;  %v7367_v42 = vpop.f32.mrb[38].mxu0  ;;  %v7369_v28 = vpop.f32.mrb[26].mxu1 }
 0x1a5   : > { %9579 = vst [vmem:[#allocation26_spill] sm:$0xff] %v7369_v28  ;;  %v7375_v0 = vpop.f32.mrb[39].mxu0  ;;  %v7377_v4 = vpop.f32.mrb[27].mxu1  ;;  %v6600_v28 = vld [vmem:[%s6845_s22 + $0x70] sm:$0xff]   ;;  %v7410_v39 = vshrl.u32 %v1385_v62, 7 }
 0x1a6   : > { %9580 = vst [vmem:[#allocation27_spill] sm:$0xff] %v7377_v4  ;;  %v7431_v62 = vld [vmem:[%s9385_s12] sm:$0x3f] }
 0x1a7   : > { %5513 = vmatmul.mubr.msk.bf16.gmra.mrb[132].mxu1 %vm1836_vm3, %v6599_v15  ;;  %9589 = vst [vmem:[#allocation36_spill] sm:$0xff] %v7410_v39 }
 0x1a8   : > { %2057 = vmatprep.mubr.bf16.mxu1 %v9576_v45 }
 0x1aa   : > { %v7385_v51 = vpop.f32.mrb[40].mxu0  ;;  %v7387_v36 = vpop.f32.mrb[28].mxu1 }
 0x1ab   : > { %9581 = vst [vmem:[#allocation28_spill] sm:$0xff] %v7385_v51  ;;  %9582 = vst [vmem:[#allocation29_spill] sm:$0xff] %v7387_v36  ;;  %v7389_v60 = vpop.f32.mrb[41].mxu0  ;;  %v7391_v46 = vpop.f32.mrb[29].mxu1 }
 0x1ac   : > { %9583 = vst [vmem:[#allocation30_spill] sm:$0xff] %v7389_v60  ;;  %9584 = vst [vmem:[#allocation31_spill] sm:$0xff] %v7391_v46  ;;  %v7394_v48 = vpop.f32.mrb[42].mxu0  ;;  %v7396_v43 = vpop.f32.mrb[30].mxu1 }
 0x1ad   : > { %9585 = vst [vmem:[#allocation32_spill] sm:$0xff] %v7394_v48  ;;  %9586 = vst [vmem:[#allocation33_spill] sm:$0xff] %v7396_v43  ;;  %v7402_v25 = vpop.f32.mrb[43].mxu0  ;;  %v7404_v4 = vpop.f32.mrb[31].mxu1  ;;  %v1387_v43 = vsub.s32 0, %v7410_v39 }
 0x1ae   : > { %9587 = vst [vmem:[#allocation34_spill] sm:$0xff] %v7402_v25  ;;  %9588 = vst [vmem:[#allocation35_spill] sm:$0xff] %v7404_v4 }
 0x1af   : > { %5514 = vmatmul.mubr.msk.bf16.gmra.mrb[136].mxu1 %vm1836_vm3, %v6600_v28  ;;  %v7446_v17 = vrot.slane %v7431_v62, %v1387_v43 }
 0x1b0   : > { %2067 = vmatprep.mubr.bf16.mxu1 %v9576_v45 }
 0x1b2   : > { %v7414_v15 = vpop.f32.mrb[44].mxu0  ;;  %v7416_v30 = vpop.f32.mrb[32].mxu1 }
 0x1b3   : > { %9590 = vst [vmem:[#allocation37_spill] sm:$0xff] %v7414_v15  ;;  %9591 = vst [vmem:[#allocation38_spill] sm:$0xff] %v7416_v30  ;;  %v7418_v54 = vpop.f32.mrb[45].mxu0  ;;  %v7420_v36 = vpop.f32.mrb[33].mxu1 }
 0x1b4   : > { %9592 = vst [vmem:[#allocation39_spill] sm:$0xff] %v7418_v54  ;;  %9593 = vst [vmem:[#allocation40_spill] sm:$0xff] %v7420_v36  ;;  %v7424_v35 = vpop.f32.mrb[46].mxu0  ;;  %v7426_v33 = vpop.f32.mrb[34].mxu1 }
 0x1b5   : > { %9594 = vst [vmem:[#allocation41_spill] sm:$0xff] %v7424_v35  ;;  %9595 = vst [vmem:[#allocation42_spill] sm:$0xff] %v7426_v33  ;;  %v7437_v46 = vpop.f32.mrb[47].mxu0  ;;  %v7439_v4 = vpop.f32.mrb[35].mxu1 }
 0x1b6   : > { %9596 = vst [vmem:[#allocation43_spill] sm:$0xff] %v7437_v46  ;;  %9597 = vst [vmem:[#allocation44_spill] sm:$0xff] %v7439_v4 }
 0x1b7   : > { %5515 = vmatmul.mubr.msk.bf16.gmra.mrb[140].mxu1 %vm1836_vm3, %v6602_v53 }
 0x1ba   : > { %v7449_v22 = vpop.f32.mrb[36].mxu1  ;;  %v6278_v45 = vpop.f32.mrb[48].mxu0 }
 0x1bb   : > { %9598 = vst [vmem:[#allocation45_spill] sm:$0xff] %v7449_v22  ;;  %v1494_v28 = vadd.f32 %v6278_v45, %v7446_v17  ;;  %v7452_v30 = vpop.f32.mrb[37].mxu1  ;;  %v1485_v33 = vpop.f32.mrb[49].mxu0 }
 0x1bc   : > { %9599 = vst [vmem:[#allocation46_spill] sm:$0xff] %v7452_v30  ;;  %v1486_v15 = vadd.f32 %v1485_v33, %v7446_v17  ;;  %v7455_v35 = vpop.f32.mrb[38].mxu1  ;;  %v6279_v20 = vpop.f32.mrb[50].mxu0 }
 0x1bd   : > { %9600 = vst [vmem:[#allocation47_spill] sm:$0xff] %v7455_v35  ;;  %v1497_v43 = vadd.f32 %v6279_v20, %v7446_v17  ;;  %v7460_v36 = vpop.f32.mrb[39].mxu1  ;;  %v1488_v53 = vpop.f32.mrb[51].mxu0  ;;  %v1614_v54 = vmax.f32 %v1494_v28, 0.0 }
 0x1be   : > { %9601 = vst [vmem:[#allocation48_spill] sm:$0xff] %v7460_v36  ;;  %v1489_v45 = vadd.f32 %v1488_v53, %v7446_v17  ;;  %v1612_v60 = vmax.f32 %v1486_v15, 0.0 }
 0x1bf   : > { %v1615_v46 = vmax.f32 %v1497_v43, 0.0 }
 0x1c0   : > { %v1613_v33 = vmax.f32 %v1489_v45, 0.0 }
 0x1c1   : > { %v7465_v25 = vpack.c.bf16 %v1615_v46, %v1614_v54 }
 0x1c2   : > { %v7467_v51 = vpack.c.bf16 %v1613_v33, %v1612_v60  ;;  %v7469_v26 = vpop.f32.mrb[40].mxu1  ;;  %v6282_v20 = vpop.f32.mrb[52].mxu0 }
 0x1c3   : > { %9602 = vst [vmem:[#allocation49_spill] sm:$0xff] %v7465_v25  ;;  %9604 = vst [vmem:[#allocation51_spill] sm:$0xff] %v7469_v26  ;;  %v1510_v22 = vadd.f32 %v6282_v20, %v7446_v17  ;;  %v7472_v35 = vpop.f32.mrb[41].mxu1  ;;  %v1501_v48 = vpop.f32.mrb[53].mxu0 }
 0x1c4   : > { %9603 = vst [vmem:[#allocation50_spill] sm:$0xff] %v7467_v51  ;;  %9605 = vst [vmem:[#allocation52_spill] sm:$0xff] %v7472_v35  ;;  %v1502_v4 = vadd.f32 %v1501_v48, %v7446_v17  ;;  %v7475_v53 = vpop.f32.mrb[42].mxu1  ;;  %v6283_v28 = vpop.f32.mrb[54].mxu0  ;;  %6312 = vmatprep.mubr.msk.bf16.mxu0 %vm2242_vm4, %v7467_v51 }
 0x1c5   : > { %9606 = vst [vmem:[#allocation53_spill] sm:$0xff] %v7475_v53  ;;  %v1513_v54 = vadd.f32 %v6283_v28, %v7446_v17  ;;  %v7482_v46 = vpop.f32.mrb[43].mxu1  ;;  %v1504_v15 = vpop.f32.mrb[55].mxu0  ;;  %6313 = vmatmul.mubr.msk.bf16.vlgmr.msra.gmra.mrb[80].mxu0 %vm2242_vm4, %v7465_v25  ;;  %v1618_v45 = vmax.f32 %v1510_v22, 0.0 }
 0x1c6   : > { %9607 = vst [vmem:[#allocation54_spill] sm:$0xff] %v7482_v46  ;;  %v1505_v43 = vadd.f32 %v1504_v15, %v7446_v17  ;;  %v1616_v20 = vmax.f32 %v1502_v4, 0.0 }
 0x1c7   : > { %v1619_v33 = vmax.f32 %v1513_v54, 0.0 }
 0x1c8   : > { %v1617_v51 = vmax.f32 %v1505_v43, 0.0 }
 0x1c9   : > { %v7489_v30 = vpack.c.bf16 %v1619_v33, %v1618_v45 }
 0x1ca   : > { %v7491_v60 = vpack.c.bf16 %v1617_v51, %v1616_v20  ;;  %v7493_v28 = vpop.f32.mrb[44].mxu1  ;;  %v6286_v26 = vpop.f32.mrb[56].mxu0 }
 0x1cb   : > { %9608 = vst [vmem:[#allocation55_spill] sm:$0xff] %v7489_v30  ;;  %9610 = vst [vmem:[#allocation57_spill] sm:$0xff] %v7493_v28  ;;  %v1526_v53 = vadd.f32 %v6286_v26, %v7446_v17  ;;  %v7496_v36 = vpop.f32.mrb[45].mxu1  ;;  %v1517_v25 = vpop.f32.mrb[57].mxu0 }
 0x1cc   : > { %9609 = vst [vmem:[#allocation56_spill] sm:$0xff] %v7491_v60  ;;  %9611 = vst [vmem:[#allocation58_spill] sm:$0xff] %v7496_v36  ;;  %v1518_v48 = vadd.f32 %v1517_v25, %v7446_v17  ;;  %v7499_v35 = vpop.f32.mrb[46].mxu1  ;;  %v6287_v22 = vpop.f32.mrb[58].mxu0  ;;  %6316 = vmatprep.mubr.msk.bf16.mxu0 %vm2242_vm4, %v7491_v60 }
 0x1cd   : > { %9612 = vst [vmem:[#allocation59_spill] sm:$0xff] %v7499_v35  ;;  %v1529_v4 = vadd.f32 %v6287_v22, %v7446_v17  ;;  %v7506_v54 = vpop.f32.mrb[47].mxu1  ;;  %v1520_v15 = vpop.f32.mrb[59].mxu0  ;;  %6317 = vmatmul.mubr.msk.bf16.gmra.mrb[84].mxu0 %vm2242_vm4, %v7489_v30  ;;  %v1622_v43 = vmax.f32 %v1526_v53, 0.0 }
 0x1ce   : > { %9613 = vst [vmem:[#allocation60_spill] sm:$0xff] %v7506_v54  ;;  %v1521_v25 = vadd.f32 %v1520_v15, %v7446_v17  ;;  %v1620_v33 = vmax.f32 %v1518_v48, 0.0 }
 0x1cf   : > { %v1623_v45 = vmax.f32 %v1529_v4, 0.0 }
 0x1d0   : > { %v1621_v20 = vmax.f32 %v1521_v25, 0.0 }
 0x1d1   : > { %v7513_v60 = vpack.c.bf16 %v1623_v45, %v1622_v43 }
 0x1d2   : > { %v7515_v51 = vpack.c.bf16 %v1621_v20, %v1620_v33  ;;  %v7517_v22 = vpop.f32.mrb[48].mxu1  ;;  %v6290_v28 = vpop.f32.mrb[60].mxu0 }
 0x1d3   : > { %9614 = vst [vmem:[#allocation61_spill] sm:$0xff] %v7513_v60  ;;  %9616 = vst [vmem:[#allocation63_spill] sm:$0xff] %v7517_v22  ;;  %v1542_v35 = vadd.f32 %v6290_v28, %v7446_v17  ;;  %v7520_v46 = vpop.f32.mrb[49].mxu1  ;;  %v1533_v30 = vpop.f32.mrb[61].mxu0 }
 0x1d4   : > { %9615 = vst [vmem:[#allocation62_spill] sm:$0xff] %v7515_v51  ;;  %9617 = vst [vmem:[#allocation64_spill] sm:$0xff] %v7520_v46  ;;  %v1534_v26 = vadd.f32 %v1533_v30, %v7446_v17  ;;  %v7523_v36 = vpop.f32.mrb[50].mxu1  ;;  %v6291_v53 = vpop.f32.mrb[62].mxu0  ;;  %6320 = vmatprep.mubr.msk.bf16.mxu0 %vm2242_vm4, %v7515_v51 }
 0x1d5   : > { %9618 = vst [vmem:[#allocation65_spill] sm:$0xff] %v7523_v36  ;;  %v1545_v4 = vadd.f32 %v6291_v53, %v7446_v17  ;;  %v7530_v15 = vpop.f32.mrb[51].mxu1  ;;  %v1536_v25 = vpop.f32.mrb[63].mxu0  ;;  %6321 = vmatmul.mubr.msk.bf16.gmra.mrb[88].mxu0 %vm2242_vm4, %v7513_v60  ;;  %v1626_v43 = vmax.f32 %v1542_v35, 0.0 }
 0x1d6   : > { %9619 = vst [vmem:[#allocation66_spill] sm:$0xff] %v7530_v15  ;;  %v1537_v28 = vadd.f32 %v1536_v25, %v7446_v17  ;;  %v1624_v33 = vmax.f32 %v1534_v26, 0.0 }
 0x1d7   : > { %v1627_v45 = vmax.f32 %v1545_v4, 0.0 }
 0x1d8   : > { %v1625_v20 = vmax.f32 %v1537_v28, 0.0 }
 0x1d9   : > { %v7537_v51 = vpack.c.bf16 %v1627_v45, %v1626_v43 }
 0x1da   : > { %v7539_v48 = vpack.c.bf16 %v1625_v20, %v1624_v33  ;;  %v7541_v53 = vpop.f32.mrb[52].mxu1  ;;  %v6294_v22 = vpop.f32.mrb[64].mxu0 }
 0x1db   : > { %9620 = vst [vmem:[#allocation67_spill] sm:$0xff] %v7537_v51  ;;  %9622 = vst [vmem:[#allocation69_spill] sm:$0xff] %v7541_v53  ;;  %v1558_v36 = vadd.f32 %v6294_v22, %v7446_v17  ;;  %v7544_v54 = vpop.f32.mrb[53].mxu1  ;;  %v1549_v60 = vpop.f32.mrb[65].mxu0 }
 0x1dc   : > { %9621 = vst [vmem:[#allocation68_spill] sm:$0xff] %v7539_v48  ;;  %9623 = vst [vmem:[#allocation70_spill] sm:$0xff] %v7544_v54  ;;  %v1550_v30 = vadd.f32 %v1549_v60, %v7446_v17  ;;  %v7547_v46 = vpop.f32.mrb[54].mxu1  ;;  %v6295_v35 = vpop.f32.mrb[66].mxu0  ;;  %6324 = vmatprep.mubr.msk.bf16.mxu0 %vm2242_vm4, %v7539_v48 }
 0x1dd   : > { %9624 = vst [vmem:[#allocation71_spill] sm:$0xff] %v7547_v46  ;;  %v1561_v4 = vadd.f32 %v6295_v35, %v7446_v17  ;;  %v7554_v25 = vpop.f32.mrb[55].mxu1  ;;  %v1552_v28 = vpop.f32.mrb[67].mxu0  ;;  %6325 = vmatmul.mubr.msk.bf16.gmra.mrb[92].mxu0 %vm2242_vm4, %v7537_v51  ;;  %v1630_v43 = vmax.f32 %v1558_v36, 0.0 }
 0x1de   : > { %9625 = vst [vmem:[#allocation72_spill] sm:$0xff] %v7554_v25  ;;  %v1553_v22 = vadd.f32 %v1552_v28, %v7446_v17  ;;  %v1628_v33 = vmax.f32 %v1550_v30, 0.0 }
 0x1df   : > { %v1631_v45 = vmax.f32 %v1561_v4, 0.0 }
 0x1e0   : > { %v1629_v20 = vmax.f32 %v1553_v22, 0.0 }
 0x1e1   : > { %v7561_v48 = vpack.c.bf16 %v1631_v45, %v1630_v43 }
 0x1e2   : > { %v7563_v26 = vpack.c.bf16 %v1629_v20, %v1628_v33  ;;  %v7565_v35 = vpop.f32.mrb[56].mxu1  ;;  %v6298_v53 = vpop.f32.mrb[68].mxu0 }
 0x1e3   : > { %9626 = vst [vmem:[#allocation73_spill] sm:$0xff] %v7561_v48  ;;  %9628 = vst [vmem:[#allocation75_spill] sm:$0xff] %v7565_v35  ;;  %v1574_v46 = vadd.f32 %v6298_v53, %v7446_v17  ;;  %v7568_v15 = vpop.f32.mrb[57].mxu1  ;;  %v1565_v51 = vpop.f32.mrb[69].mxu0 }
 0x1e4   : > { %9627 = vst [vmem:[#allocation74_spill] sm:$0xff] %v7563_v26  ;;  %9629 = vst [vmem:[#allocation76_spill] sm:$0xff] %v7568_v15  ;;  %v1566_v60 = vadd.f32 %v1565_v51, %v7446_v17  ;;  %v7571_v54 = vpop.f32.mrb[58].mxu1  ;;  %v6299_v36 = vpop.f32.mrb[70].mxu0  ;;  %6328 = vmatprep.mubr.msk.bf16.mxu0 %vm2242_vm4, %v7563_v26 }
 0x1e5   : > { %9630 = vst [vmem:[#allocation77_spill] sm:$0xff] %v7571_v54  ;;  %v1577_v4 = vadd.f32 %v6299_v36, %v7446_v17  ;;  %v7578_v28 = vpop.f32.mrb[59].mxu1  ;;  %v1568_v22 = vpop.f32.mrb[71].mxu0  ;;  %6329 = vmatmul.mubr.msk.bf16.gmra.mrb[96].mxu0 %vm2242_vm4, %v7561_v48  ;;  %v1634_v43 = vmax.f32 %v1574_v46, 0.0 }
 0x1e6   : > { %9631 = vst [vmem:[#allocation78_spill] sm:$0xff] %v7578_v28  ;;  %v1569_v53 = vadd.f32 %v1568_v22, %v7446_v17  ;;  %v1632_v33 = vmax.f32 %v1566_v60, 0.0 }
 0x1e7   : > { %v1635_v45 = vmax.f32 %v1577_v4, 0.0 }
 0x1e8   : > { %v1633_v20 = vmax.f32 %v1569_v53, 0.0 }
 0x1e9   : > { %v7585_v26 = vpack.c.bf16 %v1635_v45, %v1634_v43 }
 0x1ea   : > { %v7587_v30 = vpack.c.bf16 %v1633_v20, %v1632_v33  ;;  %v7589_v36 = vpop.f32.mrb[60].mxu1  ;;  %v6302_v35 = vpop.f32.mrb[72].mxu0 }
 0x1eb   : > { %9632 = vst [vmem:[#allocation79_spill] sm:$0xff] %v7585_v26  ;;  %9634 = vst [vmem:[#allocation81_spill] sm:$0xff] %v7589_v36  ;;  %v1590_v54 = vadd.f32 %v6302_v35, %v7446_v17  ;;  %v7592_v25 = vpop.f32.mrb[61].mxu1  ;;  %v1581_v48 = vpop.f32.mrb[73].mxu0 }
 0x1ec   : > { %9633 = vst [vmem:[#allocation80_spill] sm:$0xff] %v7587_v30  ;;  %9635 = vst [vmem:[#allocation82_spill] sm:$0xff] %v7592_v25  ;;  %v1582_v51 = vadd.f32 %v1581_v48, %v7446_v17  ;;  %v7595_v15 = vpop.f32.mrb[62].mxu1  ;;  %v6303_v46 = vpop.f32.mrb[74].mxu0  ;;  %6332 = vmatprep.mubr.msk.bf16.mxu0 %vm2242_vm4, %v7587_v30 }
 0x1ed   : > { %9636 = vst [vmem:[#allocation83_spill] sm:$0xff] %v7595_v15  ;;  %v1593_v4 = vadd.f32 %v6303_v46, %v7446_v17  ;;  %v7602_v22 = vpop.f32.mrb[63].mxu1  ;;  %v1584_v53 = vpop.f32.mrb[75].mxu0  ;;  %6333 = vmatmul.mubr.msk.bf16.gmra.mrb[100].mxu0 %vm2242_vm4, %v7585_v26  ;;  %v1638_v43 = vmax.f32 %v1590_v54, 0.0 }
 0x1ee   : > { %v1585_v35 = vadd.f32 %v1584_v53, %v7446_v17  ;;  %v1636_v33 = vmax.f32 %v1582_v51, 0.0 }
 0x1ef   : > { %v1639_v45 = vmax.f32 %v1593_v4, 0.0 }
 0x1f0   : > { %v1637_v20 = vmax.f32 %v1585_v35, 0.0 }
 0x1f1   : > { %v7609_v30 = vpack.c.bf16 %v1639_v45, %v1638_v43 }
 0x1f2   : > { %v7611_v60 = vpack.c.bf16 %v1637_v20, %v1636_v33  ;;  %v6306_v46 = vpop.f32.mrb[76].mxu0  ;;  %v7613_v36 = vpop.f32.mrb[64].mxu1 }
 0x1f3   : > { %9637 = vst [vmem:[#allocation84_spill] sm:$0xff] %v7609_v30  ;;  %9639 = vst [vmem:[#allocation86_spill] sm:$0xff] %v7613_v36  ;;  %v1606_v15 = vadd.f32 %v6306_v46, %v7446_v17  ;;  %v1597_v28 = vpop.f32.mrb[77].mxu0  ;;  %v7616_v26 = vpop.f32.mrb[65].mxu1 }
 0x1f4   : > { %9638 = vst [vmem:[#allocation85_spill] sm:$0xff] %v7611_v60  ;;  %v1598_v48 = vadd.f32 %v1597_v28, %v7446_v17  ;;  %v6307_v25 = vpop.f32.mrb[78].mxu0  ;;  %6336 = vmatprep.mubr.msk.bf16.mxu0 %vm2242_vm4, %v7611_v60  ;;  %v7621_v54 = vpop.f32.mrb[66].mxu1 }
 0x1f5   : > { %v1609_v51 = vadd.f32 %v6307_v25, %v7446_v17  ;;  %v1600_v4 = vpop.f32.mrb[79].mxu0  ;;  %6337 = vmatmul.mubr.msk.bf16.gmra.mrb[104].mxu0 %vm2242_vm4, %v7609_v30  ;;  %v7628_v35 = vpop.f32.mrb[67].mxu1  ;;  %v1642_v45 = vmax.f32 %v1606_v15, 0.0  ;;  %v6603_v25 = vld [vmem:[%s9384_s11 + $0x4] ss:$8 sps:$4 sm:$0xff]  }
 0x1f6   : > { %v1601_v43 = vadd.f32 %v1600_v4, %v7446_v17  ;;  %v1640_v20 = vmax.f32 %v1598_v48, 0.0  ;;  %v9644_v17 = vpack.c.bf16 %v7311_v23, %v7298_v32 }
 0x1f7   : > { %v1643_v33 = vmax.f32 %v1609_v51, 0.0  ;;  %v1690_v51 = vsub.s32 1, %v7410_v39 }
 0x1f8   : > { %v1641_v46 = vmax.f32 %v1601_v43, 0.0  ;;  %v7649_v15 = vmul.bf16 %v6603_v25, %v9644_v17 }
 0x1f9   : > { %v7636_v60 = vpack.c.bf16 %v1643_v33, %v1642_v45  ;;  %v522_v33 = vld [vmem:[%s9385_s12 + $0x8] sm:$0x3f] }
 0x1fa   : > { %v7638_v30 = vpack.c.bf16 %v1641_v46, %v1640_v20  ;;  %v7640_v53 = vpop.f32.mrb[68].mxu1  ;;  %9645 = vst [vmem:[#allocation91_spill] sm:$0xff] %v7649_v15 }
 0x1fb   : > { %9640 = vst [vmem:[#allocation87_spill] sm:$0xff] %v7636_v60  ;;  %9642 = vst [vmem:[#allocation89_spill] sm:$0xff] %v7640_v53  ;;  %v7642_v36 = vpop.f32.mrb[69].mxu1 }
 0x1fc   : > { %9641 = vst [vmem:[#allocation88_spill] sm:$0xff] %v7638_v30  ;;  %9643 = vst [vmem:[#allocation90_spill] sm:$0xff] %v7642_v36  ;;  %6340 = vmatprep.mubr.msk.bf16.mxu0 %vm2242_vm4, %v7638_v30  ;;  %v7651_v48 = vpop.f32.mrb[70].mxu1  ;;  %v7693_v30 = vrot.slane %v522_v33, %v1690_v51  ;;  %v9655_v33 = vpack.c.bf16 %v7108_v61, %v7103_v58 }
 0x1fd   : > { %9646 = vst [vmem:[#allocation92_spill] sm:$0xff] %v7651_v48  ;;  %6341 = vmatmul.mubr.msk.bf16.gmra.mrb[108].mxu0 %vm2242_vm4, %v7636_v60  ;;  %v7657_v4 = vpop.f32.mrb[71].mxu1  ;;  %v7691_v60 = vrot.slane %v7431_v62, %v1690_v51 }
 0x1fe   : > { %2500 = vmatprep.mubr.bf16.mxu0 %v7649_v15 }
 0x202   : > { %v7662_v45 = vpop.f32.mrb[72].mxu1 }
 0x203   : > { %9647 = vst [vmem:[#allocation93_spill] sm:$0xff] %v7662_v45  ;;  %v7664_v23 = vpop.f32.mrb[73].mxu1 }
 0x204   : > { %9648 = vst [vmem:[#allocation94_spill] sm:$0xff] %v7664_v23  ;;  %v7666_v32 = vpop.f32.mrb[74].mxu1 }
 0x205   : > { %9649 = vst [vmem:[#allocation95_spill] sm:$0xff] %v7666_v32  ;;  %v7670_v20 = vpop.f32.mrb[75].mxu1 }
 0x206   : > { %9650 = vst [vmem:[#allocation96_spill] sm:$0xff] %v7670_v20 }
 0x20a   : > { %v7674_v25 = vpop.f32.mrb[76].mxu1 }
 0x20b   : > { %9651 = vst [vmem:[#allocation97_spill] sm:$0xff] %v7674_v25  ;;  %v7676_v17 = vpop.f32.mrb[77].mxu1 }
 0x20c   : > { %9652 = vst [vmem:[#allocation98_spill] sm:$0xff] %v7676_v17  ;;  %v7679_v43 = vpop.f32.mrb[78].mxu1 }
 0x20d   : > { %9653 = vst [vmem:[#allocation99_spill] sm:$0xff] %v7679_v43  ;;  %v7683_v15 = vpop.f32.mrb[79].mxu1 }
 0x20e   : > { %9654 = vst [vmem:[#allocation100_spill] sm:$0xff] %v7683_v15 }
 0x212   : > { %v1919_v39 = vpop.f32.mrb[80].mxu1 }
 0x213   : > { %v1920_v45 = vadd.f32 %v1919_v39, %v7691_v60  ;;  %v1921_v32 = vpop.f32.mrb[81].mxu1 }
 0x214   : > { %v1922_v28 = vadd.f32 %v1921_v32, %v7693_v30  ;;  %v1923_v25 = vpop.f32.mrb[82].mxu1 }
 0x215   : > { %v2078_v43 = vmax.f32 %v1920_v45, 0.0  ;;  %v1924_v23 = vadd.f32 %v1923_v25, %v7691_v60  ;;  %v1925_v20 = vpop.f32.mrb[83].mxu1 }
 0x216   : > { %v2079_v53 = vmax.f32 %v1922_v28, 0.0  ;;  %v1926_v48 = vadd.f32 %v1925_v20, %v7693_v30  ;;  %v9657_v28 = vpack.c.bf16 %v7112_v63, %v7105_v59 }
 0x217   : > { %v2080_v46 = vmax.f32 %v1924_v23, 0.0 }
 0x218   : > { %v2081_v17 = vmax.f32 %v1926_v48, 0.0 }
 0x219   : > { %v2142_v62 = vpack.c.bf16 %v2080_v46, %v2078_v43 }
 0x21a   : > { %v2143_v15 = vpack.c.bf16 %v2081_v17, %v2079_v53  ;;  %v1929_v51 = vpop.f32.mrb[84].mxu1 }
 0x21b   : > { %v7702_v39 = vmul.bf16 %v2142_v62, %v9655_v33  ;;  %v1930_v32 = vadd.f32 %v1929_v51, %v7691_v60  ;;  %v1931_v36 = vpop.f32.mrb[85].mxu1 }
 0x21c   : > { %v1932_v45 = vadd.f32 %v1931_v36, %v7693_v30  ;;  %v1933_v25 = vpop.f32.mrb[86].mxu1  ;;  %v7709_v20 = vmul.bf16 %v2143_v15, %v9657_v28  ;;  %v9659_v15 = vpack.c.bf16 %v7123_v5, %v7118_v1 }
 0x21d   : > { %9656 = vst [vmem:[#allocation101_spill] sm:$0xff] %v7702_v39  ;;  %v2082_v48 = vmax.f32 %v1930_v32, 0.0  ;;  %v1934_v53 = vadd.f32 %v1933_v25, %v7691_v60  ;;  %v1935_v43 = vpop.f32.mrb[87].mxu1 }
 0x21e   : > { %9658 = vst [vmem:[#allocation102_spill] sm:$0xff] %v7709_v20  ;;  %v2083_v23 = vmax.f32 %v1932_v45, 0.0  ;;  %v1936_v58 = vadd.f32 %v1935_v43, %v7693_v30  ;;  %2789 = vmatprep.mubr.bf16.mxu1 %v7709_v20  ;;  %v9661_v45 = vpack.c.bf16 %v7127_v7, %v7120_v3 }
 0x21f   : > { %v2084_v61 = vmax.f32 %v1934_v53, 0.0  ;;  %2790 = vmatmul.mubr.bf16.vlgmr.msra.gmra.mrb[144].mxu1 %v7702_v39 }
 0x220   : > { %v2085_v46 = vmax.f32 %v1936_v58, 0.0 }
 0x221   : > { %v2144_v36 = vpack.c.bf16 %v2084_v61, %v2082_v48 }
 0x222   : > { %v2145_v17 = vpack.c.bf16 %v2085_v46, %v2083_v23  ;;  %v1939_v62 = vpop.f32.mrb[88].mxu1 }
 0x223   : > { %v1940_v59 = vadd.f32 %v1939_v62, %v7691_v60  ;;  %v1941_v63 = vpop.f32.mrb[89].mxu1  ;;  %v7719_v51 = vmul.bf16 %v2144_v36, %v9659_v15  ;;  %v9663_v36 = vpack.c.bf16 %v7138_v12, %v7133_v9 }
 0x224   : > { %v1942_v33 = vadd.f32 %v1941_v63, %v7693_v30  ;;  %v1943_v32 = vpop.f32.mrb[90].mxu1  ;;  %v7725_v25 = vmul.bf16 %v2145_v17, %v9661_v45  ;;  %v9665_v63 = vpack.c.bf16 %v7142_v14, %v7135_v10 }
 0x225   : > { %9660 = vst [vmem:[#allocation103_spill] sm:$0xff] %v7719_v51  ;;  %v2086_v28 = vmax.f32 %v1940_v59, 0.0  ;;  %v1944_v48 = vadd.f32 %v1943_v32, %v7691_v60  ;;  %v1945_v53 = vpop.f32.mrb[91].mxu1 }
 0x226   : > { %9662 = vst [vmem:[#allocation104_spill] sm:$0xff] %v7725_v25  ;;  %v2087_v43 = vmax.f32 %v1942_v33, 0.0  ;;  %v1946_v23 = vadd.f32 %v1945_v53, %v7693_v30  ;;  %2797 = vmatprep.mubr.bf16.mxu1 %v7725_v25 }
 0x227   : > { %v2088_v1 = vmax.f32 %v1944_v48, 0.0  ;;  %2798 = vmatmul.mubr.bf16.gmra.mrb[148].mxu1 %v7719_v51 }
 0x228   : > { %v2089_v5 = vmax.f32 %v1946_v23, 0.0 }
 0x229   : > { %v2146_v58 = vpack.c.bf16 %v2088_v1, %v2086_v28  ;;  %v9667_v1 = vpack.c.bf16 %v7157_v21, %v7148_v16 }
 0x22a   : > { %v2147_v61 = vpack.c.bf16 %v2089_v5, %v2087_v43  ;;  %v1949_v46 = vpop.f32.mrb[92].mxu1 }
 0x22b   : > { %v1950_v3 = vadd.f32 %v1949_v46, %v7691_v60  ;;  %v1951_v7 = vpop.f32.mrb[93].mxu1  ;;  %v7735_v17 = vmul.bf16 %v2146_v58, %v9663_v36  ;;  %v9669_v46 = vpack.c.bf16 %v7163_v24, %v7152_v18 }
 0x22c   : > { %v1952_v62 = vadd.f32 %v1951_v7, %v7693_v30  ;;  %v1953_v59 = vpop.f32.mrb[94].mxu1  ;;  %v7741_v15 = vmul.bf16 %v2147_v61, %v9665_v63 }
 0x22d   : > { %9664 = vst [vmem:[#allocation105_spill] sm:$0xff] %v7735_v17  ;;  %v2090_v33 = vmax.f32 %v1950_v3, 0.0  ;;  %v1954_v32 = vadd.f32 %v1953_v59, %v7691_v60  ;;  %v1955_v45 = vpop.f32.mrb[95].mxu1 }
 0x22e   : > { %9666 = vst [vmem:[#allocation106_spill] sm:$0xff] %v7741_v15  ;;  %v2091_v28 = vmax.f32 %v1952_v62, 0.0  ;;  %v1956_v48 = vadd.f32 %v1955_v45, %v7693_v30  ;;  %2805 = vmatprep.mubr.bf16.mxu1 %v7741_v15 }
 0x22f   : > { %v2092_v9 = vmax.f32 %v1954_v32, 0.0  ;;  %2806 = vmatmul.mubr.bf16.gmra.mrb[152].mxu1 %v7735_v17 }
 0x230   : > { %v2093_v12 = vmax.f32 %v1956_v48, 0.0 }
 0x231   : > { %v2148_v53 = vpack.c.bf16 %v2092_v9, %v2090_v33 }
 0x232   : > { %v2149_v43 = vpack.c.bf16 %v2093_v12, %v2091_v28  ;;  %v1959_v23 = vpop.f32.mrb[96].mxu1  ;;  %v9671_v28 = vpack.c.bf16 %v7184_v34, %v7175_v29 }
 0x233   : > { %v1960_v10 = vadd.f32 %v1959_v23, %v7691_v60  ;;  %v1961_v14 = vpop.f32.mrb[97].mxu1  ;;  %v7751_v5 = vmul.bf16 %v2148_v53, %v9667_v1  ;;  %v9673_v53 = vpack.c.bf16 %v7190_v37, %v7179_v31 }
 0x234   : > { %v1962_v58 = vadd.f32 %v1961_v14, %v7693_v30  ;;  %v1963_v61 = vpop.f32.mrb[98].mxu1  ;;  %v7757_v3 = vmul.bf16 %v2149_v43, %v9669_v46 }
 0x235   : > { %9668 = vst [vmem:[#allocation107_spill] sm:$0xff] %v7751_v5  ;;  %v2094_v7 = vmax.f32 %v1960_v10, 0.0  ;;  %v1964_v36 = vadd.f32 %v1963_v61, %v7691_v60  ;;  %v1965_v62 = vpop.f32.mrb[99].mxu1 }
 0x236   : > { %9670 = vst [vmem:[#allocation108_spill] sm:$0xff] %v7757_v3  ;;  %v2095_v59 = vmax.f32 %v1962_v58, 0.0  ;;  %v1966_v63 = vadd.f32 %v1965_v62, %v7693_v30  ;;  %2813 = vmatprep.mubr.bf16.mxu1 %v7757_v3 }
 0x237   : > { %v2096_v16 = vmax.f32 %v1964_v36, 0.0  ;;  %2814 = vmatmul.mubr.bf16.gmra.mrb[156].mxu1 %v7751_v5  ;;  %v9675_v36 = vpack.c.bf16 %v7226_v52, %v7217_v47 }
 0x238   : > { %v2097_v21 = vmax.f32 %v1966_v63, 0.0 }
 0x239   : > { %v2150_v33 = vpack.c.bf16 %v2096_v16, %v2094_v7  ;;  %v9677_v16 = vpack.c.bf16 %v7235_v56, %v7221_v49 }
 0x23a   : > { %v2151_v32 = vpack.c.bf16 %v2097_v21, %v2095_v59  ;;  %v1969_v45 = vpop.f32.mrb[100].mxu1 }
 0x23b   : > { %v1970_v18 = vadd.f32 %v1969_v45, %v7691_v60  ;;  %v1971_v24 = vpop.f32.mrb[101].mxu1  ;;  %v7767_v48 = vmul.bf16 %v2150_v33, %v9671_v28 }
 0x23c   : > { %v1972_v9 = vadd.f32 %v1971_v24, %v7693_v30  ;;  %v1973_v12 = vpop.f32.mrb[102].mxu1  ;;  %v7773_v43 = vmul.bf16 %v2151_v32, %v9673_v53  ;;  %v9679_v53 = vpack.c.bf16 %v7265_v19, %v7253_v40 }
 0x23d   : > { %9672 = vst [vmem:[#allocation109_spill] sm:$0xff] %v7767_v48  ;;  %v2098_v23 = vmax.f32 %v1970_v18, 0.0  ;;  %v1974_v10 = vadd.f32 %v1973_v12, %v7691_v60  ;;  %v1975_v14 = vpop.f32.mrb[103].mxu1 }
 0x23e   : > { %9674 = vst [vmem:[#allocation110_spill] sm:$0xff] %v7773_v43  ;;  %v2099_v1 = vmax.f32 %v1972_v9, 0.0  ;;  %v1976_v58 = vadd.f32 %v1975_v14, %v7693_v30  ;;  %2821 = vmatprep.mubr.bf16.mxu1 %v7773_v43 }
 0x23f   : > { %v2100_v29 = vmax.f32 %v1974_v10, 0.0  ;;  %2822 = vmatmul.mubr.bf16.gmra.mrb[160].mxu1 %v7767_v48 }
 0x240   : > { %v2101_v34 = vmax.f32 %v1976_v58, 0.0 }
 0x241   : > { %v2152_v61 = vpack.c.bf16 %v2100_v29, %v2098_v23 }
 0x242   : > { %v2153_v46 = vpack.c.bf16 %v2101_v34, %v2099_v1  ;;  %v1979_v7 = vpop.f32.mrb[104].mxu1  ;;  %v9681_v1 = vpack.c.bf16 %v7271_v57, %v7257_v44 }
 0x243   : > { %v1980_v31 = vadd.f32 %v1979_v7, %v7691_v60  ;;  %v1981_v37 = vpop.f32.mrb[105].mxu1  ;;  %v7783_v62 = vmul.bf16 %v2152_v61, %v9675_v36 }
 0x244   : > { %v1982_v59 = vadd.f32 %v1981_v37, %v7693_v30  ;;  %v1983_v63 = vpop.f32.mrb[106].mxu1  ;;  %v7789_v21 = vmul.bf16 %v2153_v46, %v9677_v16 }
 0x245   : > { %9676 = vst [vmem:[#allocation111_spill] sm:$0xff] %v7783_v62  ;;  %v2102_v33 = vmax.f32 %v1980_v31, 0.0  ;;  %v1984_v32 = vadd.f32 %v1983_v63, %v7691_v60  ;;  %v1985_v45 = vpop.f32.mrb[107].mxu1 }
 0x246   : > { %9678 = vst [vmem:[#allocation112_spill] sm:$0xff] %v7789_v21  ;;  %v2103_v18 = vmax.f32 %v1982_v59, 0.0  ;;  %v1986_v24 = vadd.f32 %v1985_v45, %v7693_v30  ;;  %2829 = vmatprep.mubr.bf16.mxu1 %v7789_v21  ;;  %v9683_v59 = vpack.c.bf16 %v7301_v55, %v7289_v50 }
 0x247   : > { %v2104_v47 = vmax.f32 %v1984_v32, 0.0  ;;  %2830 = vmatmul.mubr.bf16.gmra.mrb[164].mxu1 %v7783_v62  ;;  %v9685_v32 = vpack.c.bf16 %v7309_v27, %v7296_v11 }
 0x248   : > { %v2105_v52 = vmax.f32 %v1986_v24, 0.0 }
 0x249   : > { %v2154_v28 = vpack.c.bf16 %v2104_v47, %v2102_v33 }
 0x24a   : > { %v2155_v9 = vpack.c.bf16 %v2105_v52, %v2103_v18  ;;  %v1989_v12 = vpop.f32.mrb[108].mxu1 }
 0x24b   : > { %v1990_v49 = vadd.f32 %v1989_v12, %v7691_v60  ;;  %v1991_v56 = vpop.f32.mrb[109].mxu1  ;;  %v7799_v23 = vmul.bf16 %v2154_v28, %v9679_v53 }
 0x24c   : > { %v1992_v10 = vadd.f32 %v1991_v56, %v7693_v30  ;;  %v1993_v14 = vpop.f32.mrb[110].mxu1  ;;  %v7805_v58 = vmul.bf16 %v2155_v9, %v9681_v1  ;;  %v9687_v56 = vpack.c.bf16 %v7340_v41, %v7328_v13  ;;  %v9689_v1 = vpack.c.bf16 %v7348_v2, %v7335_v6 }
 0x24d   : > { %9680 = vst [vmem:[#allocation113_spill] sm:$0xff] %v7799_v23  ;;  %v2106_v29 = vmax.f32 %v1990_v49, 0.0  ;;  %v1994_v34 = vadd.f32 %v1993_v14, %v7691_v60  ;;  %v1995_v61 = vpop.f32.mrb[111].mxu1 }
 0x24e   : > { %9682 = vst [vmem:[#allocation114_spill] sm:$0xff] %v7805_v58  ;;  %v2107_v46 = vmax.f32 %v1992_v10, 0.0  ;;  %v1996_v7 = vadd.f32 %v1995_v61, %v7693_v30  ;;  %2837 = vmatprep.mubr.bf16.mxu1 %v7805_v58 }
 0x24f   : > { %v2108_v19 = vmax.f32 %v1994_v34, 0.0  ;;  %2838 = vmatmul.mubr.bf16.gmra.mrb[168].mxu1 %v7799_v23 }
 0x250   : > { %v2109_v40 = vmax.f32 %v1996_v7, 0.0 }
 0x251   : > { %v2156_v31 = vpack.c.bf16 %v2108_v19, %v2106_v29 }
 0x252   : > { %v2157_v37 = vpack.c.bf16 %v2109_v40, %v2107_v46  ;;  %v1999_v36 = vpop.f32.mrb[112].mxu1 }
 0x253   : > { %v2000_v57 = vadd.f32 %v1999_v36, %v7691_v60  ;;  %v2001_v44 = vpop.f32.mrb[113].mxu1  ;;  %v7815_v63 = vmul.bf16 %v2156_v31, %v9683_v59  ;;  %v9691_v36 = vpack.c.bf16 %v7367_v42, %v7358_v8 }
 0x254   : > { %v2002_v16 = vadd.f32 %v2001_v44, %v7693_v30  ;;  %v2003_v33 = vpop.f32.mrb[114].mxu1  ;;  %v7821_v45 = vmul.bf16 %v2157_v37, %v9685_v32 }
 0x255   : > { %9684 = vst [vmem:[#allocation115_spill] sm:$0xff] %v7815_v63  ;;  %v2110_v18 = vmax.f32 %v2000_v57, 0.0  ;;  %v2004_v24 = vadd.f32 %v2003_v33, %v7691_v60  ;;  %v2005_v47 = vpop.f32.mrb[115].mxu1 }
 0x256   : > { %9686 = vst [vmem:[#allocation116_spill] sm:$0xff] %v7821_v45  ;;  %v2111_v52 = vmax.f32 %v2002_v16, 0.0  ;;  %v2006_v28 = vadd.f32 %v2005_v47, %v7693_v30  ;;  %2845 = vmatprep.mubr.bf16.mxu1 %v7821_v45  ;;  %v9693_v16 = vpack.c.bf16 %v7375_v0, %v7362_v38 }
 0x257   : > { %v2112_v55 = vmax.f32 %v2004_v24, 0.0  ;;  %2846 = vmatmul.mubr.bf16.gmra.mrb[172].mxu1 %v7815_v63 }
 0x258   : > { %v2113_v50 = vmax.f32 %v2006_v28, 0.0 }
 0x259   : > { %v2158_v9 = vpack.c.bf16 %v2112_v55, %v2110_v18 }
 0x25a   : > { %v2159_v12 = vpack.c.bf16 %v2113_v50, %v2111_v52  ;;  %v2009_v49 = vpop.f32.mrb[116].mxu1 }
 0x25b   : > { %v2010_v27 = vadd.f32 %v2009_v49, %v7691_v60  ;;  %v2011_v11 = vpop.f32.mrb[117].mxu1  ;;  %v7831_v53 = vmul.bf16 %v2158_v9, %v9687_v56  ;;  %v9695_v9 = vld [vmem:[#allocation32_spill] sm:$0xff] }
 0x25c   : > { %v2012_v10 = vadd.f32 %v2011_v11, %v7693_v30  ;;  %v2013_v14 = vpop.f32.mrb[118].mxu1  ;;  %v7837_v29 = vmul.bf16 %v2159_v12, %v9689_v1  ;;  %v9696_v12 = vld [vmem:[#allocation28_spill] sm:$0xff] }
 0x25d   : > { %9688 = vst [vmem:[#allocation117_spill] sm:$0xff] %v7831_v53  ;;  %v2114_v34 = vmax.f32 %v2010_v27, 0.0  ;;  %v2014_v61 = vadd.f32 %v2013_v14, %v7691_v60  ;;  %v2015_v46 = vpop.f32.mrb[119].mxu1  ;;  %v9697_v49 = vpack.c.bf16 %v9695_v9, %v9696_v12  ;;  %v9700_v14 = vld [vmem:[#allocation30_spill] sm:$0xff] }
 0x25e   : > { %9690 = vst [vmem:[#allocation118_spill] sm:$0xff] %v7837_v29  ;;  %v2115_v7 = vmax.f32 %v2012_v10, 0.0  ;;  %v2016_v19 = vadd.f32 %v2015_v46, %v7693_v30  ;;  %2853 = vmatprep.mubr.bf16.mxu1 %v7837_v29  ;;  %v9699_v10 = vld [vmem:[#allocation34_spill] sm:$0xff] }
 0x25f   : > { %v2116_v13 = vmax.f32 %v2014_v61, 0.0  ;;  %2854 = vmatmul.mubr.bf16.gmra.mrb[176].mxu1 %v7831_v53  ;;  %v9701_v1 = vpack.c.bf16 %v9699_v10, %v9700_v14 }
 0x260   : > { %v2117_v41 = vmax.f32 %v2016_v19, 0.0 }
 0x261   : > { %v2160_v40 = vpack.c.bf16 %v2116_v13, %v2114_v34 }
 0x262   : > { %v2161_v31 = vpack.c.bf16 %v2117_v41, %v2115_v7  ;;  %v2019_v37 = vpop.f32.mrb[120].mxu1 }
 0x263   : > { %v2020_v2 = vadd.f32 %v2019_v37, %v7691_v60  ;;  %v2021_v6 = vpop.f32.mrb[121].mxu1  ;;  %v7847_v57 = vmul.bf16 %v2160_v40, %v9691_v36  ;;  %v9704_v36 = vld [vmem:[#allocation37_spill] sm:$0xff] }
 0x264   : > { %v2022_v44 = vadd.f32 %v2021_v6, %v7693_v30  ;;  %v2023_v59 = vpop.f32.mrb[122].mxu1  ;;  %v7853_v33 = vmul.bf16 %v2161_v31, %v9693_v16  ;;  %v9703_v6 = vld [vmem:[#allocation41_spill] sm:$0xff] }
 0x265   : > { %9692 = vst [vmem:[#allocation119_spill] sm:$0xff] %v7847_v57  ;;  %v2118_v32 = vmax.f32 %v2020_v2, 0.0  ;;  %v2024_v18 = vadd.f32 %v2023_v59, %v7691_v60  ;;  %v2025_v24 = vpop.f32.mrb[123].mxu1 }
 0x266   : > { %9694 = vst [vmem:[#allocation120_spill] sm:$0xff] %v7853_v33  ;;  %v2119_v47 = vmax.f32 %v2022_v44, 0.0  ;;  %v2026_v52 = vadd.f32 %v2025_v24, %v7693_v30  ;;  %2861 = vmatprep.mubr.bf16.mxu1 %v7853_v33  ;;  %v9705_v44 = vpack.c.bf16 %v9703_v6, %v9704_v36  ;;  %v9708_v24 = vld [vmem:[#allocation39_spill] sm:$0xff] }
 0x267   : > { %v2120_v42 = vmax.f32 %v2024_v18, 0.0  ;;  %2862 = vmatmul.mubr.bf16.gmra.mrb[180].mxu1 %v7847_v57  ;;  %v9707_v18 = vld [vmem:[#allocation43_spill] sm:$0xff] }
 0x268   : > { %v2121_v8 = vmax.f32 %v2026_v52, 0.0 }
 0x269   : > { %v2162_v28 = vpack.c.bf16 %v2120_v42, %v2118_v32 }
 0x26a   : > { %v2163_v55 = vpack.c.bf16 %v2121_v8, %v2119_v47  ;;  %v2029_v50 = vpop.f32.mrb[124].mxu1  ;;  %v9709_v47 = vpack.c.bf16 %v9707_v18, %v9708_v24 }
 0x26b   : > { %v2030_v0 = vadd.f32 %v2029_v50, %v7691_v60  ;;  %v2031_v38 = vpop.f32.mrb[125].mxu1  ;;  %v7863_v27 = vmul.bf16 %v2162_v28, %v9697_v49 }
 0x26c   : > { %v2032_v11 = vadd.f32 %v2031_v38, %v7693_v30  ;;  %v2033_v56 = vpop.f32.mrb[126].mxu1  ;;  %v7869_v34 = vmul.bf16 %v2163_v55, %v9701_v1  ;;  %v9711_v1 = vld [vmem:[#allocation4_spill] sm:$0xff] }
 0x26d   : > { %9698 = vst [vmem:[#allocation32_spill] sm:$0xff] %v7863_v27  ;;  %v2122_v61 = vmax.f32 %v2030_v0, 0.0  ;;  %v2034_v46 = vadd.f32 %v2033_v56, %v7691_v60  ;;  %v2035_v7 = vpop.f32.mrb[127].mxu1 }
 0x26e   : > { %9702 = vst [vmem:[#allocation28_spill] sm:$0xff] %v7869_v34  ;;  %v2123_v19 = vmax.f32 %v2032_v11, 0.0  ;;  %v2036_v13 = vadd.f32 %v2035_v7, %v7693_v30  ;;  %2869 = vmatprep.mubr.bf16.mxu1 %v7869_v34 }
 0x26f   : > { %v2124_v41 = vmax.f32 %v2034_v46, 0.0  ;;  %2870 = vmatmul.mubr.bf16.gmra.mrb[184].mxu1 %v7863_v27 }
 0x270   : > { %v2125_v40 = vmax.f32 %v2036_v13, 0.0 }
 0x271   : > { %v2164_v31 = vpack.c.bf16 %v2124_v41, %v2122_v61  ;;  %v9712_v61 = vld [vmem:[#allocation2_spill] sm:$0xff]  ;;  %v9715_v41 = vld [vmem:[#allocation5_spill] sm:$0xff] }
 0x272   : > { %v2165_v37 = vpack.c.bf16 %v2125_v40, %v2123_v19  ;;  %v2039_v2 = vpop.f32.mrb[128].mxu1  ;;  %v9713_v46 = vpack.c.bf16 %v9711_v1, %v9712_v61  ;;  %v9716_v40 = vld [vmem:[#allocation3_spill] sm:$0xff] }
 0x273   : > { %v7878_v59 = vmul.bf16 %v2164_v31, %v9705_v44  ;;  %v2040_v16 = vadd.f32 %v2039_v2, %v7691_v60  ;;  %v2041_v32 = vpop.f32.mrb[129].mxu1  ;;  %v9717_v31 = vpack.c.bf16 %v9715_v41, %v9716_v40 }
 0x274   : > { %v7884_v52 = vmul.bf16 %v2165_v37, %v9709_v47  ;;  %v2042_v42 = vadd.f32 %v2041_v32, %v7693_v30  ;;  %v2043_v8 = vpop.f32.mrb[130].mxu1 }
 0x275   : > { %9706 = vst [vmem:[#allocation34_spill] sm:$0xff] %v7878_v59  ;;  %v2126_v28 = vmax.f32 %v2040_v16, 0.0  ;;  %v2044_v55 = vadd.f32 %v2043_v8, %v7691_v60  ;;  %v2045_v50 = vpop.f32.mrb[131].mxu1 }
 0x276   : > { %9710 = vst [vmem:[#allocation30_spill] sm:$0xff] %v7884_v52  ;;  %2877 = vmatprep.mubr.bf16.mxu1 %v7884_v52  ;;  %v2127_v0 = vmax.f32 %v2042_v42, 0.0  ;;  %v2046_v38 = vadd.f32 %v2045_v50, %v7693_v30  ;;  %v9720_v50 = vld [vmem:[#allocation6_spill] sm:$0xff]  ;;  %v9875_v52 = vld [vmem:[#allocation61_spill] sm:$0xff] }
 0x277   : > { %2878 = vmatmul.mubr.bf16.gmra.mrb[188].mxu1 %v7878_v59  ;;  %v2128_v9 = vmax.f32 %v2044_v55, 0.0  ;;  %v9719_v55 = vld [vmem:[#allocation8_spill] sm:$0xff] }
 0x278   : > { %v2129_v12 = vmax.f32 %v2046_v38, 0.0 }
 0x279   : > { %v2166_v49 = vpack.c.bf16 %v2128_v9, %v2126_v28 }
 0x27a   : > { %v2167_v11 = vpack.c.bf16 %v2129_v12, %v2127_v0  ;;  %v2049_v56 = vpop.f32.mrb[132].mxu1  ;;  %v9721_v0 = vpack.c.bf16 %v9719_v55, %v9720_v50 }
 0x27b   : > { %v2050_v10 = vadd.f32 %v2049_v56, %v7691_v60  ;;  %v2051_v14 = vpop.f32.mrb[133].mxu1  ;;  %v7895_v7 = vmul.bf16 %v2166_v49, %v9713_v46  ;;  %v9723_v49 = vld [vmem:[#allocation9_spill] sm:$0xff] }
 0x27c   : > { %v2052_v19 = vadd.f32 %v2051_v14, %v7693_v30  ;;  %v2053_v13 = vpop.f32.mrb[134].mxu1  ;;  %v7901_v37 = vmul.bf16 %v2167_v11, %v9717_v31  ;;  %v9724_v11 = vld [vmem:[#allocation7_spill] sm:$0xff] }
 0x27d   : > { %9714 = vst [vmem:[#allocation41_spill] sm:$0xff] %v7895_v7  ;;  %v2130_v2 = vmax.f32 %v2050_v10, 0.0  ;;  %v2054_v6 = vadd.f32 %v2053_v13, %v7691_v60  ;;  %v2055_v36 = vpop.f32.mrb[135].mxu1  ;;  %v9725_v56 = vpack.c.bf16 %v9723_v49, %v9724_v11 }
 0x27e   : > { %9718 = vst [vmem:[#allocation37_spill] sm:$0xff] %v7901_v37  ;;  %v2131_v44 = vmax.f32 %v2052_v19, 0.0  ;;  %v2056_v16 = vadd.f32 %v2055_v36, %v7693_v30  ;;  %2885 = vmatprep.mubr.bf16.mxu1 %v7901_v37 }
 0x27f   : > { %v2132_v32 = vmax.f32 %v2054_v6, 0.0  ;;  %2886 = vmatmul.mubr.bf16.gmra.mrb[192].mxu1 %v7895_v7 }
 0x280   : > { %v2133_v18 = vmax.f32 %v2056_v16, 0.0  ;;  %v9728_v16 = vld [vmem:[#allocation10_spill] sm:$0xff] }
 0x281   : > { %v2168_v24 = vpack.c.bf16 %v2132_v32, %v2130_v2 }
 0x282   : > { %v2169_v47 = vpack.c.bf16 %v2133_v18, %v2131_v44  ;;  %v2059_v42 = vpop.f32.mrb[136].mxu1  ;;  %v9727_v44 = vld [vmem:[#allocation12_spill] sm:$0xff] }
 0x283   : > { %v2060_v8 = vadd.f32 %v2059_v42, %v7691_v60  ;;  %v2061_v28 = vpop.f32.mrb[137].mxu1  ;;  %v7911_v38 = vmul.bf16 %v2168_v24, %v9721_v0  ;;  %v9729_v32 = vpack.c.bf16 %v9727_v44, %v9728_v16  ;;  %v9731_v42 = vld [vmem:[#allocation13_spill] sm:$0xff] }
 0x284   : > { %v2062_v9 = vadd.f32 %v2061_v28, %v7693_v30  ;;  %v2063_v12 = vpop.f32.mrb[138].mxu1  ;;  %v7917_v10 = vmul.bf16 %v2169_v47, %v9725_v56 }
 0x285   : > { %9722 = vst [vmem:[#allocation43_spill] sm:$0xff] %v7911_v38  ;;  %v2134_v14 = vmax.f32 %v2060_v8, 0.0  ;;  %v2064_v1 = vadd.f32 %v2063_v12, %v7691_v60  ;;  %v2065_v61 = vpop.f32.mrb[139].mxu1  ;;  %v9732_v8 = vld [vmem:[#allocation11_spill] sm:$0xff] }
 0x286   : > { %9726 = vst [vmem:[#allocation39_spill] sm:$0xff] %v7917_v10  ;;  %v2135_v46 = vmax.f32 %v2062_v9, 0.0  ;;  %v2066_v19 = vadd.f32 %v2065_v61, %v7693_v30  ;;  %2893 = vmatprep.mubr.bf16.mxu1 %v7917_v10  ;;  %v9733_v28 = vpack.c.bf16 %v9731_v42, %v9732_v8  ;;  %v9735_v61 = vld [vmem:[#allocation16_spill] sm:$0xff] }
 0x287   : > { %v2136_v13 = vmax.f32 %v2064_v1, 0.0  ;;  %2894 = vmatmul.mubr.bf16.gmra.mrb[196].mxu1 %v7911_v38 }
 0x288   : > { %v2137_v41 = vmax.f32 %v2066_v19, 0.0 }
 0x289   : > { %v2170_v40 = vpack.c.bf16 %v2136_v13, %v2134_v14 }
 0x28a   : > { %v2171_v31 = vpack.c.bf16 %v2137_v41, %v2135_v46  ;;  %v2069_v2 = vpop.f32.mrb[140].mxu1  ;;  %v9736_v46 = vld [vmem:[#allocation14_spill] sm:$0xff]  ;;  %v9739_v41 = vld [vmem:[#allocation17_spill] sm:$0xff] }
 0x28b   : > { %v2070_v6 = vadd.f32 %v2069_v2, %v7691_v60  ;;  %v2071_v36 = vpop.f32.mrb[141].mxu1  ;;  %v7927_v18 = vmul.bf16 %v2170_v40, %v9729_v32  ;;  %v9737_v19 = vpack.c.bf16 %v9735_v61, %v9736_v46  ;;  %v9740_v40 = vld [vmem:[#allocation15_spill] sm:$0xff] }
 0x28c   : > { %v2072_v24 = vadd.f32 %v2071_v36, %v7693_v30  ;;  %v2073_v47 = vpop.f32.mrb[142].mxu1  ;;  %v7933_v55 = vmul.bf16 %v2171_v31, %v9733_v28 }
 0x28d   : > { %9730 = vst [vmem:[#allocation4_spill] sm:$0xff] %v7927_v18  ;;  %v2138_v50 = vmax.f32 %v2070_v6, 0.0  ;;  %v2074_v0 = vadd.f32 %v2073_v47, %v7691_v60  ;;  %v2075_v9 = vpop.f32.mrb[143].mxu1  ;;  %v9741_v60 = vpack.c.bf16 %v9739_v41, %v9740_v40 }
 0x28e   : > { %9734 = vst [vmem:[#allocation2_spill] sm:$0xff] %v7933_v55  ;;  %v2139_v12 = vmax.f32 %v2072_v24, 0.0  ;;  %v2076_v49 = vadd.f32 %v2075_v9, %v7693_v30  ;;  %2901 = vmatprep.mubr.bf16.mxu1 %v7933_v55 }
 0x28f   : > { %v2140_v11 = vmax.f32 %v2074_v0, 0.0  ;;  %2902 = vmatmul.mubr.bf16.gmra.mrb[200].mxu1 %v7927_v18 }
 0x290   : > { %v2141_v56 = vmax.f32 %v2076_v49, 0.0 }
 0x291   : > { %v2172_v14 = vpack.c.bf16 %v2140_v11, %v2138_v50 }
 0x292   : > { %v2173_v1 = vpack.c.bf16 %v2141_v56, %v2139_v12 }
 0x293   : > { %v7942_v13 = vmul.bf16 %v2172_v14, %v9737_v19 }
 0x294   : > { %v7947_v31 = vmul.bf16 %v2173_v1, %v9741_v60 }
 0x295   : > { %9738 = vst [vmem:[#allocation5_spill] sm:$0xff] %v7942_v13 }
 0x296   : > { %9742 = vst [vmem:[#allocation3_spill] sm:$0xff] %v7947_v31  ;;  %2909 = vmatprep.mubr.bf16.mxu1 %v7947_v31 }
 0x297   : > { %2910 = vmatmul.mubr.bf16.gmra.mrb[204].mxu1 %v7942_v13 }
 0x298   : > { %v6314_v30 = vpop.f32.mrb[80].mxu0 }
 0x299   : > { %v2325_v2 = vpop.f32.mrb[81].mxu0 }
 0x29a   : > { %v6315_v6 = vpop.f32.mrb[82].mxu0 }
 0x29b   : > { %v2453_v36 = vpack.c.bf16 %v6315_v6, %v6314_v30  ;;  %v2328_v44 = vpop.f32.mrb[83].mxu0 }
 0x29c   : > { %v2452_v16 = vpack.c.bf16 %v2328_v44, %v2325_v2 }
 0x2a0   : > { %v6318_v32 = vpop.f32.mrb[84].mxu0 }
 0x2a1   : > { %v2341_v24 = vpop.f32.mrb[85].mxu0 }
 0x2a2   : > { %v6319_v47 = vpop.f32.mrb[86].mxu0 }
 0x2a3   : > { %v2455_v42 = vpack.c.bf16 %v6319_v47, %v6318_v32  ;;  %v2344_v8 = vpop.f32.mrb[87].mxu0 }
 0x2a4   : > { %v2454_v28 = vpack.c.bf16 %v2344_v8, %v2341_v24 }
 0x2a8   : > { %v6322_v50 = vpop.f32.mrb[88].mxu0 }
 0x2a9   : > { %v2357_v0 = vpop.f32.mrb[89].mxu0 }
 0x2aa   : > { %v6323_v9 = vpop.f32.mrb[90].mxu0 }
 0x2ab   : > { %v2457_v12 = vpack.c.bf16 %v6323_v9, %v6322_v50  ;;  %v2360_v49 = vpop.f32.mrb[91].mxu0 }
 0x2ac   : > { %v2456_v11 = vpack.c.bf16 %v2360_v49, %v2357_v0 }
 0x2b0   : > { %v6326_v56 = vpop.f32.mrb[92].mxu0 }
 0x2b1   : > { %v2373_v14 = vpop.f32.mrb[93].mxu0 }
 0x2b2   : > { %v6327_v1 = vpop.f32.mrb[94].mxu0 }
 0x2b3   : > { %v2459_v61 = vpack.c.bf16 %v6327_v1, %v6326_v56  ;;  %v2376_v46 = vpop.f32.mrb[95].mxu0 }
 0x2b4   : > { %v2458_v19 = vpack.c.bf16 %v2376_v46, %v2373_v14 }
 0x2b8   : > { %v6330_v41 = vpop.f32.mrb[96].mxu0 }
 0x2b9   : > { %v2389_v40 = vpop.f32.mrb[97].mxu0 }
 0x2ba   : > { %v6331_v60 = vpop.f32.mrb[98].mxu0 }
 0x2bb   : > { %v2461_v30 = vpack.c.bf16 %v6331_v60, %v6330_v41  ;;  %v2392_v2 = vpop.f32.mrb[99].mxu0 }
 0x2bc   : > { %v2460_v6 = vpack.c.bf16 %v2392_v2, %v2389_v40  ;;  %v9744_v2 = vld [vmem:[#allocation18_spill] sm:$0xff] }
 0x2be   : > { %5734 = vmatprep.subr.bf16.mxu0 %v2460_v6 }
 0x2bf   : > { %5735 = vmatpush3.bf16.msra.mxu0 %v2452_v16 }
 0x2c0   : > { %v6334_v44 = vpop.f32.mrb[100].mxu0  ;;  %5736 = vmatprep.subr.bf16.mxu0 %v2461_v30  ;;  %v9743_v30 = vld [vmem:[#allocation19_spill] sm:$0xff] }
 0x2c1   : > { %v2405_v32 = vpop.f32.mrb[101].mxu0 }
 0x2c2   : > { %v6335_v24 = vpop.f32.mrb[102].mxu0 }
 0x2c3   : > { %v2463_v47 = vpack.c.bf16 %v6335_v24, %v6334_v44  ;;  %v2408_v8 = vpop.f32.mrb[103].mxu0  ;;  %5737 = vmatpush3.bf16.msra.mxu0 %v2453_v36  ;;  %v9747_v44 = vld [vmem:[#allocation23_spill] sm:$0xff] }
 0x2c4   : > { %v2462_v50 = vpack.c.bf16 %v2408_v8, %v2405_v32  ;;  %v9748_v32 = vld [vmem:[#allocation21_spill] sm:$0xff]  ;;  %v6623_v8 = vld [vmem:[%s9384_s11 + $0x24] ss:$8 sps:$4 sm:$0xff]  }
 0x2c5   : > { %v9749_v24 = vpack.c.bf16 %v9747_v44, %v9748_v32 }
 0x2c6   : > { %5738 = vmatprep.subr.bf16.mxu0 %v2462_v50  ;;  %v9751_v50 = vld [vmem:[#allocation22_spill] sm:$0xff] }
 0x2c7   : > { %5739 = vmatpush3.bf16.msra.mxu0 %v2454_v28  ;;  %v6594_v28 = vld [vmem:[%s9384_s11] ss:$8 sps:$4 sm:$0xff]  }
 0x2c8   : > { %v6338_v0 = vpop.f32.mrb[104].mxu0  ;;  %5740 = vmatprep.subr.bf16.mxu0 %v2463_v47 }
 0x2c9   : > { %v2421_v9 = vpop.f32.mrb[105].mxu0 }
 0x2ca   : > { %v6339_v49 = vpop.f32.mrb[106].mxu0 }
 0x2cb   : > { %v2465_v56 = vpack.c.bf16 %v6339_v49, %v6338_v0  ;;  %v2424_v14 = vpop.f32.mrb[107].mxu0  ;;  %5741 = vmatpush3.bf16.msra.mxu0 %v2455_v42  ;;  %v6632_v42 = vld [vmem:[%s9378_s5] sm:$0xff]   ;;  %v9752_v0 = vld [vmem:[#allocation20_spill] sm:$0xff] }
 0x2cc   : > { %v2464_v1 = vpack.c.bf16 %v2424_v14, %v2421_v9  ;;  %v9753_v9 = vpack.c.bf16 %v9751_v50, %v9752_v0  ;;  %v9756_v14 = vld [vmem:[#allocation25_spill] sm:$0xff] }
 0x2cd   : > { %v9768_v50 = vld [vmem:[#allocation29_spill] sm:$0xff] }
 0x2ce   : > { %5742 = vmatprep.subr.bf16.mxu0 %v2464_v1 }
 0x2cf   : > { %5743 = vmatpush3.bf16.msra.mxu0 %v2456_v11  ;;  %v6620_v11 = vld [vmem:[%s9384_s11 + $0x14] ss:$8 sps:$4 sm:$0xff]  }
 0x2d0   : > { %v6342_v16 = vpop.f32.mrb[108].mxu0  ;;  %5744 = vmatprep.subr.bf16.mxu0 %v2465_v56  ;;  %v7971_v47 = vmul.bf16 %v6620_v11, %v9749_v24  ;;  %v9755_v56 = vld [vmem:[#allocation27_spill] sm:$0xff] }
 0x2d1   : > { %v2437_v46 = vpop.f32.mrb[109].mxu0  ;;  %v9757_v1 = vpack.c.bf16 %v9755_v56, %v9756_v14  ;;  %v9764_v11 = vld [vmem:[#allocation31_spill] sm:$0xff]  ;;  %v9771_v14 = vld [vmem:[#allocation44_spill] sm:$0xff] }
 0x2d2   : > { %v6343_v41 = vpop.f32.mrb[110].mxu0  ;;  %9750 = vst [vmem:[#allocation6_spill] sm:$0xff] %v7971_v47 }
 0x2d3   : > { %v2467_v40 = vpack.c.bf16 %v6343_v41, %v6342_v16  ;;  %v2440_v60 = vpop.f32.mrb[111].mxu0  ;;  %5745 = vmatpush3.bf16.msra.mxu0 %v2457_v12  ;;  %v9745_v12 = vpack.c.bf16 %v9743_v30, %v9744_v2  ;;  %v7989_v16 = vmul.bf16 %v6623_v8, %v9757_v1  ;;  %v6626_v41 = vld [vmem:[%s9384_s11 + $0x34] ss:$8 sps:$4 sm:$0xff]  }
 0x2d4   : > { %v2466_v36 = vpack.c.bf16 %v2440_v60, %v2437_v46  ;;  %v6625_v46 = vld [vmem:[%s9384_s11 + $0x20] ss:$8 sps:$4 sm:$0xff]   ;;  %v9760_v60 = vld [vmem:[#allocation24_spill] sm:$0xff]  ;;  %v9767_v8 = vld [vmem:[#allocation33_spill] sm:$0xff] }
 0x2d5   : > { %v7963_v6 = vmul.bf16 %v6594_v28, %v9745_v12  ;;  %9758 = vst [vmem:[#allocation7_spill] sm:$0xff] %v7989_v16  ;;  %v6628_v12 = vld [vmem:[%s9384_s11 + $0x30] ss:$8 sps:$4 sm:$0xff]   ;;  %v9769_v0 = vpack.c.bf16 %v9767_v8, %v9768_v50 }
 0x2d6   : > { %5746 = vmatprep.subr.bf16.mxu0 %v2466_v36  ;;  %v9772_v1 = vld [vmem:[#allocation40_spill] sm:$0xff] }
 0x2d7   : > { %5747 = vmatpush3.bf16.msra.mxu0 %v2458_v19  ;;  %9746 = vst [vmem:[#allocation8_spill] sm:$0xff] %v7963_v6  ;;  %v6657_v19 = vld [vmem:[%s9378_s5 + $0x8] sm:$0xff]   ;;  %v9779_v50 = vld [vmem:[#allocation48_spill] sm:$0xff] }
 0x2d8   : > { %5748 = vmatprep.subr.bf16.mxu0 %v2467_v40  ;;  %v9759_v40 = vld [vmem:[#allocation26_spill] sm:$0xff] }
 0x2d9   : > { %v9761_v36 = vpack.c.bf16 %v9759_v40, %v9760_v60  ;;  %v6631_v60 = vld [vmem:[%s9384_s11 + $0x40] ss:$8 sps:$4 sm:$0xff]  }
 0x2db   : > { %5749 = vmatpush3.bf16.msra.mxu0 %v2459_v61  ;;  %v6622_v61 = vld [vmem:[%s9384_s11 + $0x10] ss:$8 sps:$4 sm:$0xff]   ;;  %v8002_v28 = vmul.bf16 %v6625_v46, %v9761_v36  ;;  %v9773_v46 = vpack.c.bf16 %v9771_v14, %v9772_v1  ;;  %v6633_v36 = vld [vmem:[%s9384_s11 + $0x54] ss:$8 sps:$4 sm:$0xff]  }
 0x2dc   : > { %6344 = vmatprep.subr.bf16.mxu0 %v6632_v42  ;;  %v7984_v49 = vmul.bf16 %v6622_v61, %v9753_v9  ;;  %v8022_v9 = vmul.bf16 %v6628_v12, %v9769_v0  ;;  %v9780_v0 = vld [vmem:[#allocation46_spill] sm:$0xff] }
 0x2dd   : > { %9762 = vst [vmem:[#allocation12_spill] sm:$0xff] %v8002_v28 }
 0x2de   : > { %2501 = vmatmul.mubr.bf16.vlgmr.msra.gmra.mrb[112].mxu0 %v7963_v6  ;;  %9754 = vst [vmem:[#allocation9_spill] sm:$0xff] %v7984_v49  ;;  %9770 = vst [vmem:[#allocation13_spill] sm:$0xff] %v8022_v9 }
 0x2df   : > { %2508 = vmatprep.mubr.bf16.mxu0 %v7971_v47  ;;  %6345 = vmatpush3.bf16.msra.mxu0 %v6632_v42  ;;  %v9763_v42 = vld [vmem:[#allocation35_spill] sm:$0xff] }
 0x2e0   : > { %6346 = vmatprep.subr.bf16.mxu0 %v6657_v19  ;;  %v9765_v30 = vpack.c.bf16 %v9763_v42, %v9764_v11 }
 0x2e2   : > { %v8007_v2 = vmul.bf16 %v6626_v41, %v9765_v30 }
 0x2e3   : > { %6347 = vmatpush3.bf16.msra.mxu0 %v6657_v19  ;;  %v6629_v19 = vld [vmem:[%s9384_s11 + $0x44] ss:$8 sps:$4 sm:$0xff]  }
 0x2e4   : > { %9766 = vst [vmem:[#allocation10_spill] sm:$0xff] %v8007_v2  ;;  %v8027_v41 = vmul.bf16 %v6629_v19, %v9773_v46  ;;  %v9775_v19 = vld [vmem:[#allocation42_spill] sm:$0xff]  ;;  %v6635_v46 = vld [vmem:[%s9384_s11 + $0x50] ss:$8 sps:$4 sm:$0xff]  }
 0x2e6   : > { %2509 = vmatmul.mubr.bf16.gmra.mrb[116].mxu0 %v7984_v49  ;;  %9774 = vst [vmem:[#allocation11_spill] sm:$0xff] %v8027_v41 }
 0x2e7   : > { %2516 = vmatprep.mubr.bf16.mxu0 %v7989_v16 }
 0x2ee   : > { %2517 = vmatmul.mubr.bf16.gmra.mrb[120].mxu0 %v8002_v28 }
 0x2ef   : > { %2524 = vmatprep.mubr.bf16.mxu0 %v8007_v2 }
 0x2f2   : > { %v5862_v44 = vpop.f32.mrb[144].mxu1 }
 0x2f3   : > { %v5863_v32 = vpop.f32.mrb[145].mxu1 }
 0x2f4   : > { %v8017_v24 = vadd.f32 %v5863_v32, %v5862_v44  ;;  %v5865_v61 = vpop.f32.mrb[146].mxu1  ;;  %v9776_v44 = vld [vmem:[#allocation38_spill] sm:$0xff] }
 0x2f5   : > { %v5866_v56 = vpop.f32.mrb[147].mxu1  ;;  %v9777_v32 = vpack.c.bf16 %v9775_v19, %v9776_v44  ;;  %v9783_v44 = vld [vmem:[#allocation47_spill] sm:$0xff] }
 0x2f6   : > { %v8029_v40 = vadd.f32 %v5866_v56, %v5865_v61  ;;  %2525 = vmatmul.mubr.bf16.gmra.mrb[124].mxu0 %v8022_v9  ;;  %v9781_v56 = vpack.c.bf16 %v9779_v50, %v9780_v0  ;;  %v9787_v0 = vld [vmem:[#allocation54_spill] sm:$0xff] }
 0x2f7   : > { %2532 = vmatprep.mubr.bf16.mxu0 %v8027_v41  ;;  %v8044_v61 = vmul.bf16 %v6631_v60, %v9777_v32  ;;  %v6636_v60 = vld [vmem:[%s9384_s11 + $0x64] ss:$8 sps:$4 sm:$0xff]  }
 0x2f8   : > { %v8049_v14 = vmul.bf16 %v6633_v36, %v9781_v56  ;;  %v9788_v56 = vld [vmem:[#allocation52_spill] sm:$0xff] }
 0x2f9   : > { %9778 = vst [vmem:[#allocation16_spill] sm:$0xff] %v8044_v61 }
 0x2fa   : > { %v5868_v42 = vpop.f32.mrb[148].mxu1  ;;  %9782 = vst [vmem:[#allocation14_spill] sm:$0xff] %v8049_v14 }
 0x2fb   : > { %v5869_v11 = vpop.f32.mrb[149].mxu1 }
 0x2fc   : > { %v8039_v30 = vadd.f32 %v5869_v11, %v5868_v42  ;;  %v5871_v12 = vpop.f32.mrb[150].mxu1 }
 0x2fd   : > { %v5872_v8 = vpop.f32.mrb[151].mxu1 }
 0x2fe   : > { %v8051_v1 = vadd.f32 %v5872_v8, %v5871_v12  ;;  %2533 = vmatmul.mubr.bf16.gmra.mrb[128].mxu0 %v8044_v61  ;;  %v9784_v12 = vld [vmem:[#allocation45_spill] sm:$0xff] }
 0x2ff   : > { %2540 = vmatprep.mubr.bf16.mxu0 %v8049_v14  ;;  %v9785_v32 = vpack.c.bf16 %v9783_v44, %v9784_v12  ;;  %v9789_v14 = vpack.c.bf16 %v9787_v0, %v9788_v56  ;;  %v9795_v56 = vld [vmem:[#allocation60_spill] sm:$0xff] }
 0x301   : > { %v8066_v8 = vmul.bf16 %v6635_v46, %v9785_v32  ;;  %v8071_v61 = vmul.bf16 %v6636_v60, %v9789_v14  ;;  %v6639_v46 = vld [vmem:[%s9384_s11 + $0x74] ss:$8 sps:$4 sm:$0xff]  }
 0x302   : > { %v5874_v42 = vpop.f32.mrb[152].mxu1  ;;  %v9791_v60 = vld [vmem:[#allocation53_spill] sm:$0xff] }
 0x303   : > { %v5875_v11 = vpop.f32.mrb[153].mxu1  ;;  %9786 = vst [vmem:[#allocation17_spill] sm:$0xff] %v8066_v8  ;;  %9790 = vst [vmem:[#allocation15_spill] sm:$0xff] %v8071_v61 }
 0x304   : > { %v8061_v19 = vadd.f32 %v5875_v11, %v5874_v42  ;;  %v5877_v36 = vpop.f32.mrb[154].mxu1  ;;  %v6638_v42 = vld [vmem:[%s9384_s11 + $0x60] ss:$8 sps:$4 sm:$0xff]  }
 0x305   : > { %v5878_v50 = vpop.f32.mrb[155].mxu1 }
 0x306   : > { %v8073_v41 = vadd.f32 %v5878_v50, %v5877_v36  ;;  %2541 = vmatmul.mubr.bf16.gmra.mrb[132].mxu0 %v8066_v8  ;;  %v9792_v36 = vld [vmem:[#allocation51_spill] sm:$0xff] }
 0x307   : > { %2548 = vmatprep.mubr.bf16.mxu0 %v8071_v61  ;;  %v9793_v32 = vpack.c.bf16 %v9791_v60, %v9792_v36  ;;  %v9796_v61 = vld [vmem:[#allocation58_spill] sm:$0xff] }
 0x308   : > { %v9797_v8 = vpack.c.bf16 %v9795_v56, %v9796_v61  ;;  %v9803_v56 = vld [vmem:[#allocation66_spill] sm:$0xff] }
 0x309   : > { %v8088_v50 = vmul.bf16 %v6638_v42, %v9793_v32  ;;  %v6642_v42 = vld [vmem:[%s9384_s11 + $0x84] ss:$8 sps:$4 sm:$0xff]  }
 0x30a   : > { %v5880_v11 = vpop.f32.mrb[156].mxu1  ;;  %v8093_v9 = vmul.bf16 %v6639_v46, %v9797_v8  ;;  %v9799_v8 = vld [vmem:[#allocation59_spill] sm:$0xff]  ;;  %v9800_v46 = vld [vmem:[#allocation57_spill] sm:$0xff] }
 0x30b   : > { %v5881_v44 = vpop.f32.mrb[157].mxu1  ;;  %9794 = vst [vmem:[#allocation19_spill] sm:$0xff] %v8088_v50 }
 0x30c   : > { %v8083_v12 = vadd.f32 %v5881_v44, %v5880_v11  ;;  %v5883_v14 = vpop.f32.mrb[158].mxu1  ;;  %9798 = vst [vmem:[#allocation18_spill] sm:$0xff] %v8093_v9  ;;  %v6641_v11 = vld [vmem:[%s9384_s11 + $0x70] ss:$8 sps:$4 sm:$0xff]  }
 0x30d   : > { %v5884_v0 = vpop.f32.mrb[159].mxu1 }
 0x30e   : > { %v8095_v2 = vadd.f32 %v5884_v0, %v5883_v14  ;;  %2549 = vmatmul.mubr.bf16.gmra.mrb[136].mxu0 %v8088_v50  ;;  %v9801_v14 = vpack.c.bf16 %v9799_v8, %v9800_v46 }
 0x30f   : > { %2556 = vmatprep.mubr.bf16.mxu0 %v8093_v9  ;;  %v9804_v9 = vld [vmem:[#allocation64_spill] sm:$0xff] }
 0x310   : > { %v8110_v32 = vmul.bf16 %v6641_v11, %v9801_v14  ;;  %v9805_v50 = vpack.c.bf16 %v9803_v56, %v9804_v9  ;;  %v6645_v11 = vld [vmem:[%s9384_s11 + $0x94] ss:$8 sps:$4 sm:$0xff]  }
 0x311   : > { %v9811_v56 = vld [vmem:[#allocation72_spill] sm:$0xff] }
 0x312   : > { %v5886_v44 = vpop.f32.mrb[160].mxu1  ;;  %9802 = vst [vmem:[#allocation23_spill] sm:$0xff] %v8110_v32  ;;  %v8115_v28 = vmul.bf16 %v6642_v42, %v9805_v50  ;;  %v9807_v50 = vld [vmem:[#allocation65_spill] sm:$0xff]  ;;  %v9808_v42 = vld [vmem:[#allocation63_spill] sm:$0xff] }
 0x313   : > { %v5887_v60 = vpop.f32.mrb[161].mxu1 }
 0x314   : > { %v8105_v36 = vadd.f32 %v5887_v60, %v5886_v44  ;;  %v5889_v61 = vpop.f32.mrb[162].mxu1  ;;  %9806 = vst [vmem:[#allocation21_spill] sm:$0xff] %v8115_v28  ;;  %v6644_v44 = vld [vmem:[%s9384_s11 + $0x80] ss:$8 sps:$4 sm:$0xff]  }
 0x315   : > { %v5890_v0 = vpop.f32.mrb[163].mxu1 }
 0x316   : > { %v8117_v16 = vadd.f32 %v5890_v0, %v5889_v61  ;;  %2557 = vmatmul.mubr.bf16.gmra.mrb[140].mxu0 %v8110_v32  ;;  %v9809_v61 = vpack.c.bf16 %v9807_v50, %v9808_v42 }
 0x317   : > { %2564 = vmatprep.mubr.bf16.mxu0 %v8115_v28  ;;  %v9812_v28 = vld [vmem:[#allocation70_spill] sm:$0xff] }
 0x318   : > { %v8132_v14 = vmul.bf16 %v6644_v44, %v9809_v61  ;;  %v9813_v32 = vpack.c.bf16 %v9811_v56, %v9812_v28  ;;  %v6648_v44 = vld [vmem:[%s9384_s11 + $0xa4] ss:$8 sps:$4 sm:$0xff]  }
 0x319   : > { %v9819_v56 = vld [vmem:[#allocation78_spill] sm:$0xff] }
 0x31a   : > { %v5892_v60 = vpop.f32.mrb[164].mxu1  ;;  %9810 = vst [vmem:[#allocation22_spill] sm:$0xff] %v8132_v14  ;;  %v8137_v49 = vmul.bf16 %v6645_v11, %v9813_v32  ;;  %v9815_v32 = vld [vmem:[#allocation71_spill] sm:$0xff]  ;;  %v9816_v11 = vld [vmem:[#allocation69_spill] sm:$0xff] }
 0x31b   : > { %v5893_v8 = vpop.f32.mrb[165].mxu1 }
 0x31c   : > { %v8127_v46 = vadd.f32 %v5893_v8, %v5892_v60  ;;  %v5895_v9 = vpop.f32.mrb[166].mxu1  ;;  %9814 = vst [vmem:[#allocation20_spill] sm:$0xff] %v8137_v49  ;;  %v6647_v60 = vld [vmem:[%s9384_s11 + $0x90] ss:$8 sps:$4 sm:$0xff]  }
 0x31d   : > { %v5896_v0 = vpop.f32.mrb[167].mxu1 }
 0x31e   : > { %v8139_v47 = vadd.f32 %v5896_v0, %v5895_v9  ;;  %2565 = vmatmul.mubr.bf16.gmra.mrb[144].mxu0 %v8132_v14  ;;  %v9817_v9 = vpack.c.bf16 %v9815_v32, %v9816_v11 }
 0x31f   : > { %2572 = vmatprep.mubr.bf16.mxu0 %v8137_v49  ;;  %v9820_v49 = vld [vmem:[#allocation76_spill] sm:$0xff] }
 0x320   : > { %v8154_v61 = vmul.bf16 %v6647_v60, %v9817_v9  ;;  %v9821_v14 = vpack.c.bf16 %v9819_v56, %v9820_v49  ;;  %v6651_v60 = vld [vmem:[%s9384_s11 + $0xb4] ss:$8 sps:$4 sm:$0xff]   ;;  %v9827_v56 = vld [vmem:[#allocation82_spill] sm:$0xff] }
 0x322   : > { %v5898_v8 = vpop.f32.mrb[168].mxu1  ;;  %9818 = vst [vmem:[#allocation27_spill] sm:$0xff] %v8154_v61  ;;  %v8159_v6 = vmul.bf16 %v6648_v44, %v9821_v14  ;;  %v9823_v14 = vld [vmem:[#allocation77_spill] sm:$0xff]  ;;  %v9824_v44 = vld [vmem:[#allocation75_spill] sm:$0xff] }
 0x323   : > { %v5899_v50 = vpop.f32.mrb[169].mxu1 }
 0x324   : > { %v8149_v42 = vadd.f32 %v5899_v50, %v5898_v8  ;;  %v5901_v28 = vpop.f32.mrb[170].mxu1  ;;  %9822 = vst [vmem:[#allocation25_spill] sm:$0xff] %v8159_v6  ;;  %v6650_v8 = vld [vmem:[%s9384_s11 + $0xa0] ss:$8 sps:$4 sm:$0xff]  }
 0x325   : > { %v5902_v0 = vpop.f32.mrb[171].mxu1 }
 0x326   : > { %v8161_v13 = vadd.f32 %v5902_v0, %v5901_v28  ;;  %2573 = vmatmul.mubr.bf16.gmra.mrb[148].mxu0 %v8154_v61  ;;  %v9825_v28 = vpack.c.bf16 %v9823_v14, %v9824_v44 }
 0x327   : > { %2580 = vmatprep.mubr.bf16.mxu0 %v8159_v6  ;;  %v9828_v6 = vpack.c.bf16 %v7602_v22, %v9827_v56  ;;  %v9834_v56 = vpack.c.bf16 %v7628_v35, %v7616_v26  ;;  %v9836_v35 = vld [vmem:[#allocation86_spill] sm:$0xff] }
 0x328   : > { %v8176_v9 = vmul.bf16 %v6650_v8, %v9825_v28  ;;  %v6654_v8 = vld [vmem:[%s9384_s11 + $0xc4] ss:$8 sps:$4 sm:$0xff]  }
 0x329   : > { %v8181_v61 = vmul.bf16 %v6651_v60, %v9828_v6  ;;  %v9830_v6 = vld [vmem:[#allocation83_spill] sm:$0xff]  ;;  %v9831_v60 = vld [vmem:[#allocation81_spill] sm:$0xff] }
 0x32a   : > { %v5904_v50 = vpop.f32.mrb[172].mxu1  ;;  %9826 = vst [vmem:[#allocation26_spill] sm:$0xff] %v8176_v9 }
 0x32b   : > { %v5905_v32 = vpop.f32.mrb[173].mxu1  ;;  %9829 = vst [vmem:[#allocation24_spill] sm:$0xff] %v8181_v61 }
 0x32c   : > { %v8171_v11 = vadd.f32 %v5905_v32, %v5904_v50  ;;  %v5907_v49 = vpop.f32.mrb[174].mxu1  ;;  %v6653_v50 = vld [vmem:[%s9384_s11 + $0xb0] ss:$8 sps:$4 sm:$0xff]  }
 0x32d   : > { %v5908_v0 = vpop.f32.mrb[175].mxu1 }
 0x32e   : > { %v8183_v31 = vadd.f32 %v5908_v0, %v5907_v49  ;;  %2581 = vmatmul.mubr.bf16.gmra.mrb[152].mxu0 %v8176_v9  ;;  %v9832_v49 = vpack.c.bf16 %v9830_v6, %v9831_v60 }
 0x32f   : > { %2588 = vmatprep.mubr.bf16.mxu0 %v8181_v61  ;;  %v8203_v61 = vmul.bf16 %v6654_v8, %v9834_v56  ;;  %v9837_v8 = vpack.c.bf16 %v7621_v54, %v9836_v35  ;;  %v6661_v54 = vld [vmem:[%s9384_s11 + $0xe4] ss:$8 sps:$4 sm:$0xff]  }
 0x330   : > { %v8198_v28 = vmul.bf16 %v6653_v50, %v9832_v49  ;;  %v6658_v50 = vld [vmem:[%s9384_s11 + $0xd4] ss:$8 sps:$4 sm:$0xff]  }
 0x331   : > { %9835 = vst [vmem:[#allocation31_spill] sm:$0xff] %v8203_v61 }
 0x332   : > { %v5910_v32 = vpop.f32.mrb[176].mxu1  ;;  %9833 = vst [vmem:[#allocation35_spill] sm:$0xff] %v8198_v28 }
 0x333   : > { %v5911_v14 = vpop.f32.mrb[177].mxu1 }
 0x334   : > { %v8193_v44 = vadd.f32 %v5911_v14, %v5910_v32  ;;  %v5913_v22 = vpop.f32.mrb[178].mxu1  ;;  %v6656_v32 = vld [vmem:[%s9384_s11 + $0xc0] ss:$8 sps:$4 sm:$0xff]  }
 0x335   : > { %v5914_v0 = vpop.f32.mrb[179].mxu1 }
 0x336   : > { %v8205_v9 = vadd.f32 %v5914_v0, %v5913_v22  ;;  %2589 = vmatmul.mubr.bf16.gmra.mrb[156].mxu0 %v8198_v28  ;;  %v8220_v22 = vmul.bf16 %v6656_v32, %v9837_v8  ;;  %v9839_v0 = vld [vmem:[#allocation90_spill] sm:$0xff] }
 0x337   : > { %2596 = vmatprep.mubr.bf16.mxu0 %v8203_v61  ;;  %v9840_v56 = vpack.c.bf16 %v7657_v4, %v9839_v0 }
 0x338   : > { %9838 = vst [vmem:[#allocation33_spill] sm:$0xff] %v8220_v22 }
 0x339   : > { %v8225_v61 = vmul.bf16 %v6658_v50, %v9840_v56  ;;  %v9842_v50 = vld [vmem:[#allocation92_spill] sm:$0xff] }
 0x33a   : > { %v5916_v14 = vpop.f32.mrb[180].mxu1  ;;  %v9846_v56 = vld [vmem:[#allocation96_spill] sm:$0xff] }
 0x33b   : > { %v5917_v6 = vpop.f32.mrb[181].mxu1  ;;  %9841 = vst [vmem:[#allocation29_spill] sm:$0xff] %v8225_v61 }
 0x33c   : > { %v8215_v60 = vadd.f32 %v5917_v6, %v5916_v14  ;;  %v5919_v26 = vpop.f32.mrb[182].mxu1  ;;  %v6660_v14 = vld [vmem:[%s9384_s11 + $0xd0] ss:$8 sps:$4 sm:$0xff]  }
 0x33d   : > { %v5920_v49 = vpop.f32.mrb[183].mxu1 }
 0x33e   : > { %v8227_v28 = vadd.f32 %v5920_v49, %v5919_v26  ;;  %2597 = vmatmul.mubr.bf16.gmra.mrb[160].mxu0 %v8220_v22  ;;  %v9843_v26 = vld [vmem:[#allocation89_spill] sm:$0xff] }
 0x33f   : > { %2604 = vmatprep.mubr.bf16.mxu0 %v8225_v61  ;;  %v9844_v8 = vpack.c.bf16 %v9842_v50, %v9843_v26  ;;  %v9847_v61 = vld [vmem:[#allocation94_spill] sm:$0xff] }
 0x340   : > { %v9848_v22 = vpack.c.bf16 %v9846_v56, %v9847_v61  ;;  %v9855_v56 = vld [vmem:[#allocation100_spill] sm:$0xff] }
 0x341   : > { %v8242_v49 = vmul.bf16 %v6660_v14, %v9844_v8  ;;  %v6664_v14 = vld [vmem:[%s9384_s11 + $0xf4] ss:$8 sps:$4 sm:$0xff]  }
 0x342   : > { %v5922_v32 = vpop.f32.mrb[184].mxu1  ;;  %v8247_v18 = vmul.bf16 %v6661_v54, %v9848_v22  ;;  %v9851_v22 = vld [vmem:[#allocation95_spill] sm:$0xff]  ;;  %v9852_v54 = vld [vmem:[#allocation93_spill] sm:$0xff] }
 0x343   : > { %v5923_v6 = vpop.f32.mrb[185].mxu1  ;;  %9845 = vst [vmem:[#allocation44_spill] sm:$0xff] %v8242_v49 }
 0x344   : > { %v8237_v35 = vadd.f32 %v5923_v6, %v5922_v32  ;;  %v5925_v4 = vpop.f32.mrb[186].mxu1  ;;  %9849 = vst [vmem:[#allocation40_spill] sm:$0xff] %v8247_v18  ;;  %v6663_v32 = vld [vmem:[%s9384_s11 + $0xe0] ss:$8 sps:$4 sm:$0xff]  }
 0x345   : > { %v5926_v0 = vpop.f32.mrb[187].mxu1 }
 0x346   : > { %v8249_v55 = vadd.f32 %v5926_v0, %v5925_v4  ;;  %2605 = vmatmul.mubr.bf16.gmra.mrb[164].mxu0 %v8242_v49  ;;  %v9853_v4 = vpack.c.bf16 %v9851_v22, %v9852_v54  ;;  %v9860_v54 = vld [vmem:[#allocation97_spill] sm:$0xff] }
 0x347   : > { %2612 = vmatprep.mubr.bf16.mxu0 %v8247_v18  ;;  %v9856_v18 = vld [vmem:[#allocation98_spill] sm:$0xff] }
 0x348   : > { %9850 = vst [vmem:[#allocation42_spill] sm:$0xff] %v8249_v55  ;;  %v8264_v8 = vmul.bf16 %v6663_v32, %v9853_v4  ;;  %v9857_v49 = vpack.c.bf16 %v9855_v56, %v9856_v18  ;;  %v9859_v32 = vld [vmem:[#allocation99_spill] sm:$0xff] }
 0x349   : > { %v9861_v4 = vpack.c.bf16 %v9859_v32, %v9860_v54  ;;  %v9869_v32 = vld [vmem:[#allocation56_spill] sm:$0xff] }
 0x34a   : > { %v5928_v6 = vpop.f32.mrb[188].mxu1  ;;  %9854 = vst [vmem:[#allocation38_spill] sm:$0xff] %v8264_v8  ;;  %v8269_v38 = vmul.bf16 %v6664_v14, %v9857_v49 }
 0x34b   : > { %v5929_v50 = vpop.f32.mrb[189].mxu1 }
 0x34c   : > { %v8259_v26 = vadd.f32 %v5929_v50, %v5928_v6  ;;  %v5931_v61 = vpop.f32.mrb[190].mxu1  ;;  %9858 = vst [vmem:[#allocation48_spill] sm:$0xff] %v8269_v38  ;;  %v6666_v6 = vld [vmem:[%s9384_s11 + $0xf0] ss:$8 sps:$4 sm:$0xff]  }
 0x34d   : > { %v5932_v0 = vpop.f32.mrb[191].mxu1  ;;  %v8281_v7 = vmul.bf16 %v6666_v6, %v9861_v4  ;;  %v6667_v6 = vld [vmem:[%s9379_s6 + $0x10] sm:$0xff]  }
 0x34e   : > { %v8271_v10 = vadd.f32 %v5932_v0, %v5931_v61  ;;  %2613 = vmatmul.mubr.bf16.gmra.mrb[168].mxu0 %v8264_v8  ;;  %v9865_v0 = vld [vmem:[#allocation50_spill] sm:$0xff]  ;;  %6380 = vmatprep.subr.bf16.mxu1 %v6667_v6 }
 0x34f   : > { %2620 = vmatprep.mubr.bf16.mxu0 %v8269_v38  ;;  %9862 = vst [vmem:[#allocation46_spill] sm:$0xff] %v8281_v7  ;;  %6381 = vmatpush3.bf16.msra.mxu1 %v6667_v6 }
 0x352   : > { %v5934_v50 = vpop.f32.mrb[192].mxu1 }
 0x353   : > { %v5935_v22 = vpop.f32.mrb[193].mxu1 }
 0x354   : > { %v8283_v18 = vadd.f32 %v5935_v22, %v5934_v50  ;;  %v5937_v49 = vpop.f32.mrb[194].mxu1  ;;  %v9867_v50 = vld [vmem:[#allocation49_spill] sm:$0xff] }
 0x355   : > { %v5938_v14 = vpop.f32.mrb[195].mxu1 }
 0x356   : > { %9863 = vst [vmem:[#allocation47_spill] sm:$0xff] %v8283_v18  ;;  %2621 = vmatmul.mubr.bf16.gmra.mrb[172].mxu0 %v8281_v7  ;;  %v8286_v61 = vadd.f32 %v5938_v14, %v5937_v49  ;;  %v9873_v7 = vld [vmem:[#allocation62_spill] sm:$0xff] }
 0x357   : > { %6348 = vmatprep.mubr.msk.bf16.mxu0 %vm2242_vm4, %v9865_v0  ;;  %v9871_v0 = vld [vmem:[#allocation55_spill] sm:$0xff] }
 0x358   : > { %9864 = vst [vmem:[#allocation45_spill] sm:$0xff] %v8286_v61 }
 0x35a   : > { %v5940_v56 = vpop.f32.mrb[196].mxu1 }
 0x35b   : > { %v5941_v38 = vpop.f32.mrb[197].mxu1 }
 0x35c   : > { %v8290_v8 = vadd.f32 %v5941_v38, %v5940_v56  ;;  %v5943_v37 = vpop.f32.mrb[198].mxu1 }
 0x35d   : > { %v5944_v59 = vpop.f32.mrb[199].mxu1 }
 0x35e   : > { %9866 = vst [vmem:[#allocation54_spill] sm:$0xff] %v8290_v8  ;;  %6349 = vmatmul.mubr.msk.bf16.vlgmr.msra.gmra.mrb[176].mxu0 %vm2242_vm4, %v9867_v50  ;;  %v8297_v22 = vadd.f32 %v5944_v59, %v5943_v37 }
 0x35f   : > { %6352 = vmatprep.mubr.msk.bf16.mxu0 %vm2242_vm4, %v9869_v32 }
 0x360   : > { %9868 = vst [vmem:[#allocation52_spill] sm:$0xff] %v8297_v22 }
 0x362   : > { %v5946_v54 = vpop.f32.mrb[200].mxu1 }
 0x363   : > { %v5947_v4 = vpop.f32.mrb[201].mxu1 }
 0x364   : > { %v8301_v38 = vadd.f32 %v5947_v4, %v5946_v54  ;;  %v5949_v49 = vpop.f32.mrb[202].mxu1  ;;  %v9877_v4 = vld [vmem:[#allocation68_spill] sm:$0xff] }
 0x365   : > { %v5950_v14 = vpop.f32.mrb[203].mxu1 }
 0x366   : > { %9870 = vst [vmem:[#allocation53_spill] sm:$0xff] %v8301_v38  ;;  %6353 = vmatmul.mubr.msk.bf16.gmra.mrb[180].mxu0 %vm2242_vm4, %v9871_v0  ;;  %v8305_v56 = vadd.f32 %v5950_v14, %v5949_v49  ;;  %v9878_v0 = vld [vmem:[#allocation67_spill] sm:$0xff]  ;;  %v9879_v49 = vld [vmem:[#allocation74_spill] sm:$0xff]  ;;  %v9881_v14 = vld [vmem:[#allocation80_spill] sm:$0xff] }
 0x367   : > { %6356 = vmatprep.mubr.msk.bf16.mxu0 %vm2242_vm4, %v9873_v7  ;;  %v9880_v7 = vld [vmem:[#allocation73_spill] sm:$0xff] }
 0x368   : > { %9872 = vst [vmem:[#allocation51_spill] sm:$0xff] %v8305_v56 }
 0x36a   : > { %v5952_v59 = vpop.f32.mrb[204].mxu1 }
 0x36b   : > { %v5953_v37 = vpop.f32.mrb[205].mxu1 }
 0x36c   : > { %v8309_v50 = vadd.f32 %v5953_v37, %v5952_v59  ;;  %v5955_v32 = vpop.f32.mrb[206].mxu1  ;;  %v9882_v59 = vld [vmem:[#allocation79_spill] sm:$0xff]  ;;  %v9884_v37 = vld [vmem:[#allocation84_spill] sm:$0xff] }
 0x36d   : > { %v5956_v6 = vpop.f32.mrb[207].mxu1 }
 0x36e   : > { %9874 = vst [vmem:[#allocation60_spill] sm:$0xff] %v8309_v50  ;;  %6357 = vmatmul.mubr.msk.bf16.gmra.mrb[184].mxu0 %vm2242_vm4, %v9875_v52  ;;  %v8313_v54 = vadd.f32 %v5956_v6, %v5955_v32  ;;  %v9883_v52 = vld [vmem:[#allocation85_spill] sm:$0xff]  ;;  %v9885_v32 = vld [vmem:[#allocation88_spill] sm:$0xff]  ;;  %v9886_v6 = vld [vmem:[#allocation87_spill] sm:$0xff] }
 0x36f   : > { %6360 = vmatprep.mubr.msk.bf16.mxu0 %vm2242_vm4, %v9877_v4  ;;  %v9887_v4 = vld [vmem:[#allocation91_spill] sm:$0xff] }
 0x370   : > { %9876 = vst [vmem:[#allocation58_spill] sm:$0xff] %v8313_v54 }
 0x376   : > { %6361 = vmatmul.mubr.msk.bf16.gmra.mrb[188].mxu0 %vm2242_vm4, %v9878_v0  ;;  %v6668_v0 = vld [vmem:[%s9379_s6 + $0x18] sm:$0xff]  }
 0x377   : > { %6364 = vmatprep.mubr.msk.bf16.mxu0 %vm2242_vm4, %v9879_v49  ;;  %6382 = vmatprep.subr.bf16.mxu1 %v6668_v0 }
 0x378   : > { %6383 = vmatpush3.bf16.msra.mxu1 %v6668_v0 }
 0x37e   : > { %6365 = vmatmul.mubr.msk.bf16.gmra.mrb[192].mxu0 %vm2242_vm4, %v9880_v7 }
 0x37f   : > { %6368 = vmatprep.mubr.msk.bf16.mxu0 %vm2242_vm4, %v9881_v14 }
 0x386   : > { %6369 = vmatmul.mubr.msk.bf16.gmra.mrb[196].mxu0 %vm2242_vm4, %v9882_v59 }
 0x387   : > { %6372 = vmatprep.mubr.msk.bf16.mxu0 %vm2242_vm4, %v9883_v52 }
 0x38e   : > { %6373 = vmatmul.mubr.msk.bf16.gmra.mrb[200].mxu0 %vm2242_vm4, %v9884_v37 }
 0x38f   : > { %6376 = vmatprep.mubr.msk.bf16.mxu0 %vm2242_vm4, %v9885_v32 }
 0x396   : > { %6377 = vmatmul.mubr.msk.bf16.gmra.mrb[204].mxu0 %vm2242_vm4, %v9886_v6 }
 0x397   : > { %3486 = vmatprep.mubr.bf16.mxu0 %v9887_v4 }
 0x3b1   : > { %v5750_v49 = vpop.f32.mrb[112].mxu0 }
 0x3b2   : > { %v5751_v7 = vpop.f32.mrb[113].mxu0 }
 0x3b3   : > { %v8339_v14 = vadd.f32 %v5751_v7, %v5750_v49  ;;  %v5753_v59 = vpop.f32.mrb[114].mxu0 }
 0x3b4   : > { %v5754_v52 = vpop.f32.mrb[115].mxu0 }
 0x3b5   : > { %v8341_v37 = vadd.f32 %v5754_v52, %v5753_v59 }
 0x3b9   : > { %v5756_v32 = vpop.f32.mrb[116].mxu0 }
 0x3ba   : > { %v5757_v27 = vpop.f32.mrb[117].mxu0 }
 0x3bb   : > { %v8343_v34 = vadd.f32 %v5757_v27, %v5756_v32  ;;  %v5759_v6 = vpop.f32.mrb[118].mxu0 }
 0x3bc   : > { %v5760_v4 = vpop.f32.mrb[119].mxu0 }
 0x3bd   : > { %v8345_v57 = vadd.f32 %v5760_v4, %v5759_v6 }
 0x3c1   : > { %v5762_v33 = vpop.f32.mrb[120].mxu0 }
 0x3c2   : > { %v5763_v53 = vpop.f32.mrb[121].mxu0 }
 0x3c3   : > { %v8347_v29 = vadd.f32 %v5763_v53, %v5762_v33  ;;  %v5765_v0 = vpop.f32.mrb[122].mxu0 }
 0x3c4   : > { %v5766_v63 = vpop.f32.mrb[123].mxu0 }
 0x3c5   : > { %v8349_v49 = vadd.f32 %v5766_v63, %v5765_v0 }
 0x3c9   : > { %v5768_v7 = vpop.f32.mrb[124].mxu0 }
 0x3ca   : > { %v5769_v45 = vpop.f32.mrb[125].mxu0 }
 0x3cb   : > { %v8351_v59 = vadd.f32 %v5769_v45, %v5768_v7  ;;  %v5771_v52 = vpop.f32.mrb[126].mxu0 }
 0x3cc   : > { %v5772_v23 = vpop.f32.mrb[127].mxu0 }
 0x3cd   : > { %v8353_v27 = vadd.f32 %v5772_v23, %v5771_v52  ;;  %v6669_v23 = vld [vmem:[%s9380_s7 + $0xc0] sm:$0xff]  }
 0x3ce   : > { %6106 = vmatprep.subr.bf16.mxu1 %v6669_v23 }
 0x3d1   : > { %v5774_v32 = vpop.f32.mrb[128].mxu0 }
 0x3d2   : > { %v5775_v58 = vpop.f32.mrb[129].mxu0 }
 0x3d3   : > { %v8355_v6 = vadd.f32 %v5775_v58, %v5774_v32  ;;  %v5777_v4 = vpop.f32.mrb[130].mxu0 }
 0x3d4   : > { %v5778_v62 = vpop.f32.mrb[131].mxu0 }
 0x3d5   : > { %v8357_v53 = vadd.f32 %v5778_v62, %v5777_v4 }
 0x3d9   : > { %v5780_v33 = vpop.f32.mrb[132].mxu0 }
 0x3da   : > { %v5781_v21 = vpop.f32.mrb[133].mxu0 }
 0x3db   : > { %v8359_v63 = vadd.f32 %v5781_v21, %v5780_v33  ;;  %v5783_v0 = vpop.f32.mrb[134].mxu0 }
 0x3dc   : > { %v5784_v48 = vpop.f32.mrb[135].mxu0 }
 0x3dd   : > { %v8361_v45 = vadd.f32 %v5784_v48, %v5783_v0 }
 0x3e1   : > { %v5786_v7 = vpop.f32.mrb[136].mxu0 }
 0x3e2   : > { %v5787_v58 = vpop.f32.mrb[137].mxu0 }
 0x3e3   : > { %v8366_v52 = vadd.f32 %v5787_v58, %v5786_v7  ;;  %v5789_v32 = vpop.f32.mrb[138].mxu0 }
 0x3e4   : > { %v5790_v62 = vpop.f32.mrb[139].mxu0 }
 0x3e5   : > { %v8368_v4 = vadd.f32 %v5790_v62, %v5789_v32 }
 0x3e9   : > { %v5792_v43 = vpop.f32.mrb[140].mxu0 }
 0x3ea   : > { %v5793_v21 = vpop.f32.mrb[141].mxu0 }
 0x3eb   : > { %v8370_v33 = vadd.f32 %v5793_v21, %v5792_v43  ;;  %v5795_v5 = vpop.f32.mrb[142].mxu0 }
 0x3ec   : > { %v5796_v48 = vpop.f32.mrb[143].mxu0 }
 0x3ed   : > { %v8372_v0 = vadd.f32 %v5796_v48, %v5795_v5 }
 0x3f1   : > { %v5798_v3 = vpop.f32.mrb[144].mxu0 }
 0x3f2   : > { %v5799_v17 = vpop.f32.mrb[145].mxu0 }
 0x3f3   : > { %v8374_v15 = vadd.f32 %v5799_v17, %v5798_v3  ;;  %v5801_v23 = vpop.f32.mrb[146].mxu0 }
 0x3f4   : > { %v5802_v51 = vpop.f32.mrb[147].mxu0 }
 0x3f5   : > { %v8376_v7 = vadd.f32 %v5802_v51, %v5801_v23 }
 0x3f9   : > { %v5804_v58 = vpop.f32.mrb[148].mxu0 }
 0x3fa   : > { %v5805_v25 = vpop.f32.mrb[149].mxu0 }
 0x3fb   : > { %v8378_v32 = vadd.f32 %v5805_v25, %v5804_v58  ;;  %v5807_v62 = vpop.f32.mrb[150].mxu0 }
 0x3fc   : > { %v5808_v39 = vpop.f32.mrb[151].mxu0 }
 0x3fd   : > { %v8380_v43 = vadd.f32 %v5808_v39, %v5807_v62 }
 0x401   : > { %v5810_v21 = vpop.f32.mrb[152].mxu0 }
 0x402   : > { %v5811_v20 = vpop.f32.mrb[153].mxu0 }
 0x403   : > { %v8382_v5 = vadd.f32 %v5811_v20, %v5810_v21  ;;  %v5813_v48 = vpop.f32.mrb[154].mxu0 }
 0x404   : > { %v5814_v56 = vpop.f32.mrb[155].mxu0 }
 0x405   : > { %v8384_v17 = vadd.f32 %v5814_v56, %v5813_v48 }
 0x409   : > { %v5816_v3 = vpop.f32.mrb[156].mxu0 }
 0x40a   : > { %v5817_v54 = vpop.f32.mrb[157].mxu0 }
 0x40b   : > { %v8386_v51 = vadd.f32 %v5817_v54, %v5816_v3  ;;  %v5819_v23 = vpop.f32.mrb[158].mxu0 }
 0x40c   : > { %v5820_v38 = vpop.f32.mrb[159].mxu0 }
 0x40d   : > { %v8388_v25 = vadd.f32 %v5820_v38, %v5819_v23 }
 0x411   : > { %v5822_v58 = vpop.f32.mrb[160].mxu0 }
 0x412   : > { %v5823_v50 = vpop.f32.mrb[161].mxu0 }
 0x413   : > { %v8390_v39 = vadd.f32 %v5823_v50, %v5822_v58  ;;  %v5825_v62 = vpop.f32.mrb[162].mxu0 }
 0x414   : > { %v5826_v61 = vpop.f32.mrb[163].mxu0 }
 0x415   : > { %9888 = vst [vmem:[#allocation59_spill] sm:$0xff] %v8390_v39  ;;  %v8392_v20 = vadd.f32 %v5826_v61, %v5825_v62 }
 0x417   : > { %9889 = vst [vmem:[#allocation57_spill] sm:$0xff] %v8392_v20 }
 0x419   : > { %v5828_v21 = vpop.f32.mrb[164].mxu0 }
 0x41a   : > { %v5829_v22 = vpop.f32.mrb[165].mxu0 }
 0x41b   : > { %v8394_v56 = vadd.f32 %v5829_v22, %v5828_v21  ;;  %v5831_v48 = vpop.f32.mrb[166].mxu0  ;;  %v9892_v21 = vld [vmem:[#allocation36_spill] sm:$0xff] }
 0x41c   : > { %v5832_v18 = vpop.f32.mrb[167].mxu0 }
 0x41d   : > { %9890 = vst [vmem:[#allocation66_spill] sm:$0xff] %v8394_v56  ;;  %v8396_v54 = vadd.f32 %v5832_v18, %v5831_v48  ;;  %v3125_v56 = vsub.s32 4, %v9892_v21 }
 0x421   : > { %v5834_v3 = vpop.f32.mrb[168].mxu0 }
 0x422   : > { %v5835_v8 = vpop.f32.mrb[169].mxu0 }
 0x423   : > { %v8398_v38 = vadd.f32 %v5835_v8, %v5834_v3  ;;  %v5837_v23 = vpop.f32.mrb[170].mxu0  ;;  %v6691_v8 = vld [vmem:[%s9385_s12] sm:$0x3f] }
 0x424   : > { %v5838_v55 = vpop.f32.mrb[171].mxu0  ;;  %v8411_v3 = vrot.slane %v6691_v8, %v3125_v56 }
 0x425   : > { %v8400_v50 = vadd.f32 %v5838_v55, %v5837_v23 }
 0x427   : > { %9891 = vst [vmem:[#allocation64_spill] sm:$0xff] %v8400_v50 }
 0x429   : > { %v5840_v58 = vpop.f32.mrb[172].mxu0 }
 0x42a   : > { %v5841_v39 = vpop.f32.mrb[173].mxu0 }
 0x42b   : > { %v8402_v61 = vadd.f32 %v5841_v39, %v5840_v58  ;;  %v5843_v62 = vpop.f32.mrb[174].mxu0 }
 0x42c   : > { %v5844_v20 = vpop.f32.mrb[175].mxu0 }
 0x42d   : > { %v8404_v22 = vadd.f32 %v5844_v20, %v5843_v62 }
 0x431   : > { %v6350_v18 = vpop.f32.mrb[176].mxu0 }
 0x432   : > { %v2973_v48 = vadd.f32 %v6350_v18, %v8343_v34  ;;  %v2964_v55 = vpop.f32.mrb[177].mxu0 }
 0x433   : > { %v2965_v23 = vadd.f32 %v8339_v14, %v2964_v55  ;;  %v6351_v39 = vpop.f32.mrb[178].mxu0 }
 0x434   : > { %v3093_v58 = vadd.f32 %v8039_v30, %v2973_v48  ;;  %v2976_v20 = vadd.f32 %v6351_v39, %v8345_v57  ;;  %v2967_v62 = vpop.f32.mrb[179].mxu0 }
 0x435   : > { %v3091_v21 = vadd.f32 %v8017_v24, %v2965_v23  ;;  %v2968_v50 = vadd.f32 %v8341_v37, %v2967_v62 }
 0x436   : > { %v3129_v34 = vadd.f32 %v8411_v3, %v3093_v58  ;;  %v3094_v18 = vadd.f32 %v8051_v1, %v2976_v20 }
 0x437   : > { %v3127_v56 = vadd.f32 %v8411_v3, %v3091_v21  ;;  %v3092_v8 = vadd.f32 %v8029_v40, %v2968_v50 }
 0x438   : > { %v3130_v14 = vadd.f32 %v8411_v3, %v3094_v18  ;;  %v3161_v48 = vmax.f32 %v3129_v34, 0.0 }
 0x439   : > { %v3128_v55 = vadd.f32 %v8411_v3, %v3092_v8  ;;  %v6354_v30 = vpop.f32.mrb[180].mxu0  ;;  %v3159_v23 = vmax.f32 %v3127_v56, 0.0 }
 0x43a   : > { %v3162_v57 = vmax.f32 %v3130_v14, 0.0  ;;  %v2989_v39 = vadd.f32 %v6354_v30, %v8351_v59  ;;  %v2980_v24 = vpop.f32.mrb[181].mxu0  ;;  %v6670_v59 = vld [vmem:[%s9380_s7 + $0x80] sm:$0xff]  }
 0x43b   : > { %v3160_v37 = vmax.f32 %v3128_v55, 0.0  ;;  %v2981_v58 = vadd.f32 %v8347_v29, %v2980_v24  ;;  %v6355_v62 = vpop.f32.mrb[182].mxu0 }
 0x43c   : > { %v8426_v1 = vpack.c.bf16 %v3162_v57, %v3161_v48  ;;  %v3097_v21 = vadd.f32 %v8083_v12, %v2989_v39  ;;  %v2992_v40 = vadd.f32 %v6355_v62, %v8353_v27  ;;  %v2983_v50 = vpop.f32.mrb[183].mxu0  ;;  %v6671_v12 = vld [vmem:[%s9380_s7 + $0xc8] sm:$0xff]   ;;  %v6673_v57 = vld [vmem:[%s9380_s7 + $0xd0] sm:$0xff]  }
 0x43d   : > { %v8430_v20 = vpack.c.bf16 %v3160_v37, %v3159_v23  ;;  %v3095_v34 = vadd.f32 %v8061_v19, %v2981_v58  ;;  %v2984_v18 = vadd.f32 %v8349_v49, %v2983_v50 }
 0x43e   : > { %v3133_v29 = vadd.f32 %v8411_v3, %v3097_v21  ;;  %v3098_v56 = vadd.f32 %v8095_v2, %v2992_v40  ;;  %v6672_v2 = vld [vmem:[%s9380_s7 + $0x88] sm:$0xff]  }
 0x43f   : > { %v3131_v27 = vadd.f32 %v8411_v3, %v3095_v34  ;;  %v3096_v8 = vadd.f32 %v8073_v41, %v2984_v18  ;;  %6384 = vmatprep.mubr.msk.bf16.mxu1 %vm2242_vm4, %v8430_v20  ;;  %v6674_v18 = vld [vmem:[%s9380_s7 + $0x90] sm:$0xff]  }
 0x440   : > { %v3134_v19 = vadd.f32 %v8411_v3, %v3098_v56  ;;  %6385 = vmatmul.mubr.msk.bf16.vlgmr.msra.gmra.mrb[208].mxu1 %vm2242_vm4, %v8426_v1  ;;  %v3165_v55 = vmax.f32 %v3133_v29, 0.0  ;;  %v6676_v56 = vld [vmem:[%s9380_s7 + $0x98] sm:$0xff]  }
 0x441   : > { %v3132_v49 = vadd.f32 %v8411_v3, %v3096_v8  ;;  %v6358_v14 = vpop.f32.mrb[184].mxu0  ;;  %6107 = vmatpush3.bf16.msra.mxu1 %v6670_v59  ;;  %v3163_v39 = vmax.f32 %v3131_v27, 0.0 }
 0x442   : > { %v3166_v30 = vmax.f32 %v3134_v19, 0.0  ;;  %v3005_v41 = vadd.f32 %v6358_v14, %v8359_v63  ;;  %v2996_v48 = vpop.f32.mrb[185].mxu0  ;;  %6108 = vmatprep.subr.bf16.mxu1 %v6671_v12  ;;  %v6677_v19 = vld [vmem:[%s9380_s7 + $0xe0] sm:$0xff]  }
 0x443   : > { %v3164_v24 = vmax.f32 %v3132_v49, 0.0  ;;  %v2997_v23 = vadd.f32 %v8355_v6, %v2996_v48  ;;  %v6359_v37 = vpop.f32.mrb[186].mxu0 }
 0x444   : > { %v8458_v58 = vpack.c.bf16 %v3166_v30, %v3165_v55  ;;  %v3101_v62 = vadd.f32 %v8127_v46, %v3005_v41  ;;  %v3008_v21 = vadd.f32 %v6359_v37, %v8361_v45  ;;  %v2999_v40 = vpop.f32.mrb[187].mxu0  ;;  %v6675_v46 = vld [vmem:[%s9380_s7 + $0xd8] sm:$0xff]  }
 0x445   : > { %v8462_v50 = vpack.c.bf16 %v3164_v24, %v3163_v39  ;;  %v3099_v63 = vadd.f32 %v8105_v36, %v2997_v23  ;;  %v3000_v34 = vadd.f32 %v8357_v53, %v2999_v40  ;;  %6109 = vmatpush3.bf16.msra.mxu1 %v6672_v2  ;;  %v6678_v23 = vld [vmem:[%s9380_s7 + $0xa0] sm:$0xff]  }
 0x446   : > { %v3137_v6 = vadd.f32 %v8411_v3, %v3101_v62  ;;  %v3102_v59 = vadd.f32 %v8139_v47, %v3008_v21  ;;  %6110 = vmatprep.subr.bf16.mxu1 %v6673_v57  ;;  %v6680_v21 = vld [vmem:[%s9380_s7 + $0xa8] sm:$0xff]  }
 0x447   : > { %v3135_v45 = vadd.f32 %v8411_v3, %v3099_v63  ;;  %v3100_v36 = vadd.f32 %v8117_v16, %v3000_v34  ;;  %6388 = vmatprep.mubr.msk.bf16.mxu1 %vm2242_vm4, %v8462_v50 }
 0x448   : > { %v3138_v53 = vadd.f32 %v8411_v3, %v3102_v59  ;;  %6389 = vmatmul.mubr.msk.bf16.gmra.mrb[212].mxu1 %vm2242_vm4, %v8458_v58  ;;  %v3169_v12 = vmax.f32 %v3137_v6, 0.0 }
 0x449   : > { %v3136_v29 = vadd.f32 %v8411_v3, %v3100_v36  ;;  %v6362_v47 = vpop.f32.mrb[188].mxu0  ;;  %6111 = vmatpush3.bf16.msra.mxu1 %v6674_v18  ;;  %v3167_v49 = vmax.f32 %v3135_v45, 0.0  ;;  %v6681_v18 = vld [vmem:[%s9380_s7 + $0xf0] sm:$0xff]  }
 0x44a   : > { %v3170_v27 = vmax.f32 %v3138_v53, 0.0  ;;  %v3021_v16 = vadd.f32 %v6362_v47, %v8370_v33  ;;  %v3012_v8 = vpop.f32.mrb[189].mxu0  ;;  %6112 = vmatprep.subr.bf16.mxu1 %v6675_v46 }
 0x44b   : > { %v3168_v14 = vmax.f32 %v3136_v29, 0.0  ;;  %v3013_v2 = vadd.f32 %v8366_v52, %v3012_v8  ;;  %v6363_v55 = vpop.f32.mrb[190].mxu0 }
 0x44c   : > { %v8490_v30 = vpack.c.bf16 %v3170_v27, %v3169_v12  ;;  %v3105_v41 = vadd.f32 %v8171_v11, %v3021_v16  ;;  %v3024_v48 = vadd.f32 %v6363_v55, %v8372_v0  ;;  %v3015_v57 = vpop.f32.mrb[191].mxu0  ;;  %v6679_v11 = vld [vmem:[%s9380_s7 + $0xe8] sm:$0xff]   ;;  %v6682_v27 = vld [vmem:[%s9380_s7 + $0xb0] sm:$0xff]  }
 0x44d   : > { %v8494_v39 = vpack.c.bf16 %v3168_v14, %v3167_v49  ;;  %v3103_v33 = vadd.f32 %v8149_v42, %v3013_v2  ;;  %v3016_v24 = vadd.f32 %v8368_v4, %v3015_v57  ;;  %6113 = vmatpush3.bf16.msra.mxu1 %v6676_v56 }
 0x44e   : > { %v3141_v52 = vadd.f32 %v8411_v3, %v3105_v41  ;;  %v3106_v37 = vadd.f32 %v8183_v31, %v3024_v48  ;;  %6114 = vmatprep.subr.bf16.mxu1 %v6677_v19  ;;  %v6684_v19 = vld [vmem:[%s9380_s7 + $0xb8] sm:$0xff]  }
 0x44f   : > { %v3139_v0 = vadd.f32 %v8411_v3, %v3103_v33  ;;  %v3104_v42 = vadd.f32 %v8161_v13, %v3016_v24  ;;  %6392 = vmatprep.mubr.msk.bf16.mxu1 %vm2242_vm4, %v8494_v39 }
 0x450   : > { %v3142_v4 = vadd.f32 %v8411_v3, %v3106_v37  ;;  %6393 = vmatmul.mubr.msk.bf16.gmra.mrb[216].mxu1 %vm2242_vm4, %v8490_v30  ;;  %v3173_v40 = vmax.f32 %v3141_v52, 0.0 }
 0x451   : > { %v3140_v62 = vadd.f32 %v8411_v3, %v3104_v42  ;;  %v6366_v31 = vpop.f32.mrb[192].mxu0  ;;  %6115 = vmatpush3.bf16.msra.mxu1 %v6678_v23  ;;  %v3171_v6 = vmax.f32 %v3139_v0, 0.0 }
 0x452   : > { %v3174_v63 = vmax.f32 %v3142_v4, 0.0  ;;  %v3037_v13 = vadd.f32 %v6366_v31, %v8378_v32  ;;  %v3028_v34 = vpop.f32.mrb[193].mxu0  ;;  %6116 = vmatprep.subr.bf16.mxu1 %v6679_v11  ;;  %v9893_v4 = vld [vmem:[#allocation42_spill] sm:$0xff] }
 0x453   : > { %v3172_v59 = vmax.f32 %v3140_v62, 0.0  ;;  %v3029_v46 = vadd.f32 %v8374_v15, %v3028_v34  ;;  %v6367_v45 = vpop.f32.mrb[194].mxu0  ;;  %v9895_v34 = vld [vmem:[#allocation59_spill] sm:$0xff] }
 0x454   : > { %v8522_v36 = vpack.c.bf16 %v3174_v63, %v3173_v40  ;;  %v3109_v53 = vadd.f32 %v8215_v60, %v3037_v13  ;;  %v3040_v29 = vadd.f32 %v6367_v45, %v8380_v43  ;;  %v3031_v47 = vpop.f32.mrb[195].mxu0  ;;  %v6683_v60 = vld [vmem:[%s9380_s7 + $0xf8] sm:$0xff]  }
 0x455   : > { %v8526_v56 = vpack.c.bf16 %v3172_v59, %v3171_v6  ;;  %v3107_v32 = vadd.f32 %v8193_v44, %v3029_v46  ;;  %v3032_v12 = vadd.f32 %v8376_v7, %v3031_v47  ;;  %6117 = vmatpush3.bf16.msra.mxu1 %v6680_v21  ;;  %v9894_v21 = vld [vmem:[#allocation66_spill] sm:$0xff] }
 0x456   : > { %v3145_v15 = vadd.f32 %v8411_v3, %v3109_v53  ;;  %v3110_v16 = vadd.f32 %v8227_v28, %v3040_v29  ;;  %6118 = vmatprep.subr.bf16.mxu1 %v6681_v18  ;;  %v9896_v46 = vld [vmem:[#allocation54_spill] sm:$0xff] }
 0x457   : > { %v3143_v43 = vadd.f32 %v8411_v3, %v3107_v32  ;;  %v3108_v44 = vadd.f32 %v8205_v9, %v3032_v12  ;;  %6396 = vmatprep.mubr.msk.bf16.mxu1 %vm2242_vm4, %v8526_v56  ;;  %v9897_v32 = vld [vmem:[#allocation47_spill] sm:$0xff] }
 0x458   : > { %v3146_v7 = vadd.f32 %v8411_v3, %v3110_v16  ;;  %6397 = vmatmul.mubr.msk.bf16.gmra.mrb[220].mxu1 %vm2242_vm4, %v8522_v36  ;;  %v3177_v49 = vmax.f32 %v3145_v15, 0.0 }
 0x459   : > { %v3144_v8 = vadd.f32 %v8411_v3, %v3108_v44  ;;  %v6370_v28 = vpop.f32.mrb[196].mxu0  ;;  %6119 = vmatpush3.bf16.msra.mxu1 %v6682_v27  ;;  %v3175_v55 = vmax.f32 %v3143_v43, 0.0  ;;  %v9898_v27 = vld [vmem:[#allocation57_spill] sm:$0xff] }
 0x45a   : > { %v3178_v14 = vmax.f32 %v3146_v7, 0.0  ;;  %v3053_v9 = vadd.f32 %v6370_v28, %v8386_v51  ;;  %v3044_v2 = vpop.f32.mrb[197].mxu0  ;;  %6120 = vmatprep.subr.bf16.mxu1 %v6683_v60  ;;  %v9899_v60 = vld [vmem:[#allocation52_spill] sm:$0xff]  ;;  %v9900_v7 = vld [vmem:[#allocation45_spill] sm:$0xff] }
 0x45b   : > { %v3176_v41 = vmax.f32 %v3144_v8, 0.0  ;;  %v3045_v48 = vadd.f32 %v8382_v5, %v3044_v2  ;;  %v6371_v57 = vpop.f32.mrb[198].mxu0 }
 0x45c   : > { %v8551_v33 = vpack.c.bf16 %v3178_v14, %v3177_v49  ;;  %v3113_v24 = vadd.f32 %v8259_v26, %v3053_v9  ;;  %v3056_v23 = vadd.f32 %v6371_v57, %v8388_v25  ;;  %v3047_v52 = vpop.f32.mrb[199].mxu0 }
 0x45d   : > { %v8555_v37 = vpack.c.bf16 %v3176_v41, %v3175_v55  ;;  %v3111_v11 = vadd.f32 %v8237_v35, %v3045_v48  ;;  %v3048_v51 = vadd.f32 %v8384_v17, %v3047_v52  ;;  %6121 = vmatpush3.bf16.msra.mxu1 %v6684_v19 }
 0x45e   : > { %v3149_v0 = vadd.f32 %v8411_v3, %v3113_v24  ;;  %v3114_v42 = vadd.f32 %v8271_v10, %v3056_v23  ;;  %v9901_v23 = vld [vmem:[#allocation60_spill] sm:$0xff] }
 0x45f   : > { %v3147_v5 = vadd.f32 %v8411_v3, %v3111_v11  ;;  %v3112_v62 = vadd.f32 %v9893_v4, %v3048_v51  ;;  %6400 = vmatprep.mubr.msk.bf16.mxu1 %vm2242_vm4, %v8555_v37  ;;  %v9903_v4 = vld [vmem:[#allocation64_spill] sm:$0xff] }
 0x460   : > { %v3150_v26 = vadd.f32 %v8411_v3, %v3114_v42  ;;  %6401 = vmatmul.mubr.msk.bf16.gmra.mrb[224].mxu1 %vm2242_vm4, %v8551_v33  ;;  %v3181_v25 = vmax.f32 %v3149_v0, 0.0  ;;  %v9902_v42 = vld [vmem:[#allocation53_spill] sm:$0xff] }
 0x461   : > { %v3148_v35 = vadd.f32 %v8411_v3, %v3112_v62  ;;  %v6374_v17 = vpop.f32.mrb[200].mxu0  ;;  %v3179_v63 = vmax.f32 %v3147_v5, 0.0 }
 0x462   : > { %v3182_v31 = vmax.f32 %v3150_v26, 0.0  ;;  %v3069_v40 = vadd.f32 %v6374_v17, %v9894_v21  ;;  %v3060_v10 = vpop.f32.mrb[201].mxu0  ;;  %v9904_v26 = vld [vmem:[#allocation58_spill] sm:$0xff]  ;;  %v9905_v17 = vld [vmem:[#allocation51_spill] sm:$0xff] }
 0x463   : > { %v3180_v13 = vmax.f32 %v3148_v35, 0.0  ;;  %v3061_v18 = vadd.f32 %v9895_v34, %v3060_v10  ;;  %v6375_v6 = vpop.f32.mrb[202].mxu0 }
 0x464   : > { %v8571_v59 = vpack.c.bf16 %v3182_v31, %v3181_v25  ;;  %v3117_v45 = vadd.f32 %v9896_v46, %v3069_v40  ;;  %v3072_v53 = vadd.f32 %v6375_v6, %v8396_v54  ;;  %v3063_v29 = vpop.f32.mrb[203].mxu0  ;;  %v9907_v6 = vld [vmem:[#allocation101_spill] sm:$0xff]  ;;  %v9908_v46 = vld [vmem:[#allocation104_spill] sm:$0xff] }
 0x465   : > { %v8575_v47 = vpack.c.bf16 %v3180_v13, %v3179_v63  ;;  %v3115_v12 = vadd.f32 %v9897_v32, %v3061_v18  ;;  %v3064_v15 = vadd.f32 %v9898_v27, %v3063_v29  ;;  %v9906_v18 = vld [vmem:[#allocation102_spill] sm:$0xff]  ;;  %v9912_v29 = vld [vmem:[#allocation108_spill] sm:$0xff]  ;;  %v9913_v32 = vld [vmem:[#allocation107_spill] sm:$0xff] }
 0x466   : > { %v3153_v16 = vadd.f32 %v8411_v3, %v3117_v45  ;;  %v3118_v43 = vadd.f32 %v9899_v60, %v3072_v53  ;;  %v9910_v45 = vld [vmem:[#allocation106_spill] sm:$0xff]  ;;  %v9911_v53 = vld [vmem:[#allocation105_spill] sm:$0xff] }
 0x467   : > { %v3151_v44 = vadd.f32 %v8411_v3, %v3115_v12  ;;  %v3116_v8 = vadd.f32 %v9900_v7, %v3064_v15  ;;  %6404 = vmatprep.mubr.msk.bf16.mxu1 %vm2242_vm4, %v8575_v47  ;;  %v9914_v12 = vld [vmem:[#allocation110_spill] sm:$0xff]  ;;  %v9915_v27 = vld [vmem:[#allocation109_spill] sm:$0xff]  ;;  %v9916_v15 = vld [vmem:[#allocation112_spill] sm:$0xff] }
 0x468   : > { %v3154_v54 = vadd.f32 %v8411_v3, %v3118_v43  ;;  %6405 = vmatmul.mubr.msk.bf16.gmra.mrb[228].mxu1 %vm2242_vm4, %v8571_v59  ;;  %v3185_v49 = vmax.f32 %v3153_v16, 0.0  ;;  %v9917_v16 = vld [vmem:[#allocation111_spill] sm:$0xff]  ;;  %v9918_v60 = vld [vmem:[#allocation114_spill] sm:$0xff]  ;;  %v9919_v43 = vld [vmem:[#allocation113_spill] sm:$0xff] }
 0x469   : > { %v3152_v28 = vadd.f32 %v8411_v3, %v3116_v8  ;;  %v6378_v19 = vpop.f32.mrb[204].mxu0  ;;  %v3183_v55 = vmax.f32 %v3151_v44, 0.0  ;;  %v9920_v44 = vld [vmem:[#allocation116_spill] sm:$0xff]  ;;  %v9921_v7 = vld [vmem:[#allocation115_spill] sm:$0xff]  ;;  %v9922_v8 = vld [vmem:[#allocation118_spill] sm:$0xff] }
 0x46a   : > { %v3186_v14 = vmax.f32 %v3154_v54, 0.0  ;;  %v3085_v9 = vadd.f32 %v6378_v19, %v8402_v61  ;;  %v3076_v2 = vpop.f32.mrb[205].mxu0  ;;  %v9923_v54 = vld [vmem:[#allocation117_spill] sm:$0xff]  ;;  %v9925_v19 = vld [vmem:[#allocation119_spill] sm:$0xff] }
 0x46b   : > { %v3184_v41 = vmax.f32 %v3152_v28, 0.0  ;;  %v3077_v48 = vadd.f32 %v8398_v38, %v3076_v2  ;;  %v6379_v57 = vpop.f32.mrb[206].mxu0  ;;  %v9924_v28 = vld [vmem:[#allocation120_spill] sm:$0xff]  ;;  %v9929_v2 = vld [vmem:[#allocation34_spill] sm:$0xff] }
 0x46c   : > { %v8591_v24 = vpack.c.bf16 %v3186_v14, %v3185_v49  ;;  %v3121_v52 = vadd.f32 %v9901_v23, %v3085_v9  ;;  %v3088_v11 = vadd.f32 %v6379_v57, %v8404_v22  ;;  %v3079_v51 = vpop.f32.mrb[207].mxu0  ;;  %v9926_v49 = vld [vmem:[#allocation28_spill] sm:$0xff]  ;;  %v9928_v9 = vld [vmem:[#allocation30_spill] sm:$0xff]  ;;  %v9933_v57 = vld [vmem:[#allocation43_spill] sm:$0xff] }
 0x46d   : > { %v8595_v0 = vpack.c.bf16 %v3184_v41, %v3183_v55  ;;  %v3119_v5 = vadd.f32 %v9902_v42, %v3077_v48  ;;  %v3080_v62 = vadd.f32 %v9903_v4, %v3079_v51  ;;  %v9927_v14 = vld [vmem:[#allocation32_spill] sm:$0xff]  ;;  %v9930_v55 = vld [vmem:[#allocation37_spill] sm:$0xff]  ;;  %v9932_v48 = vld [vmem:[#allocation39_spill] sm:$0xff] }
 0x46e   : > { %v3157_v61 = vadd.f32 %v8411_v3, %v3121_v52  ;;  %v3122_v35 = vadd.f32 %v9904_v26, %v3088_v11  ;;  %v9931_v41 = vld [vmem:[#allocation41_spill] sm:$0xff]  ;;  %v9934_v23 = vld [vmem:[#allocation2_spill] sm:$0xff]  ;;  %v9935_v52 = vld [vmem:[#allocation4_spill] sm:$0xff] }
 0x46f   : > { %v3155_v38 = vadd.f32 %v8411_v3, %v3119_v5  ;;  %v3120_v25 = vadd.f32 %v9905_v17, %v3080_v62  ;;  %6408 = vmatprep.mubr.msk.bf16.mxu1 %vm2242_vm4, %v8595_v0  ;;  %v9936_v11 = vld [vmem:[#allocation3_spill] sm:$0xff]  ;;  %v9937_v51 = vld [vmem:[#allocation5_spill] sm:$0xff] }
 0x470   : > { %v3158_v22 = vadd.f32 %v8411_v3, %v3122_v35  ;;  %6409 = vmatmul.mubr.msk.bf16.gmra.mrb[232].mxu1 %vm2242_vm4, %v8591_v24  ;;  %v3189_v21 = vmax.f32 %v3157_v61, 0.0 }
 0x471   : > { %v3156_v31 = vadd.f32 %v8411_v3, %v3120_v25  ;;  %v3187_v10 = vmax.f32 %v3155_v38, 0.0  ;;  %v9909_v3 = vld [vmem:[#allocation103_spill] sm:$0xff] }
 0x472   : > { %v3190_v40 = vmax.f32 %v3158_v22, 0.0 }
 0x473   : > { %v3188_v63 = vmax.f32 %v3156_v31, 0.0 }
 0x474   : > { %v8609_v13 = vpack.c.bf16 %v3190_v40, %v3189_v21 }
 0x475   : > { %v8611_v34 = vpack.c.bf16 %v3188_v63, %v3187_v10 }
 0x477   : > { %6412 = vmatprep.mubr.msk.bf16.mxu1 %vm2242_vm4, %v8611_v34 }
 0x478   : > { %6413 = vmatmul.mubr.msk.bf16.gmra.mrb[236].mxu1 %vm2242_vm4, %v8609_v13 }
 0x479   : > { %3776 = vmatprep.mubr.bf16.mxu1 %v9906_v18 }
 0x480   : > { %3777 = vmatmul.mubr.bf16.vlgmr.msra.gmra.mrb[240].mxu1 %v9907_v6 }
 0x481   : > { %3784 = vmatprep.mubr.bf16.mxu1 %v9908_v46 }
 0x488   : > { %3785 = vmatmul.mubr.bf16.gmra.mrb[244].mxu1 %v9909_v3 }
 0x489   : > { %3792 = vmatprep.mubr.bf16.mxu1 %v9910_v45 }
 0x490   : > { %3793 = vmatmul.mubr.bf16.gmra.mrb[248].mxu1 %v9911_v53 }
 0x491   : > { %3800 = vmatprep.mubr.bf16.mxu1 %v9912_v29 }
 0x498   : > { %3801 = vmatmul.mubr.bf16.gmra.mrb[252].mxu1 %v9913_v32 }
 0x499   : > { %3808 = vmatprep.mubr.bf16.mxu1 %v9914_v12 }
 0x4a0   : > { %3809 = vmatmul.mubr.bf16.gmra.mrb[0].mxu1 %v9915_v27 }
 0x4a1   : > { %3816 = vmatprep.mubr.bf16.mxu1 %v9916_v15 }
 0x4a8   : > { %3817 = vmatmul.mubr.bf16.gmra.mrb[4].mxu1 %v9917_v16 }
 0x4a9   : > { %3824 = vmatprep.mubr.bf16.mxu1 %v9918_v60 }
 0x4b0   : > { %3825 = vmatmul.mubr.bf16.gmra.mrb[8].mxu1 %v9919_v43 }
 0x4b1   : > { %3832 = vmatprep.mubr.bf16.mxu1 %v9920_v44 }
 0x4b8   : > { %3833 = vmatmul.mubr.bf16.gmra.mrb[12].mxu1 %v9921_v7 }
 0x4b9   : > { %3840 = vmatprep.mubr.bf16.mxu1 %v9922_v8 }
 0x4c0   : > { %3841 = vmatmul.mubr.bf16.gmra.mrb[16].mxu1 %v9923_v54 }
 0x4c1   : > { %3848 = vmatprep.mubr.bf16.mxu1 %v9924_v28 }
 0x4c8   : > { %3849 = vmatmul.mubr.bf16.gmra.mrb[20].mxu1 %v9925_v19 }
 0x4c9   : > { %3856 = vmatprep.mubr.bf16.mxu1 %v9926_v49 }
 0x4d0   : > { %3857 = vmatmul.mubr.bf16.gmra.mrb[24].mxu1 %v9927_v14 }
 0x4d1   : > { %3864 = vmatprep.mubr.bf16.mxu1 %v9928_v9 }
 0x4d8   : > { %3865 = vmatmul.mubr.bf16.gmra.mrb[28].mxu1 %v9929_v2 }
 0x4d9   : > { %3872 = vmatprep.mubr.bf16.mxu1 %v9930_v55 }
 0x4e0   : > { %3873 = vmatmul.mubr.bf16.gmra.mrb[32].mxu1 %v9931_v41 }
 0x4e1   : > { %3880 = vmatprep.mubr.bf16.mxu1 %v9932_v48 }
 0x4e8   : > { %3881 = vmatmul.mubr.bf16.gmra.mrb[36].mxu1 %v9933_v57 }
 0x4e9   : > { %3888 = vmatprep.mubr.bf16.mxu1 %v9934_v23 }
 0x4f0   : > { %3889 = vmatmul.mubr.bf16.gmra.mrb[40].mxu1 %v9935_v52 }
 0x4f1   : > { %3896 = vmatprep.mubr.bf16.mxu1 %v9936_v11 }
 0x4f8   : > { %3897 = vmatmul.mubr.bf16.gmra.mrb[44].mxu1 %v9937_v51 }
 0x513   : > { %v6386_v42 = vpop.f32.mrb[208].mxu1 }
 0x514   : > { %v3311_v5 = vpop.f32.mrb[209].mxu1 }
 0x515   : > { %v6387_v4 = vpop.f32.mrb[210].mxu1 }
 0x516   : > { %v3439_v62 = vpack.c.bf16 %v6387_v4, %v6386_v42  ;;  %v3314_v61 = vpop.f32.mrb[211].mxu1 }
 0x517   : > { %v3438_v26 = vpack.c.bf16 %v3314_v61, %v3311_v5  ;;  %v6685_v5 = vld [vmem:[%s9378_s5 + $0x10] sm:$0xff]  }
 0x51b   : > { %v6390_v35 = vpop.f32.mrb[212].mxu1 }
 0x51c   : > { %v3327_v38 = vpop.f32.mrb[213].mxu1 }
 0x51d   : > { %v6391_v17 = vpop.f32.mrb[214].mxu1 }
 0x51e   : > { %v3441_v25 = vpack.c.bf16 %v6391_v17, %v6390_v35  ;;  %v3330_v22 = vpop.f32.mrb[215].mxu1  ;;  %v9938_v17 = vld [vmem:[#allocation8_spill] sm:$0xff] }
 0x51f   : > { %v3440_v31 = vpack.c.bf16 %v3330_v22, %v3327_v38  ;;  %v6686_v38 = vld [vmem:[%s9378_s5 + $0x18] sm:$0xff]  }
 0x523   : > { %v6394_v21 = vpop.f32.mrb[216].mxu1 }
 0x524   : > { %v3343_v40 = vpop.f32.mrb[217].mxu1 }
 0x525   : > { %v6395_v10 = vpop.f32.mrb[218].mxu1 }
 0x526   : > { %v3443_v63 = vpack.c.bf16 %v6395_v10, %v6394_v21  ;;  %v3346_v18 = vpop.f32.mrb[219].mxu1 }
 0x527   : > { %v3442_v6 = vpack.c.bf16 %v3346_v18, %v3343_v40  ;;  %v9940_v18 = vld [vmem:[#allocation9_spill] sm:$0xff] }
 0x52b   : > { %v6398_v46 = vpop.f32.mrb[220].mxu1 }
 0x52c   : > { %v3359_v3 = vpop.f32.mrb[221].mxu1 }
 0x52d   : > { %v6399_v45 = vpop.f32.mrb[222].mxu1 }
 0x52e   : > { %v3445_v53 = vpack.c.bf16 %v6399_v45, %v6398_v46  ;;  %v3362_v29 = vpop.f32.mrb[223].mxu1 }
 0x52f   : > { %v3444_v32 = vpack.c.bf16 %v3362_v29, %v3359_v3 }
 0x533   : > { %v6402_v12 = vpop.f32.mrb[224].mxu1 }
 0x534   : > { %v3375_v27 = vpop.f32.mrb[225].mxu1 }
 0x535   : > { %v6403_v15 = vpop.f32.mrb[226].mxu1 }
 0x536   : > { %v3447_v16 = vpack.c.bf16 %v6403_v15, %v6402_v12  ;;  %v3378_v60 = vpop.f32.mrb[227].mxu1  ;;  %v9942_v12 = vld [vmem:[#allocation12_spill] sm:$0xff] }
 0x537   : > { %v3446_v43 = vpack.c.bf16 %v3378_v60, %v3375_v27  ;;  %v9943_v27 = vld [vmem:[#allocation10_spill] sm:$0xff] }
 0x539   : > { %5994 = vmatprep.subr.bf16.mxu0 %v3446_v43 }
 0x53a   : > { %5995 = vmatpush3.bf16.msra.mxu0 %v3438_v26 }
 0x53b   : > { %v6406_v44 = vpop.f32.mrb[228].mxu1  ;;  %5996 = vmatprep.subr.bf16.mxu0 %v3447_v16 }
 0x53c   : > { %v3391_v7 = vpop.f32.mrb[229].mxu1 }
 0x53d   : > { %v6407_v8 = vpop.f32.mrb[230].mxu1 }
 0x53e   : > { %v3449_v54 = vpack.c.bf16 %v6407_v8, %v6406_v44  ;;  %v3394_v28 = vpop.f32.mrb[231].mxu1  ;;  %5997 = vmatpush3.bf16.msra.mxu0 %v3439_v62  ;;  %v9944_v8 = vld [vmem:[#allocation13_spill] sm:$0xff] }
 0x53f   : > { %v3448_v19 = vpack.c.bf16 %v3394_v28, %v3391_v7 }
 0x541   : > { %5998 = vmatprep.subr.bf16.mxu0 %v3448_v19 }
 0x542   : > { %5999 = vmatpush3.bf16.msra.mxu0 %v3440_v31 }
 0x543   : > { %v6410_v49 = vpop.f32.mrb[232].mxu1  ;;  %6000 = vmatprep.subr.bf16.mxu0 %v3449_v54  ;;  %v9945_v54 = vld [vmem:[#allocation11_spill] sm:$0xff] }
 0x544   : > { %v3407_v14 = vpop.f32.mrb[233].mxu1 }
 0x545   : > { %v6411_v9 = vpop.f32.mrb[234].mxu1 }
 0x546   : > { %v3451_v2 = vpack.c.bf16 %v6411_v9, %v6410_v49  ;;  %v3410_v55 = vpop.f32.mrb[235].mxu1  ;;  %6001 = vmatpush3.bf16.msra.mxu0 %v3441_v25  ;;  %v9939_v25 = vld [vmem:[#allocation6_spill] sm:$0xff] }
 0x547   : > { %v3450_v41 = vpack.c.bf16 %v3410_v55, %v3407_v14  ;;  %v9946_v55 = vld [vmem:[#allocation16_spill] sm:$0xff] }
 0x549   : > { %6002 = vmatprep.subr.bf16.mxu0 %v3450_v41  ;;  %v9947_v41 = vld [vmem:[#allocation14_spill] sm:$0xff] }
 0x54a   : > { %6003 = vmatpush3.bf16.msra.mxu0 %v3442_v6  ;;  %v9941_v6 = vld [vmem:[#allocation7_spill] sm:$0xff] }
 0x54b   : > { %v6414_v48 = vpop.f32.mrb[236].mxu1  ;;  %6004 = vmatprep.subr.bf16.mxu0 %v3451_v2 }
 0x54c   : > { %v3423_v57 = vpop.f32.mrb[237].mxu1 }
 0x54d   : > { %v6415_v23 = vpop.f32.mrb[238].mxu1 }
 0x54e   : > { %v3453_v52 = vpack.c.bf16 %v6415_v23, %v6414_v48  ;;  %v3426_v11 = vpop.f32.mrb[239].mxu1  ;;  %6005 = vmatpush3.bf16.msra.mxu0 %v3443_v63 }
 0x54f   : > { %v3452_v51 = vpack.c.bf16 %v3426_v11, %v3423_v57 }
 0x551   : > { %6006 = vmatprep.subr.bf16.mxu0 %v3452_v51 }
 0x552   : > { %6007 = vmatpush3.bf16.msra.mxu0 %v3444_v32 }
 0x553   : > { %6008 = vmatprep.subr.bf16.mxu0 %v3453_v52  ;;  %v6122_v42 = vpop.f32.mrb[240].mxu1 }
 0x554   : > { %v6123_v4 = vpop.f32.mrb[241].mxu1 }
 0x555   : > { %v8652_v62 = vadd.f32 %v6123_v4, %v6122_v42  ;;  %v6125_v61 = vpop.f32.mrb[242].mxu1  ;;  %v9948_v42 = vld [vmem:[#allocation17_spill] sm:$0xff] }
 0x556   : > { %6009 = vmatpush3.bf16.msra.mxu0 %v3445_v53  ;;  %v6126_v26 = vpop.f32.mrb[243].mxu1 }
 0x557   : > { %v8654_v35 = vadd.f32 %v6126_v26, %v6125_v61  ;;  %6416 = vmatprep.subr.bf16.mxu0 %v6685_v5 }
 0x559   : > { %3487 = vmatmul.mubr.bf16.vlgmr.msra.gmra.mrb[208].mxu0 %v9938_v17 }
 0x55a   : > { %3494 = vmatprep.mubr.bf16.mxu0 %v9939_v25  ;;  %6417 = vmatpush3.bf16.msra.mxu0 %v6685_v5  ;;  %v9949_v5 = vld [vmem:[#allocation15_spill] sm:$0xff] }
 0x55b   : > { %v6128_v22 = vpop.f32.mrb[244].mxu1  ;;  %6418 = vmatprep.subr.bf16.mxu0 %v6686_v38 }
 0x55c   : > { %v6129_v31 = vpop.f32.mrb[245].mxu1 }
 0x55d   : > { %v8661_v21 = vadd.f32 %v6129_v31, %v6128_v22  ;;  %v6131_v40 = vpop.f32.mrb[246].mxu1  ;;  %v9950_v22 = vld [vmem:[#allocation19_spill] sm:$0xff]  ;;  %v9951_v31 = vld [vmem:[#allocation18_spill] sm:$0xff] }
 0x55e   : > { %v6132_v10 = vpop.f32.mrb[247].mxu1  ;;  %6419 = vmatpush3.bf16.msra.mxu0 %v6686_v38 }
 0x55f   : > { %v8663_v63 = vadd.f32 %v6132_v10, %v6131_v40 }
 0x561   : > { %3495 = vmatmul.mubr.bf16.gmra.mrb[212].mxu0 %v9940_v18 }
 0x562   : > { %3502 = vmatprep.mubr.bf16.mxu0 %v9941_v6 }
 0x563   : > { %v6134_v46 = vpop.f32.mrb[248].mxu1 }
 0x564   : > { %v6135_v3 = vpop.f32.mrb[249].mxu1 }
 0x565   : > { %v8667_v45 = vadd.f32 %v6135_v3, %v6134_v46  ;;  %v6137_v53 = vpop.f32.mrb[250].mxu1 }
 0x566   : > { %v6138_v29 = vpop.f32.mrb[251].mxu1 }
 0x567   : > { %v8669_v32 = vadd.f32 %v6138_v29, %v6137_v53  ;;  %v9952_v53 = vld [vmem:[#allocation23_spill] sm:$0xff]  ;;  %v9953_v29 = vld [vmem:[#allocation21_spill] sm:$0xff] }
 0x569   : > { %3503 = vmatmul.mubr.bf16.gmra.mrb[216].mxu0 %v9942_v12 }
 0x56a   : > { %3510 = vmatprep.mubr.bf16.mxu0 %v9943_v27 }
 0x56b   : > { %v6140_v15 = vpop.f32.mrb[252].mxu1 }
 0x56c   : > { %v6141_v16 = vpop.f32.mrb[253].mxu1 }
 0x56d   : > { %v8673_v60 = vadd.f32 %v6141_v16, %v6140_v15  ;;  %v6143_v43 = vpop.f32.mrb[254].mxu1 }
 0x56e   : > { %v6144_v44 = vpop.f32.mrb[255].mxu1 }
 0x56f   : > { %v8675_v7 = vadd.f32 %v6144_v44, %v6143_v43 }
 0x571   : > { %3511 = vmatmul.mubr.bf16.gmra.mrb[220].mxu0 %v9944_v8  ;;  %v9954_v8 = vld [vmem:[#allocation22_spill] sm:$0xff] }
 0x572   : > { %3518 = vmatprep.mubr.bf16.mxu0 %v9945_v54  ;;  %v9955_v54 = vld [vmem:[#allocation20_spill] sm:$0xff] }
 0x573   : > { %v6146_v28 = vpop.f32.mrb[0].mxu1 }
 0x574   : > { %v6147_v19 = vpop.f32.mrb[1].mxu1 }
 0x575   : > { %v8679_v49 = vadd.f32 %v6147_v19, %v6146_v28  ;;  %v6149_v14 = vpop.f32.mrb[2].mxu1 }
 0x576   : > { %v6150_v9 = vpop.f32.mrb[3].mxu1 }
 0x577   : > { %v8681_v2 = vadd.f32 %v6150_v9, %v6149_v14 }
 0x579   : > { %3519 = vmatmul.mubr.bf16.gmra.mrb[224].mxu0 %v9946_v55 }
 0x57a   : > { %3526 = vmatprep.mubr.bf16.mxu0 %v9947_v41 }
 0x57b   : > { %v6152_v48 = vpop.f32.mrb[4].mxu1 }
 0x57c   : > { %v6153_v57 = vpop.f32.mrb[5].mxu1 }
 0x57d   : > { %v8685_v23 = vadd.f32 %v6153_v57, %v6152_v48  ;;  %v6155_v52 = vpop.f32.mrb[6].mxu1  ;;  %v9956_v48 = vld [vmem:[#allocation27_spill] sm:$0xff]  ;;  %v9957_v57 = vld [vmem:[#allocation25_spill] sm:$0xff] }
 0x57e   : > { %v6156_v11 = vpop.f32.mrb[7].mxu1 }
 0x57f   : > { %v8687_v51 = vadd.f32 %v6156_v11, %v6155_v52 }
 0x581   : > { %3527 = vmatmul.mubr.bf16.gmra.mrb[228].mxu0 %v9948_v42 }
 0x582   : > { %3534 = vmatprep.mubr.bf16.mxu0 %v9949_v5 }
 0x583   : > { %v6158_v4 = vpop.f32.mrb[8].mxu1 }
 0x584   : > { %v6159_v61 = vpop.f32.mrb[9].mxu1 }
 0x585   : > { %v8691_v26 = vadd.f32 %v6159_v61, %v6158_v4  ;;  %v6161_v38 = vpop.f32.mrb[10].mxu1 }
 0x586   : > { %v6162_v17 = vpop.f32.mrb[11].mxu1 }
 0x587   : > { %v8693_v25 = vadd.f32 %v6162_v17, %v6161_v38  ;;  %v9959_v38 = vld [vmem:[#allocation26_spill] sm:$0xff]  ;;  %v9960_v17 = vld [vmem:[#allocation24_spill] sm:$0xff] }
 0x589   : > { %3535 = vmatmul.mubr.bf16.gmra.mrb[232].mxu0 %v9950_v22 }
 0x58a   : > { %3542 = vmatprep.mubr.bf16.mxu0 %v9951_v31 }
 0x58b   : > { %v6164_v40 = vpop.f32.mrb[12].mxu1 }
 0x58c   : > { %v6165_v10 = vpop.f32.mrb[13].mxu1 }
 0x58d   : > { %v8697_v18 = vadd.f32 %v6165_v10, %v6164_v40  ;;  %v6167_v6 = vpop.f32.mrb[14].mxu1 }
 0x58e   : > { %v6168_v46 = vpop.f32.mrb[15].mxu1 }
 0x58f   : > { %v8699_v3 = vadd.f32 %v6168_v46, %v6167_v6 }
 0x591   : > { %3543 = vmatmul.mubr.bf16.gmra.mrb[236].mxu0 %v9952_v53  ;;  %v9961_v53 = vld [vmem:[#allocation35_spill] sm:$0xff] }
 0x592   : > { %3550 = vmatprep.mubr.bf16.mxu0 %v9953_v29  ;;  %v9962_v29 = vld [vmem:[#allocation31_spill] sm:$0xff] }
 0x593   : > { %v6170_v12 = vpop.f32.mrb[16].mxu1 }
 0x594   : > { %v6171_v27 = vpop.f32.mrb[17].mxu1 }
 0x595   : > { %v8703_v15 = vadd.f32 %v6171_v27, %v6170_v12  ;;  %v6173_v16 = vpop.f32.mrb[18].mxu1 }
 0x596   : > { %v6174_v43 = vpop.f32.mrb[19].mxu1 }
 0x597   : > { %v8705_v44 = vadd.f32 %v6174_v43, %v6173_v16 }
 0x599   : > { %3551 = vmatmul.mubr.bf16.gmra.mrb[240].mxu0 %v9954_v8 }
 0x59a   : > { %3558 = vmatprep.mubr.bf16.mxu0 %v9955_v54 }
 0x59b   : > { %v6176_v28 = vpop.f32.mrb[20].mxu1 }
 0x59c   : > { %v6177_v19 = vpop.f32.mrb[21].mxu1 }
 0x59d   : > { %v8709_v14 = vadd.f32 %v6177_v19, %v6176_v28  ;;  %v6179_v9 = vpop.f32.mrb[22].mxu1  ;;  %v9965_v28 = vld [vmem:[#allocation33_spill] sm:$0xff] }
 0x59e   : > { %v6180_v55 = vpop.f32.mrb[23].mxu1  ;;  %v9966_v19 = vld [vmem:[#allocation29_spill] sm:$0xff] }
 0x59f   : > { %v8711_v41 = vadd.f32 %v6180_v55, %v6179_v9 }
 0x5a1   : > { %3559 = vmatmul.mubr.bf16.gmra.mrb[244].mxu0 %v9956_v48 }
 0x5a2   : > { %3566 = vmatprep.mubr.bf16.mxu0 %v9957_v57 }
 0x5a3   : > { %v6182_v52 = vpop.f32.mrb[24].mxu1 }
 0x5a4   : > { %v6183_v11 = vpop.f32.mrb[25].mxu1 }
 0x5a5   : > { %v8715_v42 = vadd.f32 %v6183_v11, %v6182_v52  ;;  %v6185_v5 = vpop.f32.mrb[26].mxu1 }
 0x5a6   : > { %v6186_v4 = vpop.f32.mrb[27].mxu1 }
 0x5a7   : > { %v8717_v61 = vadd.f32 %v6186_v4, %v6185_v5  ;;  %v9969_v5 = vld [vmem:[#allocation44_spill] sm:$0xff] }
 0x5a8   : > { %v9970_v4 = vld [vmem:[#allocation40_spill] sm:$0xff] }
 0x5a9   : > { %9958 = vst [vmem:[#allocation65_spill] sm:$0xff] %v8717_v61  ;;  %3567 = vmatmul.mubr.bf16.gmra.mrb[248].mxu0 %v9959_v38 }
 0x5aa   : > { %3574 = vmatprep.mubr.bf16.mxu0 %v9960_v17 }
 0x5ab   : > { %v6188_v22 = vpop.f32.mrb[28].mxu1 }
 0x5ac   : > { %v6189_v31 = vpop.f32.mrb[29].mxu1 }
 0x5ad   : > { %v8721_v40 = vadd.f32 %v6189_v31, %v6188_v22  ;;  %v6191_v10 = vpop.f32.mrb[30].mxu1 }
 0x5ae   : > { %v6192_v6 = vpop.f32.mrb[31].mxu1 }
 0x5af   : > { %v8723_v46 = vadd.f32 %v6192_v6, %v6191_v10 }
 0x5b1   : > { %3575 = vmatmul.mubr.bf16.gmra.mrb[252].mxu0 %v9961_v53  ;;  %v9973_v53 = vld [vmem:[#allocation38_spill] sm:$0xff] }
 0x5b2   : > { %3582 = vmatprep.mubr.bf16.mxu0 %v9962_v29  ;;  %v9974_v29 = vld [vmem:[#allocation48_spill] sm:$0xff] }
 0x5b3   : > { %v6194_v12 = vpop.f32.mrb[32].mxu1 }
 0x5b4   : > { %v6195_v27 = vpop.f32.mrb[33].mxu1 }
 0x5b5   : > { %v8727_v16 = vadd.f32 %v6195_v27, %v6194_v12  ;;  %v6197_v43 = vpop.f32.mrb[34].mxu1 }
 0x5b6   : > { %v6198_v8 = vpop.f32.mrb[35].mxu1 }
 0x5b7   : > { %9963 = vst [vmem:[#allocation63_spill] sm:$0xff] %v8727_v16  ;;  %v8729_v54 = vadd.f32 %v6198_v8, %v6197_v43 }
 0x5b9   : > { %9964 = vst [vmem:[#allocation72_spill] sm:$0xff] %v8729_v54  ;;  %3583 = vmatmul.mubr.bf16.gmra.mrb[0].mxu0 %v9965_v28 }
 0x5ba   : > { %3590 = vmatprep.mubr.bf16.mxu0 %v9966_v19 }
 0x5bb   : > { %v6200_v9 = vpop.f32.mrb[36].mxu1 }
 0x5bc   : > { %v6201_v55 = vpop.f32.mrb[37].mxu1 }
 0x5bd   : > { %v8733_v48 = vadd.f32 %v6201_v55, %v6200_v9  ;;  %v6203_v57 = vpop.f32.mrb[38].mxu1  ;;  %v9977_v9 = vld [vmem:[#allocation46_spill] sm:$0xff] }
 0x5be   : > { %v6204_v52 = vpop.f32.mrb[39].mxu1  ;;  %v6687_v55 = vld [vmem:[%s9381_s8] sm:$0xff]  }
 0x5bf   : > { %9967 = vst [vmem:[#allocation70_spill] sm:$0xff] %v8733_v48  ;;  %v8735_v11 = vadd.f32 %v6204_v52, %v6203_v57  ;;  %6452 = vmatprep.subr.bf16.mxu1 %v6687_v55 }
 0x5c0   : > { %6453 = vmatpush3.bf16.msra.mxu1 %v6687_v55 }
 0x5c1   : > { %9968 = vst [vmem:[#allocation71_spill] sm:$0xff] %v8735_v11  ;;  %3591 = vmatmul.mubr.bf16.gmra.mrb[4].mxu0 %v9969_v5 }
 0x5c2   : > { %3598 = vmatprep.mubr.bf16.mxu0 %v9970_v4 }
 0x5c3   : > { %v6206_v38 = vpop.f32.mrb[40].mxu1 }
 0x5c4   : > { %v6207_v17 = vpop.f32.mrb[41].mxu1 }
 0x5c5   : > { %v8739_v22 = vadd.f32 %v6207_v17, %v6206_v38  ;;  %v6209_v31 = vpop.f32.mrb[42].mxu1 }
 0x5c6   : > { %v6210_v10 = vpop.f32.mrb[43].mxu1 }
 0x5c7   : > { %9971 = vst [vmem:[#allocation69_spill] sm:$0xff] %v8739_v22  ;;  %v8741_v6 = vadd.f32 %v6210_v10, %v6209_v31 }
 0x5c9   : > { %9972 = vst [vmem:[#allocation78_spill] sm:$0xff] %v8741_v6  ;;  %3599 = vmatmul.mubr.bf16.gmra.mrb[8].mxu0 %v9973_v53 }
 0x5ca   : > { %3606 = vmatprep.mubr.bf16.mxu0 %v9974_v29 }
 0x5cb   : > { %v6212_v12 = vpop.f32.mrb[44].mxu1 }
 0x5cc   : > { %v6213_v27 = vpop.f32.mrb[45].mxu1 }
 0x5cd   : > { %v8745_v43 = vadd.f32 %v6213_v27, %v6212_v12  ;;  %v6215_v8 = vpop.f32.mrb[46].mxu1 }
 0x5ce   : > { %v6216_v28 = vpop.f32.mrb[47].mxu1 }
 0x5cf   : > { %9975 = vst [vmem:[#allocation76_spill] sm:$0xff] %v8745_v43  ;;  %v8747_v19 = vadd.f32 %v6216_v28, %v6215_v8 }
 0x5d1   : > { %9976 = vst [vmem:[#allocation77_spill] sm:$0xff] %v8747_v19  ;;  %3607 = vmatmul.mubr.bf16.gmra.mrb[12].mxu0 %v9977_v9 }
 0x5d2   : > { %6420 = vmatprep.mubr.msk.bf16.mxu0 %vm2242_vm4, %v8430_v20 }
 0x5d9   : > { %6421 = vmatmul.mubr.msk.bf16.vlgmr.msra.gmra.mrb[16].mxu0 %vm2242_vm4, %v8426_v1  ;;  %v6688_v1 = vld [vmem:[%s9381_s8 + $0x8] sm:$0xff]  }
 0x5da   : > { %6424 = vmatprep.mubr.msk.bf16.mxu0 %vm2242_vm4, %v8462_v50  ;;  %6454 = vmatprep.subr.bf16.mxu1 %v6688_v1 }
 0x5db   : > { %6455 = vmatpush3.bf16.msra.mxu1 %v6688_v1 }
 0x5e1   : > { %6425 = vmatmul.mubr.msk.bf16.gmra.mrb[20].mxu0 %vm2242_vm4, %v8458_v58 }
 0x5e2   : > { %6428 = vmatprep.mubr.msk.bf16.mxu0 %vm2242_vm4, %v8494_v39 }
 0x5e9   : > { %6429 = vmatmul.mubr.msk.bf16.gmra.mrb[24].mxu0 %vm2242_vm4, %v8490_v30 }
 0x5ea   : > { %6432 = vmatprep.mubr.msk.bf16.mxu0 %vm2242_vm4, %v8526_v56 }
 0x5f1   : > { %6433 = vmatmul.mubr.msk.bf16.gmra.mrb[28].mxu0 %vm2242_vm4, %v8522_v36 }
 0x5f2   : > { %6436 = vmatprep.mubr.msk.bf16.mxu0 %vm2242_vm4, %v8555_v37 }
 0x5f9   : > { %6437 = vmatmul.mubr.msk.bf16.gmra.mrb[32].mxu0 %vm2242_vm4, %v8551_v33 }
 0x5fa   : > { %6440 = vmatprep.mubr.msk.bf16.mxu0 %vm2242_vm4, %v8575_v47 }
 0x601   : > { %6441 = vmatmul.mubr.msk.bf16.gmra.mrb[36].mxu0 %vm2242_vm4, %v8571_v59 }
 0x602   : > { %6444 = vmatprep.mubr.msk.bf16.mxu0 %vm2242_vm4, %v8595_v0 }
 0x609   : > { %6445 = vmatmul.mubr.msk.bf16.gmra.mrb[40].mxu0 %vm2242_vm4, %v8591_v24 }
 0x60a   : > { %6448 = vmatprep.mubr.msk.bf16.mxu0 %vm2242_vm4, %v8611_v34 }
 0x611   : > { %6449 = vmatmul.mubr.msk.bf16.gmra.mrb[44].mxu0 %vm2242_vm4, %v8609_v13 }
 0x62c   : > { %v6010_v20 = vpop.f32.mrb[208].mxu0 }
 0x62d   : > { %v6011_v58 = vpop.f32.mrb[209].mxu0 }
 0x62e   : > { %v8788_v50 = vadd.f32 %v6011_v58, %v6010_v20  ;;  %v6013_v30 = vpop.f32.mrb[210].mxu0 }
 0x62f   : > { %v6014_v39 = vpop.f32.mrb[211].mxu0 }
 0x630   : > { %v8790_v36 = vadd.f32 %v6014_v39, %v6013_v30 }
 0x634   : > { %v6016_v56 = vpop.f32.mrb[212].mxu0 }
 0x635   : > { %v6017_v33 = vpop.f32.mrb[213].mxu0 }
 0x636   : > { %v8792_v37 = vadd.f32 %v6017_v33, %v6016_v56  ;;  %v6019_v59 = vpop.f32.mrb[214].mxu0 }
 0x637   : > { %v6020_v47 = vpop.f32.mrb[215].mxu0 }
 0x638   : > { %v8794_v24 = vadd.f32 %v6020_v47, %v6019_v59 }
 0x63c   : > { %v6022_v0 = vpop.f32.mrb[216].mxu0 }
 0x63d   : > { %v6023_v13 = vpop.f32.mrb[217].mxu0 }
 0x63e   : > { %v8796_v34 = vadd.f32 %v6023_v13, %v6022_v0  ;;  %v6025_v57 = vpop.f32.mrb[218].mxu0 }
 0x63f   : > { %v6026_v52 = vpop.f32.mrb[219].mxu0 }
 0x640   : > { %v8798_v5 = vadd.f32 %v6026_v52, %v6025_v57 }
 0x644   : > { %v6028_v4 = vpop.f32.mrb[220].mxu0 }
 0x645   : > { %v6029_v38 = vpop.f32.mrb[221].mxu0 }
 0x646   : > { %v8800_v17 = vadd.f32 %v6029_v38, %v6028_v4  ;;  %v6031_v31 = vpop.f32.mrb[222].mxu0 }
 0x647   : > { %v6032_v10 = vpop.f32.mrb[223].mxu0 }
 0x648   : > { %v8802_v53 = vadd.f32 %v6032_v10, %v6031_v31 }
 0x64c   : > { %v6034_v29 = vpop.f32.mrb[224].mxu0 }
 0x64d   : > { %v6035_v12 = vpop.f32.mrb[225].mxu0 }
 0x64e   : > { %v8804_v27 = vadd.f32 %v6035_v12, %v6034_v29  ;;  %v6037_v8 = vpop.f32.mrb[226].mxu0 }
 0x64f   : > { %v6038_v28 = vpop.f32.mrb[227].mxu0 }
 0x650   : > { %v8806_v9 = vadd.f32 %v6038_v28, %v6037_v8 }
 0x654   : > { %v6040_v55 = vpop.f32.mrb[228].mxu0 }
 0x655   : > { %v6041_v1 = vpop.f32.mrb[229].mxu0 }
 0x656   : > { %v8808_v20 = vadd.f32 %v6041_v1, %v6040_v55  ;;  %v6043_v58 = vpop.f32.mrb[230].mxu0 }
 0x657   : > { %v6044_v30 = vpop.f32.mrb[231].mxu0 }
 0x658   : > { %v8810_v39 = vadd.f32 %v6044_v30, %v6043_v58  ;;  %v6689_v58 = vld [vmem:[%s9382_s9] sm:$0xff]  }
 0x659   : > { %6488 = vmatprep.subr.bf16.mxu0 %v6689_v58 }
 0x65a   : > { %6489 = vmatpush3.bf16.msra.mxu0 %v6689_v58 }
 0x65c   : > { %v6046_v56 = vpop.f32.mrb[232].mxu0 }
 0x65d   : > { %v6047_v33 = vpop.f32.mrb[233].mxu0 }
 0x65e   : > { %v8812_v59 = vadd.f32 %v6047_v33, %v6046_v56  ;;  %v6049_v47 = vpop.f32.mrb[234].mxu0 }
 0x65f   : > { %v6050_v0 = vpop.f32.mrb[235].mxu0 }
 0x660   : > { %v8814_v13 = vadd.f32 %v6050_v0, %v6049_v47 }
 0x664   : > { %v6052_v57 = vpop.f32.mrb[236].mxu0 }
 0x665   : > { %v6053_v52 = vpop.f32.mrb[237].mxu0 }
 0x666   : > { %v8816_v4 = vadd.f32 %v6053_v52, %v6052_v57  ;;  %v6055_v38 = vpop.f32.mrb[238].mxu0 }
 0x667   : > { %v6056_v31 = vpop.f32.mrb[239].mxu0 }
 0x668   : > { %v8818_v10 = vadd.f32 %v6056_v31, %v6055_v38 }
 0x66c   : > { %v6058_v29 = vpop.f32.mrb[240].mxu0 }
 0x66d   : > { %v6059_v12 = vpop.f32.mrb[241].mxu0 }
 0x66e   : > { %v8820_v8 = vadd.f32 %v6059_v12, %v6058_v29  ;;  %v6061_v28 = vpop.f32.mrb[242].mxu0 }
 0x66f   : > { %v6062_v55 = vpop.f32.mrb[243].mxu0 }
 0x670   : > { %v8822_v1 = vadd.f32 %v6062_v55, %v6061_v28 }
 0x674   : > { %v6064_v30 = vpop.f32.mrb[244].mxu0 }
 0x675   : > { %v6065_v56 = vpop.f32.mrb[245].mxu0 }
 0x676   : > { %v8827_v33 = vadd.f32 %v6065_v56, %v6064_v30  ;;  %v6067_v47 = vpop.f32.mrb[246].mxu0 }
 0x677   : > { %v6068_v0 = vpop.f32.mrb[247].mxu0 }
 0x678   : > { %v8829_v57 = vadd.f32 %v6068_v0, %v6067_v47 }
 0x67c   : > { %v6070_v52 = vpop.f32.mrb[248].mxu0 }
 0x67d   : > { %v6071_v38 = vpop.f32.mrb[249].mxu0 }
 0x67e   : > { %v8831_v31 = vadd.f32 %v6071_v38, %v6070_v52  ;;  %v6073_v29 = vpop.f32.mrb[250].mxu0 }
 0x67f   : > { %v6074_v12 = vpop.f32.mrb[251].mxu0 }
 0x680   : > { %v8833_v28 = vadd.f32 %v6074_v12, %v6073_v29 }
 0x684   : > { %v6076_v55 = vpop.f32.mrb[252].mxu0 }
 0x685   : > { %v6077_v6 = vpop.f32.mrb[253].mxu0 }
 0x686   : > { %v8835_v19 = vadd.f32 %v6077_v6, %v6076_v55  ;;  %v6079_v22 = vpop.f32.mrb[254].mxu0 }
 0x687   : > { %v6080_v30 = vpop.f32.mrb[255].mxu0 }
 0x688   : > { %v8837_v56 = vadd.f32 %v6080_v30, %v6079_v22 }
 0x68c   : > { %v6082_v58 = vpop.f32.mrb[0].mxu0 }
 0x68d   : > { %v6083_v43 = vpop.f32.mrb[1].mxu0 }
 0x68e   : > { %v8839_v47 = vadd.f32 %v6083_v43, %v6082_v58  ;;  %v6085_v0 = vpop.f32.mrb[2].mxu0 }
 0x68f   : > { %v6086_v54 = vpop.f32.mrb[3].mxu0 }
 0x690   : > { %9978 = vst [vmem:[#allocation75_spill] sm:$0xff] %v8839_v47  ;;  %v8841_v52 = vadd.f32 %v6086_v54, %v6085_v0 }
 0x692   : > { %9979 = vst [vmem:[#allocation82_spill] sm:$0xff] %v8841_v52 }
 0x694   : > { %v6088_v38 = vpop.f32.mrb[4].mxu0 }
 0x695   : > { %v6089_v11 = vpop.f32.mrb[5].mxu0 }
 0x696   : > { %v8843_v29 = vadd.f32 %v6089_v11, %v6088_v38  ;;  %v6091_v12 = vpop.f32.mrb[6].mxu0  ;;  %v9982_v38 = vld [vmem:[#allocation36_spill] sm:$0xff] }
 0x697   : > { %v6092_v16 = vpop.f32.mrb[7].mxu0 }
 0x698   : > { %9980 = vst [vmem:[#allocation83_spill] sm:$0xff] %v8843_v29  ;;  %v8845_v6 = vadd.f32 %v6092_v16, %v6091_v12  ;;  %v4112_v29 = vsub.s32 5, %v9982_v38 }
 0x69c   : > { %v6094_v55 = vpop.f32.mrb[8].mxu0 }
 0x69d   : > { %v6095_v48 = vpop.f32.mrb[9].mxu0 }
 0x69e   : > { %v8847_v22 = vadd.f32 %v6095_v48, %v6094_v55  ;;  %v6097_v30 = vpop.f32.mrb[10].mxu0  ;;  %v8860_v48 = vld [vmem:[%s9385_s12] sm:$0x3f] }
 0x69f   : > { %v6098_v61 = vpop.f32.mrb[11].mxu0  ;;  %9983 = vst [vmem:[#allocation86_spill] sm:$0xff] %v8860_v48 }
 0x6a0   : > { %v8849_v43 = vadd.f32 %v6098_v61, %v6097_v30  ;;  %v8863_v61 = vrot.slane %v8860_v48, %v4112_v29 }
 0x6a2   : > { %9981 = vst [vmem:[#allocation81_spill] sm:$0xff] %v8849_v43 }
 0x6a4   : > { %v6100_v58 = vpop.f32.mrb[12].mxu0 }
 0x6a5   : > { %v6101_v47 = vpop.f32.mrb[13].mxu0 }
 0x6a6   : > { %v8851_v54 = vadd.f32 %v6101_v47, %v6100_v58  ;;  %v6103_v0 = vpop.f32.mrb[14].mxu0 }
 0x6a7   : > { %v6104_v52 = vpop.f32.mrb[15].mxu0 }
 0x6a8   : > { %v8853_v11 = vadd.f32 %v6104_v52, %v6103_v0 }
 0x6ac   : > { %v6422_v16 = vpop.f32.mrb[16].mxu0 }
 0x6ad   : > { %v3960_v12 = vadd.f32 %v6422_v16, %v8792_v37  ;;  %v3951_v55 = vpop.f32.mrb[17].mxu0 }
 0x6ae   : > { %v3952_v47 = vadd.f32 %v8788_v50, %v3951_v55  ;;  %v6423_v30 = vpop.f32.mrb[18].mxu0 }
 0x6af   : > { %v4080_v52 = vadd.f32 %v8661_v21, %v3960_v12  ;;  %v3963_v58 = vadd.f32 %v6423_v30, %v8794_v24  ;;  %v3954_v0 = vpop.f32.mrb[19].mxu0 }
 0x6b0   : > { %v4078_v38 = vadd.f32 %v8652_v62, %v3952_v47  ;;  %v3955_v37 = vadd.f32 %v8790_v36, %v3954_v0 }
 0x6b1   : > { %v4116_v16 = vadd.f32 %v8863_v61, %v4080_v52  ;;  %v4081_v43 = vadd.f32 %v8663_v63, %v3963_v58 }
 0x6b2   : > { %v4114_v29 = vadd.f32 %v8863_v61, %v4078_v38  ;;  %v4079_v48 = vadd.f32 %v8654_v35, %v3955_v37 }
 0x6b3   : > { %v4117_v50 = vadd.f32 %v8863_v61, %v4081_v43  ;;  %v4148_v12 = vmax.f32 %v4116_v16, 0.0 }
 0x6b4   : > { %v4115_v55 = vadd.f32 %v8863_v61, %v4079_v48  ;;  %v6426_v21 = vpop.f32.mrb[20].mxu0  ;;  %v4146_v47 = vmax.f32 %v4114_v29, 0.0 }
 0x6b5   : > { %v4149_v24 = vmax.f32 %v4117_v50, 0.0  ;;  %v3976_v30 = vadd.f32 %v6426_v21, %v8800_v17  ;;  %v3967_v62 = vpop.f32.mrb[21].mxu0 }
 0x6b6   : > { %v4147_v36 = vmax.f32 %v4115_v55, 0.0  ;;  %v3968_v52 = vadd.f32 %v8796_v34, %v3967_v62  ;;  %v6427_v0 = vpop.f32.mrb[22].mxu0 }
 0x6b7   : > { %v4179_v63 = vpack.c.bf16 %v4149_v24, %v4148_v12  ;;  %v4084_v38 = vadd.f32 %v8673_v60, %v3976_v30  ;;  %v3979_v35 = vadd.f32 %v6427_v0, %v8802_v53  ;;  %v3970_v58 = vpop.f32.mrb[23].mxu0 }
 0x6b8   : > { %v4178_v43 = vpack.c.bf16 %v4147_v36, %v4146_v47  ;;  %v4082_v48 = vadd.f32 %v8667_v45, %v3968_v52  ;;  %v3971_v37 = vadd.f32 %v8798_v5, %v3970_v58 }
 0x6b9   : > { %v4120_v16 = vadd.f32 %v8863_v61, %v4084_v38  ;;  %v4085_v17 = vadd.f32 %v8675_v7, %v3979_v35 }
 0x6ba   : > { %v4118_v29 = vadd.f32 %v8863_v61, %v4082_v48  ;;  %v4083_v34 = vadd.f32 %v8669_v32, %v3971_v37  ;;  %6456 = vmatprep.mubr.msk.bf16.mxu1 %vm2242_vm4, %v4178_v43 }
 0x6bb   : > { %v4121_v60 = vadd.f32 %v8863_v61, %v4085_v17  ;;  %6457 = vmatmul.mubr.msk.bf16.vlgmr.msra.gmra.mrb[48].mxu1 %vm2242_vm4, %v4179_v63  ;;  %v4152_v45 = vmax.f32 %v4120_v16, 0.0 }
 0x6bc   : > { %v4119_v53 = vadd.f32 %v8863_v61, %v4083_v34  ;;  %v6430_v50 = vpop.f32.mrb[24].mxu0  ;;  %v4150_v12 = vmax.f32 %v4118_v29, 0.0 }
 0x6bd   : > { %v4153_v55 = vmax.f32 %v4121_v60, 0.0  ;;  %v3992_v5 = vadd.f32 %v6430_v50, %v8808_v20  ;;  %v3983_v21 = vpop.f32.mrb[25].mxu0 }
 0x6be   : > { %v4151_v7 = vmax.f32 %v4119_v53, 0.0  ;;  %v3984_v24 = vadd.f32 %v8804_v27, %v3983_v21  ;;  %v6431_v30 = vpop.f32.mrb[26].mxu0 }
 0x6bf   : > { %v4181_v32 = vpack.c.bf16 %v4153_v55, %v4152_v45  ;;  %v4088_v62 = vadd.f32 %v8685_v23, %v3992_v5  ;;  %v3995_v47 = vadd.f32 %v6431_v30, %v8810_v39  ;;  %v3986_v36 = vpop.f32.mrb[27].mxu0 }
 0x6c0   : > { %v4180_v52 = vpack.c.bf16 %v4151_v7, %v4150_v12  ;;  %v4086_v0 = vadd.f32 %v8679_v49, %v3984_v24  ;;  %v3987_v63 = vadd.f32 %v8806_v9, %v3986_v36 }
 0x6c1   : > { %v4124_v38 = vadd.f32 %v8863_v61, %v4088_v62  ;;  %v4089_v20 = vadd.f32 %v8687_v51, %v3995_v47 }
 0x6c2   : > { %v4122_v35 = vadd.f32 %v8863_v61, %v4086_v0  ;;  %v4087_v27 = vadd.f32 %v8681_v2, %v3987_v63  ;;  %6460 = vmatprep.mubr.msk.bf16.mxu1 %vm2242_vm4, %v4180_v52 }
 0x6c3   : > { %v4125_v23 = vadd.f32 %v8863_v61, %v4089_v20  ;;  %6461 = vmatmul.mubr.msk.bf16.gmra.mrb[52].mxu1 %vm2242_vm4, %v4181_v32  ;;  %v4156_v49 = vmax.f32 %v4124_v38, 0.0 }
 0x6c4   : > { %v4123_v39 = vadd.f32 %v8863_v61, %v4087_v27  ;;  %v6434_v58 = vpop.f32.mrb[28].mxu0  ;;  %v4154_v37 = vmax.f32 %v4122_v35, 0.0 }
 0x6c5   : > { %v4157_v43 = vmax.f32 %v4125_v23, 0.0  ;;  %v4008_v9 = vadd.f32 %v6434_v58, %v8816_v4  ;;  %v3999_v48 = vpop.f32.mrb[29].mxu0 }
 0x6c6   : > { %v4155_v51 = vmax.f32 %v4123_v39, 0.0  ;;  %v4000_v16 = vadd.f32 %v8812_v59, %v3999_v48  ;;  %v6435_v17 = vpop.f32.mrb[30].mxu0 }
 0x6c7   : > { %v4183_v2 = vpack.c.bf16 %v4157_v43, %v4156_v49  ;;  %v4092_v29 = vadd.f32 %v8697_v18, %v4008_v9  ;;  %v4011_v34 = vadd.f32 %v6435_v17, %v8818_v10  ;;  %v4002_v60 = vpop.f32.mrb[31].mxu0 }
 0x6c8   : > { %v4182_v53 = vpack.c.bf16 %v4155_v51, %v4154_v37  ;;  %v4090_v50 = vadd.f32 %v8691_v26, %v4000_v16  ;;  %v4003_v45 = vadd.f32 %v8814_v13, %v4002_v60 }
 0x6c9   : > { %v4128_v55 = vadd.f32 %v8863_v61, %v4092_v29  ;;  %v4093_v4 = vadd.f32 %v8699_v3, %v4011_v34  ;;  %v9984_v29 = vld [vmem:[#allocation65_spill] sm:$0xff] }
 0x6ca   : > { %v4126_v5 = vadd.f32 %v8863_v61, %v4090_v50  ;;  %v4091_v59 = vadd.f32 %v8693_v25, %v4003_v45  ;;  %6464 = vmatprep.mubr.msk.bf16.mxu1 %vm2242_vm4, %v4182_v53 }
 0x6cb   : > { %v4129_v18 = vadd.f32 %v8863_v61, %v4093_v4  ;;  %6465 = vmatmul.mubr.msk.bf16.gmra.mrb[56].mxu1 %vm2242_vm4, %v4183_v2  ;;  %v4160_v26 = vmax.f32 %v4128_v55, 0.0  ;;  %v9986_v55 = vld [vmem:[#allocation75_spill] sm:$0xff] }
 0x6cc   : > { %v4127_v10 = vadd.f32 %v8863_v61, %v4091_v59  ;;  %v6438_v21 = vpop.f32.mrb[32].mxu0  ;;  %v4158_v24 = vmax.f32 %v4126_v5, 0.0 }
 0x6cd   : > { %v4161_v12 = vmax.f32 %v4129_v18, 0.0  ;;  %v4024_v13 = vadd.f32 %v6438_v21, %v8827_v33  ;;  %v4015_v7 = vpop.f32.mrb[33].mxu0  ;;  %v9987_v18 = vld [vmem:[#allocation70_spill] sm:$0xff] }
 0x6ce   : > { %v4159_v3 = vmax.f32 %v4127_v10, 0.0  ;;  %v4016_v30 = vadd.f32 %v8820_v8, %v4015_v7  ;;  %v6439_v32 = vpop.f32.mrb[34].mxu0 }
 0x6cf   : > { %v4185_v25 = vpack.c.bf16 %v4161_v12, %v4160_v26  ;;  %v4096_v62 = vadd.f32 %v8709_v14, %v4024_v13  ;;  %v4027_v47 = vadd.f32 %v6439_v32, %v8829_v57  ;;  %v4018_v36 = vpop.f32.mrb[35].mxu0  ;;  %v9988_v13 = vld [vmem:[#allocation63_spill] sm:$0xff] }
 0x6d0   : > { %v4184_v52 = vpack.c.bf16 %v4159_v3, %v4158_v24  ;;  %v4094_v0 = vadd.f32 %v8703_v15, %v4016_v30  ;;  %v4019_v63 = vadd.f32 %v8822_v1, %v4018_v36  ;;  %v9989_v24 = vld [vmem:[#allocation82_spill] sm:$0xff]  ;;  %v9990_v32 = vld [vmem:[#allocation71_spill] sm:$0xff] }
 0x6d1   : > { %v4132_v38 = vadd.f32 %v8863_v61, %v4096_v62  ;;  %v4097_v33 = vadd.f32 %v8711_v41, %v4027_v47  ;;  %v9991_v47 = vld [vmem:[#allocation72_spill] sm:$0xff] }
 0x6d2   : > { %v4130_v20 = vadd.f32 %v8863_v61, %v4094_v0  ;;  %v4095_v8 = vadd.f32 %v8705_v44, %v4019_v63  ;;  %6468 = vmatprep.mubr.msk.bf16.mxu1 %vm2242_vm4, %v4184_v52 }
 0x6d3   : > { %v4133_v14 = vadd.f32 %v8863_v61, %v4097_v33  ;;  %6469 = vmatmul.mubr.msk.bf16.gmra.mrb[60].mxu1 %vm2242_vm4, %v4185_v25  ;;  %v4164_v15 = vmax.f32 %v4132_v38, 0.0 }
 0x6d4   : > { %v4131_v57 = vadd.f32 %v8863_v61, %v4095_v8  ;;  %v6442_v35 = vpop.f32.mrb[36].mxu0  ;;  %v4162_v39 = vmax.f32 %v4130_v20, 0.0 }
 0x6d5   : > { %v4165_v27 = vmax.f32 %v4133_v14, 0.0  ;;  %v4040_v1 = vadd.f32 %v6442_v35, %v8835_v19  ;;  %v4031_v23 = vpop.f32.mrb[37].mxu0 }
 0x6d6   : > { %v4163_v41 = vmax.f32 %v4131_v57, 0.0  ;;  %v4032_v58 = vadd.f32 %v8831_v31, %v4031_v23  ;;  %v6443_v49 = vpop.f32.mrb[38].mxu0 }
 0x6d7   : > { %v4187_v44 = vpack.c.bf16 %v4165_v27, %v4164_v15  ;;  %v4100_v43 = vadd.f32 %v8721_v40, %v4040_v1  ;;  %v4043_v9 = vadd.f32 %v6443_v49, %v8837_v56  ;;  %v4034_v48 = vpop.f32.mrb[39].mxu0  ;;  %v9992_v27 = vld [vmem:[#allocation76_spill] sm:$0xff] }
 0x6d8   : > { %v4186_v37 = vpack.c.bf16 %v4163_v41, %v4162_v39  ;;  %v4098_v51 = vadd.f32 %v8715_v42, %v4032_v58  ;;  %v4035_v16 = vadd.f32 %v8833_v28, %v4034_v48  ;;  %v9985_v28 = vld [vmem:[#allocation83_spill] sm:$0xff]  ;;  %v9993_v58 = vld [vmem:[#allocation69_spill] sm:$0xff] }
 0x6d9   : > { %v4136_v17 = vadd.f32 %v8863_v61, %v4100_v43  ;;  %v4101_v19 = vadd.f32 %v8723_v46, %v4043_v9 }
 0x6da   : > { %v4134_v2 = vadd.f32 %v8863_v61, %v4098_v51  ;;  %v4099_v31 = vadd.f32 %v9984_v29, %v4035_v16  ;;  %6472 = vmatprep.mubr.msk.bf16.mxu1 %vm2242_vm4, %v4186_v37  ;;  %v9996_v51 = vld [vmem:[#allocation78_spill] sm:$0xff] }
 0x6db   : > { %v4137_v40 = vadd.f32 %v8863_v61, %v4101_v19  ;;  %6473 = vmatmul.mubr.msk.bf16.gmra.mrb[64].mxu1 %vm2242_vm4, %v4187_v44  ;;  %v4168_v42 = vmax.f32 %v4136_v17, 0.0  ;;  %v9994_v44 = vld [vmem:[#allocation81_spill] sm:$0xff] }
 0x6dc   : > { %v4135_v56 = vadd.f32 %v8863_v61, %v4099_v31  ;;  %v6446_v34 = vpop.f32.mrb[40].mxu0  ;;  %v4166_v45 = vmax.f32 %v4134_v2, 0.0 }
 0x6dd   : > { %v4169_v60 = vmax.f32 %v4137_v40, 0.0  ;;  %v4056_v53 = vadd.f32 %v6446_v34, %v9985_v28  ;;  %v4047_v50 = vpop.f32.mrb[41].mxu0  ;;  %v8991_v34 = vld [vmem:[%s8985_s29] sm:$0xff] }
 0x6de   : > { %v4167_v46 = vmax.f32 %v4135_v56, 0.0  ;;  %v4048_v4 = vadd.f32 %v9986_v55, %v4047_v50  ;;  %v6447_v5 = vpop.f32.mrb[42].mxu0  ;;  %v6690_v56 = vld [vmem:[%s9382_s9 + $0x8] sm:$0xff]   ;;  %4734 = vperm.xlu0 %6539, %v8991_v34   ;;  %v9004_v28 = vld [vmem:[%s8985_s29 + $0x20] sm:$0xff]  ;;  %v9012_v50 = vld [vmem:[%s8985_s29 + $0x30] sm:$0xff]  ;;  %vm4924_vm7 = vcmp.gt.f32.partialorder %v8991_v34, 0.0 }
 0x6df   : > { %v4189_v59 = vpack.c.bf16 %v4169_v60, %v4168_v42  ;;  %v4104_v10 = vadd.f32 %v9987_v18, %v4056_v53  ;;  %v4059_v21 = vadd.f32 %v6447_v5, %v8845_v6  ;;  %v4050_v26 = vpop.f32.mrb[43].mxu0  ;;  %6490 = vmatprep.subr.bf16.mxu0 %v6690_v56  ;;  %v8996_v42 = vld [vmem:[%s8985_s29 + $0x10] sm:$0xff]  ;;  %v8999_v60 = vld [vmem:[%s8985_s29 + $0x18] sm:$0xff]  ;;  %v9007_v53 = vld [vmem:[%s8985_s29 + $0x28] sm:$0xff]  ;;  %vm4930_vm9 = vcmp.gt.f32.partialorder %v9012_v50, 0.0 }
 0x6e0   : > { %v4188_v12 = vpack.c.bf16 %v4167_v46, %v4166_v45  ;;  %v4102_v7 = vadd.f32 %v9988_v13, %v4048_v4  ;;  %v4051_v3 = vadd.f32 %v9989_v24, %v4050_v26  ;;  %6491 = vmatpush3.bf16.msra.mxu0 %v6690_v56  ;;  %v9015_v45 = vld [vmem:[%s8985_s29 + $0x38] sm:$0xff]  ;;  %v9020_v46 = vld [vmem:[%s8985_s29 + $0x40] sm:$0xff]  ;;  %v9023_v55 = vld [vmem:[%s8985_s29 + $0x48] sm:$0xff]  ;;  %vm4926_vm5 = vcmp.gt.f32.partialorder %v8996_v42, 0.0 }
 0x6e1   : > { %v4140_v30 = vadd.f32 %v8863_v61, %v4104_v10  ;;  %v4105_v25 = vadd.f32 %v9990_v32, %v4059_v21  ;;  %v9028_v4 = vld [vmem:[%s8985_s29 + $0x50] sm:$0xff]  ;;  %v9031_v5 = vld [vmem:[%s8985_s29 + $0x58] sm:$0xff]  ;;  %v9039_v18 = vld [vmem:[%s8985_s29 + $0x68] sm:$0xff]  ;;  %vm4927_vm6 = vcmp.gt.f32.partialorder %v8999_v60, 0.0  ;;  %vm4931_vm10 = vcmp.gt.f32.partialorder %v9015_v45, 0.0 }
 0x6e2   : > { %v4138_v62 = vadd.f32 %v8863_v61, %v4102_v7  ;;  %v4103_v36 = vadd.f32 %v9991_v47, %v4051_v3  ;;  %6476 = vmatprep.mubr.msk.bf16.mxu1 %vm2242_vm4, %v4188_v12  ;;  %4749 = vperm.xlu0 %6539, %v8999_v60   ;;  %v9044_v10 = vld [vmem:[%s8985_s29 + $0x70] sm:$0xff]  ;;  %v9047_v21 = vld [vmem:[%s8985_s29 + $0x78] sm:$0xff]  ;;  %v9052_v26 = vld [vmem:[%s8985_s29 + $0x80] sm:$0xff]  ;;  %vm4928_vm11 = vcmp.gt.f32.partialorder %v9004_v28, 0.0  ;;  %vm4929_vm12 = vcmp.gt.f32.partialorder %v9007_v53, 0.0 }
 0x6e3   : > { %v4141_v52 = vadd.f32 %v8863_v61, %v4105_v25  ;;  %6477 = vmatmul.mubr.msk.bf16.gmra.mrb[68].mxu1 %vm2242_vm4, %v4189_v59  ;;  %v4172_v63 = vmax.f32 %v4140_v30, 0.0  ;;  %v9036_v59 = vld [vmem:[%s8985_s29 + $0x60] sm:$0xff]  ;;  %v9055_v12 = vld [vmem:[%s8985_s29 + $0x88] sm:$0xff]  ;;  %v9060_v13 = vld [vmem:[%s8985_s29 + $0x90] sm:$0xff]  ;;  %vm4934_vm13 = vcmp.gt.f32.partialorder %v9028_v4, 0.0  ;;  %vm4935_vm14 = vcmp.gt.f32.partialorder %v9031_v5, 0.0 }
 0x6e4   : > { %v4139_v6 = vadd.f32 %v8863_v61, %v4103_v36  ;;  %v6450_v0 = vpop.f32.mrb[44].mxu0  ;;  %v4170_v8 = vmax.f32 %v4138_v62, 0.0  ;;  %v9063_v7 = vld [vmem:[%s8985_s29 + $0x98] sm:$0xff]  ;;  %v9068_v24 = vld [vmem:[%s8985_s29 + $0xa0] sm:$0xff]  ;;  %v9071_v3 = vld [vmem:[%s8985_s29 + $0xa8] sm:$0xff]  ;;  %vm4932_vm15 = vcmp.gt.f32.partialorder %v9020_v46, 0.0 }
 0x6e5   : > { %v4173_v38 = vmax.f32 %v4141_v52, 0.0  ;;  %v4072_v33 = vadd.f32 %v6450_v0, %v8851_v54  ;;  %v4063_v20 = vpop.f32.mrb[45].mxu0  ;;  %v9995_v54 = vld [vmem:[#allocation77_spill] sm:$0xff]  ;;  %v9076_v30 = vld [vmem:[%s8985_s29 + $0xb0] sm:$0xff]  ;;  %v9084_v25 = vld [vmem:[%s8985_s29 + $0xc0] sm:$0xff]  ;;  %vm4933_vm0 = vcmp.gt.f32.partialorder %v9023_v55, 0.0 }
 0x6e6   : > { %v4171_v14 = vmax.f32 %v4139_v6, 0.0  ;;  %v4064_v57 = vadd.f32 %v8847_v22, %v4063_v20  ;;  %v6451_v35 = vpop.f32.mrb[46].mxu0  ;;  %4759 = vperm.xlu0 %6539, %v9007_v53   ;;  %v9079_v32 = vld [vmem:[%s8985_s29 + $0xb8] sm:$0xff]  ;;  %v9087_v62 = vld [vmem:[%s8985_s29 + $0xc8] sm:$0xff]  ;;  %v9092_v47 = vld [vmem:[%s8985_s29 + $0xd0] sm:$0xff]  ;;  %vm4938_vm1 = vcmp.gt.f32.partialorder %v9044_v10, 0.0 }
 0x6e7   : > { %v4191_v15 = vpack.c.bf16 %v4173_v38, %v4172_v63  ;;  %v4108_v1 = vadd.f32 %v9992_v27, %v4072_v33  ;;  %v4075_v23 = vadd.f32 %v6451_v35, %v8853_v11  ;;  %v4066_v39 = vpop.f32.mrb[47].mxu0  ;;  %v9095_v36 = vld [vmem:[%s8985_s29 + $0xd8] sm:$0xff]  ;;  %v9100_v52 = vld [vmem:[%s8985_s29 + $0xe0] sm:$0xff]  ;;  %v9103_v6 = vld [vmem:[%s8985_s29 + $0xe8] sm:$0xff]  ;;  %vm4939_vm2 = vcmp.gt.f32.partialorder %v9047_v21, 0.0 }
 0x6e8   : > { %v4190_v41 = vpack.c.bf16 %v4171_v14, %v4170_v8  ;;  %v4106_v49 = vadd.f32 %v9993_v58, %v4064_v57  ;;  %v4067_v43 = vadd.f32 %v9994_v44, %v4066_v39  ;;  %v9108_v0 = vld [vmem:[%s8985_s29 + $0xf0] sm:$0xff]  ;;  %v9111_v63 = vld [vmem:[%s8985_s29 + $0xf8] sm:$0xff]  ;;  %v9998_v20 = vld [vmem:[#allocation86_spill] sm:$0xff]  ;;  %vm4936_vm3 = vcmp.gt.f32.partialorder %v9036_v59, 0.0 }
 0x6e9   : > { %v4144_v9 = vadd.f32 %v8863_v61, %v4108_v1  ;;  %v4109_v48 = vadd.f32 %v9995_v54, %v4075_v23  ;;  %v9997_v38 = vld [vmem:[#allocation36_spill] sm:$0xff] }
 0x6ea   : > { %v4142_v37 = vadd.f32 %v8863_v61, %v4106_v49  ;;  %v4107_v22 = vadd.f32 %v9996_v51, %v4067_v43  ;;  %6480 = vmatprep.mubr.msk.bf16.mxu1 %vm2242_vm4, %v4190_v41  ;;  %4769 = vperm.xlu0 %6539, %v9015_v45   ;;  %v4200_v33 = vsub.s32 2, %v9997_v38 }
 0x6eb   : > { %v4145_v11 = vadd.f32 %v8863_v61, %v4109_v48  ;;  %6481 = vmatmul.mubr.msk.bf16.gmra.mrb[72].mxu1 %vm2242_vm4, %v4191_v15  ;;  %v4176_v17 = vmax.f32 %v4144_v9, 0.0 }
 0x6ec   : > { %v4143_v16 = vadd.f32 %v8863_v61, %v4107_v22  ;;  %v4174_v2 = vmax.f32 %v4142_v37, 0.0  ;;  %v8988_v61 = vld [vmem:[%s8985_s29 + $0x8] sm:$0xff]  ;;  %v9117_v8 = vrot.slane %v9998_v20, %v4200_v33 }
 0x6ed   : > { %v4177_v19 = vmax.f32 %v4145_v11, 0.0  ;;  %4739 = vperm.xlu1 %6540, %v8988_v61   ;;  %vm4925_vm8 = vcmp.gt.f32.partialorder %v8988_v61, 0.0 }
 0x6ee   : > { %v4175_v29 = vmax.f32 %v4143_v16, 0.0  ;;  %4779 = vperm.xlu0 %6539, %v9023_v55  }
 0x6ef   : > { %v4193_v31 = vpack.c.bf16 %v4177_v19, %v4176_v17 }
 0x6f0   : > { %v4192_v40 = vpack.c.bf16 %v4175_v29, %v4174_v2 }
 0x6f1   : > { %4744 = vperm.xlu1 %6540, %v8996_v42  }
 0x6f2   : > { %6484 = vmatprep.mubr.msk.bf16.mxu1 %vm2242_vm4, %v4192_v40  ;;  %4789 = vperm.xlu0 %6539, %v9031_v5  }
 0x6f3   : > { %6485 = vmatmul.mubr.msk.bf16.gmra.mrb[76].mxu1 %vm2242_vm4, %v4193_v31 }
 0x6f5   : > { %4754 = vperm.xlu1 %6540, %v9004_v28  }
 0x6f6   : > { %4799 = vperm.xlu0 %6539, %v9039_v18  }
 0x6f9   : > { %4764 = vperm.xlu1 %6540, %v9012_v50  }
 0x6fa   : > { %4809 = vperm.xlu0 %6539, %v9047_v21  }
 0x6fd   : > { %4774 = vperm.xlu1 %6540, %v9020_v46  }
 0x6fe   : > { %4819 = vperm.xlu0 %6539, %v9055_v12  }
 0x701   : > { %4784 = vperm.xlu1 %6540, %v9028_v4  }
 0x702   : > { %4829 = vperm.xlu0 %6539, %v9063_v7  }
 0x705   : > { %4794 = vperm.xlu1 %6540, %v9036_v59  }
 0x706   : > { %4839 = vperm.xlu0 %6539, %v9071_v3  }
 0x709   : > { %4804 = vperm.xlu1 %6540, %v9044_v10  }
 0x70a   : > { %4849 = vperm.xlu0 %6539, %v9079_v32  }
 0x70d   : > { %4814 = vperm.xlu1 %6540, %v9052_v26  }
 0x70e   : > { %4859 = vperm.xlu0 %6539, %v9087_v62  }
 0x711   : > { %4824 = vperm.xlu1 %6540, %v9060_v13  }
 0x712   : > { %4869 = vperm.xlu0 %6539, %v9095_v36  }
 0x715   : > { %4834 = vperm.xlu1 %6540, %v9068_v24  }
 0x716   : > { %4879 = vperm.xlu0 %6539, %v9103_v6  }
 0x719   : > { %4844 = vperm.xlu1 %6540, %v9076_v30  }
 0x71a   : > { %4889 = vperm.xlu0 %6539, %v9111_v63  }
 0x71d   : > { %4854 = vperm.xlu1 %6540, %v9084_v25  }
 0x721   : > { %4864 = vperm.xlu1 %6540, %v9092_v47  }
 0x725   : > { %4874 = vperm.xlu1 %6540, %v9100_v52  }
 0x729   : > { %4884 = vperm.xlu1 %6540, %v9108_v0  }
 0x78e   : > { %v6458_v14 = vpop.f32.mrb[48].mxu1 }
 0x78f   : > { %v4305_v57 = vadd.f32 %v6458_v14, %v9117_v8  ;;  %v4296_v35 = vpop.f32.mrb[49].mxu1 }
 0x790   : > { %v4297_v15 = vadd.f32 %v4296_v35, %v9117_v8  ;;  %v6459_v27 = vpop.f32.mrb[50].mxu1 }
 0x791   : > { %v4308_v1 = vadd.f32 %v6459_v27, %v9117_v8  ;;  %v4299_v23 = vpop.f32.mrb[51].mxu1  ;;  %v4425_v41 = vmax.f32 %v4305_v57, 0.0 }
 0x792   : > { %v4300_v39 = vadd.f32 %v4299_v23, %v9117_v8  ;;  %v4423_v49 = vmax.f32 %v4297_v15, 0.0 }
 0x793   : > { %v4426_v58 = vmax.f32 %v4308_v1, 0.0 }
 0x794   : > { %v4424_v44 = vmax.f32 %v4300_v39, 0.0 }
 0x795   : > { %v4456_v43 = vpack.c.bf16 %v4426_v58, %v4425_v41 }
 0x796   : > { %v4455_v9 = vpack.c.bf16 %v4424_v44, %v4423_v49  ;;  %v6462_v54 = vpop.f32.mrb[52].mxu1 }
 0x797   : > { %v4321_v48 = vadd.f32 %v6462_v54, %v9117_v8  ;;  %v4312_v37 = vpop.f32.mrb[53].mxu1 }
 0x798   : > { %v4313_v51 = vadd.f32 %v4312_v37, %v9117_v8  ;;  %v6463_v22 = vpop.f32.mrb[54].mxu1  ;;  %6492 = vmatprep.mubr.msk.bf16.mxu0 %vm2242_vm4, %v4455_v9 }
 0x799   : > { %v4324_v11 = vadd.f32 %v6463_v22, %v9117_v8  ;;  %v4315_v16 = vpop.f32.mrb[55].mxu1  ;;  %6493 = vmatmul.mubr.msk.bf16.vlgmr.msra.gmra.mrb[48].mxu0 %vm2242_vm4, %v4456_v43  ;;  %v4429_v19 = vmax.f32 %v4321_v48, 0.0 }
 0x79a   : > { %v4316_v17 = vadd.f32 %v4315_v16, %v9117_v8  ;;  %v4427_v29 = vmax.f32 %v4313_v51, 0.0 }
 0x79b   : > { %v4430_v2 = vmax.f32 %v4324_v11, 0.0 }
 0x79c   : > { %v4428_v31 = vmax.f32 %v4316_v17, 0.0 }
 0x79d   : > { %v4458_v40 = vpack.c.bf16 %v4430_v2, %v4429_v19 }
 0x79e   : > { %v4457_v56 = vpack.c.bf16 %v4428_v31, %v4427_v29  ;;  %v6466_v33 = vpop.f32.mrb[56].mxu1 }
 0x79f   : > { %v4337_v14 = vadd.f32 %v6466_v33, %v9117_v8  ;;  %v4328_v57 = vpop.f32.mrb[57].mxu1 }
 0x7a0   : > { %v4329_v35 = vadd.f32 %v4328_v57, %v9117_v8  ;;  %v6467_v15 = vpop.f32.mrb[58].mxu1  ;;  %6496 = vmatprep.mubr.msk.bf16.mxu0 %vm2242_vm4, %v4457_v56 }
 0x7a1   : > { %v4340_v27 = vadd.f32 %v6467_v15, %v9117_v8  ;;  %v4331_v1 = vpop.f32.mrb[59].mxu1  ;;  %6497 = vmatmul.mubr.msk.bf16.gmra.mrb[52].mxu0 %vm2242_vm4, %v4458_v40  ;;  %v4433_v39 = vmax.f32 %v4337_v14, 0.0 }
 0x7a2   : > { %v4332_v23 = vadd.f32 %v4331_v1, %v9117_v8  ;;  %v4431_v58 = vmax.f32 %v4329_v35, 0.0 }
 0x7a3   : > { %v4434_v41 = vmax.f32 %v4340_v27, 0.0 }
 0x7a4   : > { %v4432_v49 = vmax.f32 %v4332_v23, 0.0 }
 0x7a5   : > { %v4460_v44 = vpack.c.bf16 %v4434_v41, %v4433_v39 }
 0x7a6   : > { %v4459_v43 = vpack.c.bf16 %v4432_v49, %v4431_v58  ;;  %v6470_v9 = vpop.f32.mrb[60].mxu1 }
 0x7a7   : > { %v4353_v54 = vadd.f32 %v6470_v9, %v9117_v8  ;;  %v4344_v48 = vpop.f32.mrb[61].mxu1 }
 0x7a8   : > { %v4345_v37 = vadd.f32 %v4344_v48, %v9117_v8  ;;  %v6471_v51 = vpop.f32.mrb[62].mxu1  ;;  %6500 = vmatprep.mubr.msk.bf16.mxu0 %vm2242_vm4, %v4459_v43 }
 0x7a9   : > { %v4356_v22 = vadd.f32 %v6471_v51, %v9117_v8  ;;  %v4347_v11 = vpop.f32.mrb[63].mxu1  ;;  %6501 = vmatmul.mubr.msk.bf16.gmra.mrb[56].mxu0 %vm2242_vm4, %v4460_v44  ;;  %v4437_v17 = vmax.f32 %v4353_v54, 0.0 }
 0x7aa   : > { %v4348_v16 = vadd.f32 %v4347_v11, %v9117_v8  ;;  %v4435_v2 = vmax.f32 %v4345_v37, 0.0 }
 0x7ab   : > { %v4438_v19 = vmax.f32 %v4356_v22, 0.0 }
 0x7ac   : > { %v4436_v29 = vmax.f32 %v4348_v16, 0.0 }
 0x7ad   : > { %v4462_v31 = vpack.c.bf16 %v4438_v19, %v4437_v17 }
 0x7ae   : > { %v4461_v40 = vpack.c.bf16 %v4436_v29, %v4435_v2  ;;  %v6474_v56 = vpop.f32.mrb[64].mxu1 }
 0x7af   : > { %v4369_v33 = vadd.f32 %v6474_v56, %v9117_v8  ;;  %v4360_v14 = vpop.f32.mrb[65].mxu1 }
 0x7b0   : > { %v4361_v57 = vadd.f32 %v4360_v14, %v9117_v8  ;;  %v6475_v35 = vpop.f32.mrb[66].mxu1  ;;  %6504 = vmatprep.mubr.msk.bf16.mxu0 %vm2242_vm4, %v4461_v40 }
 0x7b1   : > { %v4372_v15 = vadd.f32 %v6475_v35, %v9117_v8  ;;  %v4363_v27 = vpop.f32.mrb[67].mxu1  ;;  %6505 = vmatmul.mubr.msk.bf16.gmra.mrb[60].mxu0 %vm2242_vm4, %v4462_v31  ;;  %v4441_v23 = vmax.f32 %v4369_v33, 0.0 }
 0x7b2   : > { %v4364_v1 = vadd.f32 %v4363_v27, %v9117_v8  ;;  %v4439_v41 = vmax.f32 %v4361_v57, 0.0 }
 0x7b3   : > { %v4442_v39 = vmax.f32 %v4372_v15, 0.0 }
 0x7b4   : > { %v4440_v58 = vmax.f32 %v4364_v1, 0.0 }
 0x7b5   : > { %v4464_v49 = vpack.c.bf16 %v4442_v39, %v4441_v23 }
 0x7b6   : > { %v4463_v44 = vpack.c.bf16 %v4440_v58, %v4439_v41  ;;  %v6478_v43 = vpop.f32.mrb[68].mxu1 }
 0x7b7   : > { %v4385_v9 = vadd.f32 %v6478_v43, %v9117_v8  ;;  %v4376_v54 = vpop.f32.mrb[69].mxu1 }
 0x7b8   : > { %v4377_v48 = vadd.f32 %v4376_v54, %v9117_v8  ;;  %v6479_v37 = vpop.f32.mrb[70].mxu1  ;;  %6508 = vmatprep.mubr.msk.bf16.mxu0 %vm2242_vm4, %v4463_v44 }
 0x7b9   : > { %v4388_v51 = vadd.f32 %v6479_v37, %v9117_v8  ;;  %v4379_v22 = vpop.f32.mrb[71].mxu1  ;;  %6509 = vmatmul.mubr.msk.bf16.gmra.mrb[64].mxu0 %vm2242_vm4, %v4464_v49  ;;  %v4445_v16 = vmax.f32 %v4385_v9, 0.0 }
 0x7ba   : > { %v4380_v11 = vadd.f32 %v4379_v22, %v9117_v8  ;;  %v4443_v19 = vmax.f32 %v4377_v48, 0.0 }
 0x7bb   : > { %v4446_v17 = vmax.f32 %v4388_v51, 0.0 }
 0x7bc   : > { %v4444_v2 = vmax.f32 %v4380_v11, 0.0 }
 0x7bd   : > { %v4466_v29 = vpack.c.bf16 %v4446_v17, %v4445_v16 }
 0x7be   : > { %v4465_v31 = vpack.c.bf16 %v4444_v2, %v4443_v19  ;;  %v6482_v40 = vpop.f32.mrb[72].mxu1 }
 0x7bf   : > { %v4401_v56 = vadd.f32 %v6482_v40, %v9117_v8  ;;  %v4392_v33 = vpop.f32.mrb[73].mxu1  ;;  %v4735_v40 = vpop.permute.xlu0 %4734 }
 0x7c0   : > { %v4393_v14 = vadd.f32 %v4392_v33, %v9117_v8  ;;  %v6483_v57 = vpop.f32.mrb[74].mxu1  ;;  %6512 = vmatprep.mubr.msk.bf16.mxu0 %vm2242_vm4, %v4465_v31  ;;  %v4740_v31 = vpop.permute.xlu1 %4739 }
 0x7c1   : > { %v4404_v35 = vadd.f32 %v6483_v57, %v9117_v8  ;;  %v4395_v15 = vpop.f32.mrb[75].mxu1  ;;  %6513 = vmatmul.mubr.msk.bf16.gmra.mrb[68].mxu0 %vm2242_vm4, %v4466_v29  ;;  %v4449_v1 = vmax.f32 %v4401_v56, 0.0 }
 0x7c2   : > { %v4396_v27 = vadd.f32 %v4395_v15, %v9117_v8  ;;  %v4447_v39 = vmax.f32 %v4393_v14, 0.0 }
 0x7c3   : > { %v4450_v23 = vmax.f32 %v4404_v35, 0.0  ;;  %v4750_v33 = vpop.permute.xlu0 %4749 }
 0x7c4   : > { %v4448_v41 = vmax.f32 %v4396_v27, 0.0  ;;  %v4745_v56 = vpop.permute.xlu1 %4744 }
 0x7c5   : > { %v4468_v58 = vpack.c.bf16 %v4450_v23, %v4449_v1 }
 0x7c6   : > { %v4467_v49 = vpack.c.bf16 %v4448_v41, %v4447_v39  ;;  %v6486_v44 = vpop.f32.mrb[76].mxu1 }
 0x7c7   : > { %v4417_v43 = vadd.f32 %v6486_v44, %v9117_v8  ;;  %v4408_v9 = vpop.f32.mrb[77].mxu1  ;;  %v4760_v57 = vpop.permute.xlu0 %4759 }
 0x7c8   : > { %v4409_v54 = vadd.f32 %v4408_v9, %v9117_v8  ;;  %v6487_v48 = vpop.f32.mrb[78].mxu1  ;;  %6516 = vmatprep.mubr.msk.bf16.mxu0 %vm2242_vm4, %v4467_v49  ;;  %v4755_v14 = vpop.permute.xlu1 %4754 }
 0x7c9   : > { %v4420_v37 = vadd.f32 %v6487_v48, %v9117_v8  ;;  %v4411_v51 = vpop.f32.mrb[79].mxu1  ;;  %6517 = vmatmul.mubr.msk.bf16.gmra.mrb[72].mxu0 %vm2242_vm4, %v4468_v58  ;;  %v4453_v11 = vmax.f32 %v4417_v43, 0.0 }
 0x7ca   : > { %v4412_v22 = vadd.f32 %v4411_v51, %v9117_v8  ;;  %v4451_v17 = vmax.f32 %v4409_v54, 0.0  ;;  %v4477_v8 = vsub.s32 3, %v9997_v38 }
 0x7cb   : > { %v4454_v16 = vmax.f32 %v4420_v37, 0.0  ;;  %v4770_v15 = vpop.permute.xlu0 %4769 }
 0x7cc   : > { %v4452_v19 = vmax.f32 %v4412_v22, 0.0  ;;  %v4765_v35 = vpop.permute.xlu1 %4764  ;;  %v9169_v23 = vrot.slane %v9998_v20, %v4477_v8 }
 0x7cd   : > { %v4470_v2 = vpack.c.bf16 %v4454_v16, %v4453_v11 }
 0x7ce   : > { %v4469_v29 = vpack.c.bf16 %v4452_v19, %v4451_v17 }
 0x7cf   : > { %v4780_v1 = vpop.permute.xlu0 %4779 }
 0x7d0   : > { %6520 = vmatprep.mubr.msk.bf16.mxu0 %vm2242_vm4, %v4469_v29  ;;  %v4775_v27 = vpop.permute.xlu1 %4774 }
 0x7d1   : > { %6521 = vmatmul.mubr.msk.bf16.gmra.mrb[76].mxu0 %vm2242_vm4, %v4470_v2  ;;  %vm4937_vm4 = vcmp.gt.f32.partialorder %v9039_v18, 0.0 }
 0x7d3   : > { %v4790_v41 = vpop.permute.xlu0 %4789 }
 0x7d4   : > { %v4785_v39 = vpop.permute.xlu1 %4784 }
 0x7d7   : > { %v4800_v20 = vpop.permute.xlu0 %4799 }
 0x7d8   : > { %v4795_v51 = vpop.permute.xlu1 %4794 }
 0x7dc   : > { %v4805_v29 = vpop.permute.xlu1 %4804 }
 0x86c   : > { %v6494_v58 = vpop.f32.mrb[48].mxu0 }
 0x86d   : > { %v4582_v49 = vadd.f32 %v6494_v58, %v9169_v23  ;;  %v4573_v44 = vpop.f32.mrb[49].mxu0 }
 0x86e   : > { %v6495_v43 = vpop.f32.mrb[50].mxu0  ;;  %v4574_v54 = vadd.f32 %v4573_v44, %v9169_v23 }
 0x86f   : > { %v4894_v9 = vadd.f32 %v4745_v56, %v4582_v49  ;;  %v4585_v48 = vadd.f32 %v6495_v43, %v9169_v23  ;;  %v4576_v37 = vpop.f32.mrb[51].mxu0 }
 0x870   : > { %v4577_v38 = vadd.f32 %v4576_v37, %v9169_v23  ;;  %v4892_v11 = vadd.f32 %v4735_v40, %v4574_v54  ;;  %v4810_v40 = vpop.permute.xlu0 %4809 }
 0x871   : > { %v4895_v22 = vadd.f32 %v4750_v33, %v4585_v48  ;;  %4992 = vrot.lane.b32.xlu1 %v4894_v9, %s6703_s30  ;;  %v4815_v9 = vpop.permute.xlu1 %4814 }
 0x872   : > { %v4893_v17 = vadd.f32 %v4740_v31, %v4577_v38 }
 0x873   : > { %4994 = vrot.lane.b32.xlu0 %v4895_v22, %s6703_s30 }
 0x874   : > { %v6498_v16 = vpop.f32.mrb[52].mxu0  ;;  %v4820_v22 = vpop.permute.xlu0 %4819 }
 0x875   : > { %v4598_v19 = vadd.f32 %v6498_v16, %v9169_v23  ;;  %v4589_v2 = vpop.f32.mrb[53].mxu0  ;;  %4988 = vrot.lane.b32.xlu1 %v4892_v11, %s6703_s30 }
 0x876   : > { %v6499_v56 = vpop.f32.mrb[54].mxu0  ;;  %v4590_v33 = vadd.f32 %v4589_v2, %v9169_v23 }
 0x877   : > { %v4898_v8 = vadd.f32 %v4765_v35, %v4598_v19  ;;  %v4601_v58 = vadd.f32 %v6499_v56, %v9169_v23  ;;  %v4592_v49 = vpop.f32.mrb[55].mxu0  ;;  %4990 = vrot.lane.b32.xlu0 %v4893_v17, %s6703_s30 }
 0x878   : > { %v4593_v43 = vadd.f32 %v4592_v49, %v9169_v23  ;;  %v4896_v31 = vadd.f32 %v4755_v14, %v4590_v33  ;;  %v4830_v56 = vpop.permute.xlu0 %4829 }
 0x879   : > { %v4899_v44 = vadd.f32 %v4770_v15, %v4601_v58  ;;  %5000 = vrot.lane.b32.xlu1 %v4898_v8, %s6703_s30 }
 0x87a   : > { %v4897_v48 = vadd.f32 %v4760_v57, %v4593_v43  ;;  %v4825_v57 = vpop.permute.xlu1 %4824 }
 0x87b   : > { %5002 = vrot.lane.b32.xlu0 %v4899_v44, %s6703_s30 }
 0x87c   : > { %v6502_v54 = vpop.f32.mrb[56].mxu0 }
 0x87d   : > { %v4614_v35 = vadd.f32 %v6502_v54, %v9169_v23  ;;  %v4605_v37 = vpop.f32.mrb[57].mxu0  ;;  %4996 = vrot.lane.b32.xlu1 %v4896_v31, %s6703_s30 }
 0x87e   : > { %v6503_v38 = vpop.f32.mrb[58].mxu0  ;;  %v4606_v15 = vadd.f32 %v4605_v37, %v9169_v23 }
 0x87f   : > { %v4902_v11 = vadd.f32 %v4785_v39, %v4614_v35  ;;  %v4617_v16 = vadd.f32 %v6503_v38, %v9169_v23  ;;  %v4608_v17 = vpop.f32.mrb[59].mxu0  ;;  %4998 = vrot.lane.b32.xlu0 %v4897_v48, %s6703_s30 }
 0x880   : > { %v4609_v19 = vadd.f32 %v4608_v17, %v9169_v23  ;;  %v4900_v2 = vadd.f32 %v4775_v27, %v4606_v15  ;;  %v4835_v27 = vpop.permute.xlu1 %4834 }
 0x881   : > { %v4903_v14 = vadd.f32 %v4790_v41, %v4617_v16  ;;  %5008 = vrot.lane.b32.xlu1 %v4902_v11, %s6703_s30 }
 0x882   : > { %v4901_v33 = vadd.f32 %v4780_v1, %v4609_v19  ;;  %v4840_v1 = vpop.permute.xlu0 %4839 }
 0x883   : > { %5010 = vrot.lane.b32.xlu0 %v4903_v14, %s6703_s30 }
 0x884   : > { %v6506_v8 = vpop.f32.mrb[60].mxu0  ;;  %v4845_v15 = vpop.permute.xlu1 %4844 }
 0x885   : > { %v4630_v39 = vadd.f32 %v6506_v8, %v9169_v23  ;;  %v4621_v58 = vpop.f32.mrb[61].mxu0  ;;  %5004 = vrot.lane.b32.xlu1 %v4900_v2, %s6703_s30 }
 0x886   : > { %v6507_v49 = vpop.f32.mrb[62].mxu0  ;;  %v4622_v41 = vadd.f32 %v4621_v58, %v9169_v23 }
 0x887   : > { %v4906_v44 = vadd.f32 %v4805_v29, %v4630_v39  ;;  %v4633_v43 = vadd.f32 %v6507_v49, %v9169_v23  ;;  %v4624_v31 = vpop.f32.mrb[63].mxu0  ;;  %5006 = vrot.lane.b32.xlu0 %v4901_v33, %s6703_s30 }
 0x888   : > { %v4625_v48 = vadd.f32 %v4624_v31, %v9169_v23  ;;  %v4904_v35 = vadd.f32 %v4795_v51, %v4622_v41  ;;  %v4850_v51 = vpop.permute.xlu0 %4849  ;;  %v4855_v33 = vpop.permute.xlu1 %4854 }
 0x889   : > { %v4907_v54 = vadd.f32 %v4810_v40, %v4633_v43  ;;  %5016 = vrot.lane.b32.xlu1 %v4906_v44, %s6703_s30 }
 0x88a   : > { %v4905_v38 = vadd.f32 %v4800_v20, %v4625_v48 }
 0x88b   : > { %5018 = vrot.lane.b32.xlu0 %v4907_v54, %s6703_s30 }
 0x88c   : > { %v6510_v37 = vpop.f32.mrb[64].mxu0  ;;  %v4860_v44 = vpop.permute.xlu0 %4859 }
 0x88d   : > { %v4646_v29 = vadd.f32 %v6510_v37, %v9169_v23  ;;  %v4637_v11 = vpop.f32.mrb[65].mxu0  ;;  %5012 = vrot.lane.b32.xlu1 %v4904_v35, %s6703_s30 }
 0x88e   : > { %v6511_v16 = vpop.f32.mrb[66].mxu0  ;;  %v4638_v40 = vadd.f32 %v4637_v11, %v9169_v23 }
 0x88f   : > { %v4910_v17 = vadd.f32 %v4825_v57, %v4646_v29  ;;  %v4649_v14 = vadd.f32 %v6511_v16, %v9169_v23  ;;  %v4640_v19 = vpop.f32.mrb[67].mxu0  ;;  %5014 = vrot.lane.b32.xlu0 %v4905_v38, %s6703_s30 }
 0x890   : > { %v4641_v8 = vadd.f32 %v4640_v19, %v9169_v23  ;;  %v4908_v20 = vadd.f32 %v4815_v9, %v4638_v40  ;;  %v4870_v37 = vpop.permute.xlu0 %4869 }
 0x891   : > { %v4911_v2 = vadd.f32 %v4830_v56, %v4649_v14  ;;  %5024 = vrot.lane.b32.xlu1 %v4910_v17, %s6703_s30 }
 0x892   : > { %v4909_v58 = vadd.f32 %v4820_v22, %v4641_v8  ;;  %v4865_v22 = vpop.permute.xlu1 %4864 }
 0x893   : > { %5026 = vrot.lane.b32.xlu0 %v4911_v2, %s6703_s30 }
 0x894   : > { %v6514_v39 = vpop.f32.mrb[68].mxu0 }
 0x895   : > { %v4662_v57 = vadd.f32 %v6514_v39, %v9169_v23  ;;  %v4653_v49 = vpop.f32.mrb[69].mxu0  ;;  %5020 = vrot.lane.b32.xlu1 %v4908_v20, %s6703_s30 }
 0x896   : > { %v6515_v41 = vpop.f32.mrb[70].mxu0  ;;  %v4654_v56 = vadd.f32 %v4653_v49, %v9169_v23 }
 0x897   : > { %v4914_v43 = vadd.f32 %v4845_v15, %v4662_v57  ;;  %v4665_v31 = vadd.f32 %v6515_v41, %v9169_v23  ;;  %v4656_v54 = vpop.f32.mrb[71].mxu0  ;;  %5022 = vrot.lane.b32.xlu0 %v4909_v58, %s6703_s30 }
 0x898   : > { %v4657_v48 = vadd.f32 %v4656_v54, %v9169_v23  ;;  %v4912_v35 = vadd.f32 %v4835_v27, %v4654_v56  ;;  %v4875_v27 = vpop.permute.xlu1 %4874 }
 0x899   : > { %v4915_v9 = vadd.f32 %v4850_v51, %v4665_v31  ;;  %5032 = vrot.lane.b32.xlu1 %v4914_v43, %s6703_s30 }
 0x89a   : > { %v4913_v29 = vadd.f32 %v4840_v1, %v4657_v48  ;;  %v4880_v1 = vpop.permute.xlu0 %4879 }
 0x89b   : > { %5034 = vrot.lane.b32.xlu0 %v4915_v9, %s6703_s30 }
 0x89c   : > { %v6518_v38 = vpop.f32.mrb[72].mxu0  ;;  %v4885_v49 = vpop.permute.xlu1 %4884 }
 0x89d   : > { %v4678_v11 = vadd.f32 %v6518_v38, %v9169_v23  ;;  %v4669_v15 = vpop.f32.mrb[73].mxu0  ;;  %5028 = vrot.lane.b32.xlu1 %v4912_v35, %s6703_s30 }
 0x89e   : > { %v6519_v16 = vpop.f32.mrb[74].mxu0  ;;  %v4670_v40 = vadd.f32 %v4669_v15, %v9169_v23 }
 0x89f   : > { %v4918_v17 = vadd.f32 %v4865_v22, %v4678_v11  ;;  %v4681_v14 = vadd.f32 %v6519_v16, %v9169_v23  ;;  %v4672_v19 = vpop.f32.mrb[75].mxu0  ;;  %5030 = vrot.lane.b32.xlu0 %v4913_v29, %s6703_s30 }
 0x8a0   : > { %v4673_v2 = vadd.f32 %v4672_v19, %v9169_v23  ;;  %v4916_v8 = vadd.f32 %v4855_v33, %v4670_v40  ;;  %v4890_v33 = vpop.permute.xlu0 %4889 }
 0x8a1   : > { %v4919_v51 = vadd.f32 %v4870_v37, %v4681_v14  ;;  %5040 = vrot.lane.b32.xlu1 %v4918_v17, %s6703_s30 }
 0x8a2   : > { %v4917_v39 = vadd.f32 %v4860_v44, %v4673_v2 }
 0x8a3   : > { %5042 = vrot.lane.b32.xlu0 %v4919_v51, %s6703_s30 }
 0x8a4   : > { %v6522_v20 = vpop.f32.mrb[76].mxu0 }
 0x8a5   : > { %v4694_v58 = vadd.f32 %v6522_v20, %v9169_v23  ;;  %v4685_v57 = vpop.f32.mrb[77].mxu0  ;;  %5036 = vrot.lane.b32.xlu1 %v4916_v8, %s6703_s30 }
 0x8a6   : > { %v6523_v41 = vpop.f32.mrb[78].mxu0  ;;  %v4686_v56 = vadd.f32 %v4685_v57, %v9169_v23 }
 0x8a7   : > { %v4922_v43 = vadd.f32 %v4885_v49, %v4694_v58  ;;  %v4697_v31 = vadd.f32 %v6523_v41, %v9169_v23  ;;  %v4688_v54 = vpop.f32.mrb[79].mxu0  ;;  %5038 = vrot.lane.b32.xlu0 %v4917_v39, %s6703_s30 }
 0x8a8   : > { %v4689_v48 = vadd.f32 %v4688_v54, %v9169_v23  ;;  %v4920_v44 = vadd.f32 %v4875_v27, %v4686_v56 }
 0x8a9   : > { %v4923_v9 = vadd.f32 %v4890_v33, %v4697_v31  ;;  %5048 = vrot.lane.b32.xlu1 %v4922_v43, %s6703_s30 }
 0x8aa   : > { %v4921_v22 = vadd.f32 %v4880_v1, %v4689_v48 }
 0x8ab   : > { %5050 = vrot.lane.b32.xlu0 %v4923_v9, %s6703_s30 }
 0x8ad   : > { %5044 = vrot.lane.b32.xlu1 %v4920_v44, %s6703_s30 }
 0x8af   : > { %5046 = vrot.lane.b32.xlu0 %v4921_v22, %s6703_s30 }
 0x8e3   : > { %v4993_v35 = vpop.permute.xlu1 %4992 }
 0x8e4   : > { %v5086_v37 = vsel %vm4926_vm5, %v4993_v35, -inf  ;;  %vm4942_vm5 = vcmp.gt.f32.partialorder %v9060_v13, 0.0 }
 0x8e5   : > { %5152 = vrot.lane.b32.xlu1 %v5086_v37, %s6704_s14  ;;  %v4995_v23 = vpop.permute.xlu0 %4994 }
 0x8e6   : > { %v5087_v38 = vsel %vm4927_vm6, %v4995_v23, -inf  ;;  %vm4943_vm6 = vcmp.gt.f32.partialorder %v9063_v7, 0.0 }
 0x8e7   : > { %v4989_v29 = vpop.permute.xlu1 %4988  ;;  %5154 = vrot.lane.b32.xlu0 %v5087_v38, %s6704_s14 }
 0x8e8   : > { %v5084_v11 = vsel %vm4924_vm7, %v4989_v29, -inf  ;;  %vm4940_vm7 = vcmp.gt.f32.partialorder %v9052_v26, 0.0 }
 0x8e9   : > { %5148 = vrot.lane.b32.xlu1 %v5084_v11, %s6704_s14  ;;  %v4991_v42 = vpop.permute.xlu0 %4990 }
 0x8ea   : > { %v5085_v60 = vsel %vm4925_vm8, %v4991_v42, -inf  ;;  %vm4941_vm8 = vcmp.gt.f32.partialorder %v9055_v12, 0.0 }
 0x8eb   : > { %v5001_v15 = vpop.permute.xlu1 %5000  ;;  %5150 = vrot.lane.b32.xlu0 %v5085_v60, %s6704_s14 }
 0x8ec   : > { %v5090_v16 = vsel %vm4930_vm9, %v5001_v15, -inf  ;;  %vm4946_vm9 = vcmp.gt.f32.partialorder %v9076_v30, 0.0 }
 0x8ed   : > { %5160 = vrot.lane.b32.xlu1 %v5090_v16, %s6704_s14  ;;  %v5003_v34 = vpop.permute.xlu0 %5002 }
 0x8ee   : > { %v5091_v17 = vsel %vm4931_vm10, %v5003_v34, -inf  ;;  %vm4947_vm10 = vcmp.gt.f32.partialorder %v9079_v32, 0.0 }
 0x8ef   : > { %v4997_v61 = vpop.permute.xlu1 %4996  ;;  %5162 = vrot.lane.b32.xlu0 %v5091_v17, %s6704_s14 }
 0x8f0   : > { %v5088_v40 = vsel %vm4928_vm11, %v4997_v61, -inf  ;;  %vm4944_vm11 = vcmp.gt.f32.partialorder %v9068_v24, 0.0 }
 0x8f1   : > { %5156 = vrot.lane.b32.xlu1 %v5088_v40, %s6704_s14  ;;  %v4999_v50 = vpop.permute.xlu0 %4998 }
 0x8f2   : > { %v5089_v14 = vsel %vm4929_vm12, %v4999_v50, -inf  ;;  %vm4945_vm12 = vcmp.gt.f32.partialorder %v9071_v3, 0.0 }
 0x8f3   : > { %v5009_v45 = vpop.permute.xlu1 %5008  ;;  %5158 = vrot.lane.b32.xlu0 %v5089_v14, %s6704_s14 }
 0x8f4   : > { %v5094_v19 = vsel %vm4934_vm13, %v5009_v45, -inf  ;;  %vm4950_vm13 = vcmp.gt.f32.partialorder %v9092_v47, 0.0 }
 0x8f5   : > { %5168 = vrot.lane.b32.xlu1 %v5094_v19, %s6704_s14  ;;  %v5011_v28 = vpop.permute.xlu0 %5010 }
 0x8f6   : > { %v5095_v27 = vsel %vm4935_vm14, %v5011_v28, -inf  ;;  %vm4951_vm14 = vcmp.gt.f32.partialorder %v9095_v36, 0.0 }
 0x8f7   : > { %v5005_v53 = vpop.permute.xlu1 %5004  ;;  %5170 = vrot.lane.b32.xlu0 %v5095_v27, %s6704_s14 }
 0x8f8   : > { %v5092_v51 = vsel %vm4932_vm15, %v5005_v53, -inf  ;;  %vm4948_vm15 = vcmp.gt.f32.partialorder %v9084_v25, 0.0 }
 0x8f9   : > { %5164 = vrot.lane.b32.xlu1 %v5092_v51, %s6704_s14  ;;  %v5007_v4 = vpop.permute.xlu0 %5006 }
 0x8fa   : > { %v5093_v2 = vsel %vm4933_vm0, %v5007_v4, -inf  ;;  %vm4949_vm0 = vcmp.gt.f32.partialorder %v9087_v62, 0.0 }
 0x8fb   : > { %v5017_v5 = vpop.permute.xlu1 %5016  ;;  %5166 = vrot.lane.b32.xlu0 %v5093_v2, %s6704_s14 }
 0x8fc   : > { %v5098_v1 = vsel %vm4938_vm1, %v5017_v5, -inf  ;;  %vm4952_vm1 = vcmp.gt.f32.partialorder %v9100_v52, 0.0 }
 0x8fd   : > { %5176 = vrot.lane.b32.xlu1 %v5098_v1, %s6704_s14  ;;  %v5019_v46 = vpop.permute.xlu0 %5018 }
 0x8fe   : > { %v5099_v8 = vsel %vm4939_vm2, %v5019_v46, -inf  ;;  %vm4953_vm2 = vcmp.gt.f32.partialorder %v9103_v6, 0.0 }
 0x8ff   : > { %v5013_v55 = vpop.permute.xlu1 %5012  ;;  %5178 = vrot.lane.b32.xlu0 %v5099_v8, %s6704_s14 }
 0x900   : > { %v5096_v20 = vsel %vm4936_vm3, %v5013_v55, -inf  ;;  %vm4954_vm3 = vcmp.gt.f32.partialorder %v9108_v0, 0.0 }
 0x901   : > { %5172 = vrot.lane.b32.xlu1 %v5096_v20, %s6704_s14  ;;  %v5015_v10 = vpop.permute.xlu0 %5014 }
 0x902   : > { %v5097_v39 = vsel %vm4937_vm4, %v5015_v10, -inf  ;;  %vm4955_vm4 = vcmp.gt.f32.partialorder %v9111_v63, 0.0 }
 0x903   : > { %v5025_v21 = vpop.permute.xlu1 %5024  ;;  %5174 = vrot.lane.b32.xlu0 %v5097_v39, %s6704_s14 }
 0x904   : > { %v5102_v58 = vsel %vm4942_vm5, %v5025_v21, -inf  ;;  %vm5244_vm5 = vcmask 72704  }
 0x905   : > { %5184 = vrot.lane.b32.xlu1 %v5102_v58, %s6704_s14  ;;  %v5027_v59 = vpop.permute.xlu0 %5026 }
 0x906   : > { %v5103_v57 = vsel %vm4943_vm6, %v5027_v59, -inf }
 0x907   : > { %v5021_v18 = vpop.permute.xlu1 %5020  ;;  %5186 = vrot.lane.b32.xlu0 %v5103_v57, %s6704_s14 }
 0x908   : > { %v5100_v49 = vsel %vm4940_vm7, %v5021_v18, -inf }
 0x909   : > { %5180 = vrot.lane.b32.xlu1 %v5100_v49, %s6704_s14  ;;  %v5023_v13 = vpop.permute.xlu0 %5022 }
 0x90a   : > { %v5101_v41 = vsel %vm4941_vm8, %v5023_v13, -inf }
 0x90b   : > { %v5033_v7 = vpop.permute.xlu1 %5032  ;;  %5182 = vrot.lane.b32.xlu0 %v5101_v41, %s6704_s14 }
 0x90c   : > { %v5106_v43 = vsel %vm4946_vm9, %v5033_v7, -inf }
 0x90d   : > { %5192 = vrot.lane.b32.xlu1 %v5106_v43, %s6704_s14  ;;  %v5035_v26 = vpop.permute.xlu0 %5034 }
 0x90e   : > { %v5107_v56 = vsel %vm4947_vm10, %v5035_v26, -inf }
 0x90f   : > { %v5029_v12 = vpop.permute.xlu1 %5028  ;;  %5194 = vrot.lane.b32.xlu0 %v5107_v56, %s6704_s14 }
 0x910   : > { %v5104_v31 = vsel %vm4944_vm11, %v5029_v12, -inf }
 0x911   : > { %5188 = vrot.lane.b32.xlu1 %v5104_v31, %s6704_s14  ;;  %v5031_v30 = vpop.permute.xlu0 %5030 }
 0x912   : > { %v5105_v54 = vsel %vm4945_vm12, %v5031_v30, -inf }
 0x913   : > { %v5041_v32 = vpop.permute.xlu1 %5040  ;;  %5190 = vrot.lane.b32.xlu0 %v5105_v54, %s6704_s14 }
 0x914   : > { %v5110_v33 = vsel %vm4950_vm13, %v5041_v32, -inf }
 0x915   : > { %5200 = vrot.lane.b32.xlu1 %v5110_v33, %s6704_s14  ;;  %v5043_v24 = vpop.permute.xlu0 %5042 }
 0x916   : > { %v5111_v9 = vsel %vm4951_vm14, %v5043_v24, -inf }
 0x917   : > { %v5037_v3 = vpop.permute.xlu1 %5036  ;;  %5202 = vrot.lane.b32.xlu0 %v5111_v9, %s6704_s14 }
 0x918   : > { %v5108_v48 = vsel %vm4948_vm15, %v5037_v3, -inf }
 0x919   : > { %5196 = vrot.lane.b32.xlu1 %v5108_v48, %s6704_s14  ;;  %v5039_v47 = vpop.permute.xlu0 %5038 }
 0x91a   : > { %v5109_v44 = vsel %vm4949_vm0, %v5039_v47, -inf }
 0x91b   : > { %v5049_v22 = vpop.permute.xlu1 %5048  ;;  %5198 = vrot.lane.b32.xlu0 %v5109_v44, %s6704_s14 }
 0x91c   : > { %v5114_v23 = vsel %vm4954_vm3, %v5049_v22, -inf }
 0x91d   : > { %v5051_v36 = vpop.permute.xlu0 %5050 }
 0x91e   : > { %v5115_v38 = vsel %vm4955_vm4, %v5051_v36, -inf }
 0x91f   : > { %v5045_v35 = vpop.permute.xlu1 %5044 }
 0x920   : > { %v5112_v25 = vsel %vm4952_vm1, %v5045_v35, -inf }
 0x921   : > { %5204 = vrot.lane.b32.xlu1 %v5112_v25, %s6704_s14  ;;  %v5047_v62 = vpop.permute.xlu0 %5046 }
 0x922   : > { %v5113_v37 = vsel %vm4953_vm2, %v5047_v62, -inf }
 0x923   : > { %5206 = vrot.lane.b32.xlu0 %v5113_v37, %s6704_s14 }
 0x925   : > { %5208 = vrot.lane.b32.xlu1 %v5114_v23, %s6704_s14 }
 0x927   : > { %5210 = vrot.lane.b32.xlu0 %v5115_v38, %s6704_s14 }
 0x957   : > { %v5153_v52 = vpop.permute.xlu1 %5152 }
 0x958   : > { %5247 = vst.msk [vmem:[%s9304_s17 + $0x10] sm:$0xff] %vm5244_vm5, %v5153_v52 }
 0x959   : > { %v5155_v6 = vpop.permute.xlu0 %5154 }
 0x95a   : > { %5248 = vst.msk [vmem:[%s9304_s17 + $0x18] sm:$0xff] %vm5244_vm5, %v5155_v6 }
 0x95b   : > { %v5149_v0 = vpop.permute.xlu1 %5148 }
 0x95c   : > { %5245 = vst.msk [vmem:[%s9304_s17] sm:$0xff] %vm5244_vm5, %v5149_v0 }
 0x95d   : > { %v5151_v63 = vpop.permute.xlu0 %5150 }
 0x95e   : > { %5246 = vst.msk [vmem:[%s9304_s17 + $0x8] sm:$0xff] %vm5244_vm5, %v5151_v63 }
 0x95f   : > { %v5161_v29 = vpop.permute.xlu1 %5160 }
 0x960   : > { %5251 = vst.msk [vmem:[%s9304_s17 + $0x30] sm:$0xff] %vm5244_vm5, %v5161_v29 }
 0x961   : > { %v5163_v11 = vpop.permute.xlu0 %5162 }
 0x962   : > { %5252 = vst.msk [vmem:[%s9304_s17 + $0x38] sm:$0xff] %vm5244_vm5, %v5163_v11 }
 0x963   : > { %v5157_v42 = vpop.permute.xlu1 %5156 }
 0x964   : > { %5249 = vst.msk [vmem:[%s9304_s17 + $0x20] sm:$0xff] %vm5244_vm5, %v5157_v42 }
 0x965   : > { %v5159_v60 = vpop.permute.xlu0 %5158 }
 0x966   : > { %5250 = vst.msk [vmem:[%s9304_s17 + $0x28] sm:$0xff] %vm5244_vm5, %v5159_v60 }
 0x967   : > { %v5169_v15 = vpop.permute.xlu1 %5168 }
 0x968   : > { %5255 = vst.msk [vmem:[%s9304_s17 + $0x50] sm:$0xff] %vm5244_vm5, %v5169_v15 }
 0x969   : > { %v5171_v16 = vpop.permute.xlu0 %5170 }
 0x96a   : > { %5256 = vst.msk [vmem:[%s9304_s17 + $0x58] sm:$0xff] %vm5244_vm5, %v5171_v16 }
 0x96b   : > { %v5165_v34 = vpop.permute.xlu1 %5164 }
 0x96c   : > { %5253 = vst.msk [vmem:[%s9304_s17 + $0x40] sm:$0xff] %vm5244_vm5, %v5165_v34 }
 0x96d   : > { %v5167_v17 = vpop.permute.xlu0 %5166 }
 0x96e   : > { %5254 = vst.msk [vmem:[%s9304_s17 + $0x48] sm:$0xff] %vm5244_vm5, %v5167_v17 }
 0x96f   : > { %v5177_v61 = vpop.permute.xlu1 %5176 }
 0x970   : > { %5259 = vst.msk [vmem:[%s9304_s17 + $0x70] sm:$0xff] %vm5244_vm5, %v5177_v61 }
 0x971   : > { %v5179_v40 = vpop.permute.xlu0 %5178 }
 0x972   : > { %5260 = vst.msk [vmem:[%s9304_s17 + $0x78] sm:$0xff] %vm5244_vm5, %v5179_v40 }
 0x973   : > { %v5173_v50 = vpop.permute.xlu1 %5172 }
 0x974   : > { %5257 = vst.msk [vmem:[%s9304_s17 + $0x60] sm:$0xff] %vm5244_vm5, %v5173_v50 }
 0x975   : > { %v5175_v14 = vpop.permute.xlu0 %5174 }
 0x976   : > { %5258 = vst.msk [vmem:[%s9304_s17 + $0x68] sm:$0xff] %vm5244_vm5, %v5175_v14 }
 0x977   : > { %v5185_v45 = vpop.permute.xlu1 %5184 }
 0x978   : > { %5263 = vst.msk [vmem:[%s9304_s17 + $0x90] sm:$0xff] %vm5244_vm5, %v5185_v45 }
 0x979   : > { %v5187_v19 = vpop.permute.xlu0 %5186 }
 0x97a   : > { %5264 = vst.msk [vmem:[%s9304_s17 + $0x98] sm:$0xff] %vm5244_vm5, %v5187_v19 }
 0x97b   : > { %v5181_v28 = vpop.permute.xlu1 %5180 }
 0x97c   : > { %5261 = vst.msk [vmem:[%s9304_s17 + $0x80] sm:$0xff] %vm5244_vm5, %v5181_v28 }
 0x97d   : > { %v5183_v27 = vpop.permute.xlu0 %5182 }
 0x97e   : > { %5262 = vst.msk [vmem:[%s9304_s17 + $0x88] sm:$0xff] %vm5244_vm5, %v5183_v27 }
 0x97f   : > { %v5193_v53 = vpop.permute.xlu1 %5192 }
 0x980   : > { %5267 = vst.msk [vmem:[%s9304_s17 + $0xb0] sm:$0xff] %vm5244_vm5, %v5193_v53 }
 0x981   : > { %v5195_v51 = vpop.permute.xlu0 %5194 }
 0x982   : > { %5268 = vst.msk [vmem:[%s9304_s17 + $0xb8] sm:$0xff] %vm5244_vm5, %v5195_v51 }
 0x983   : > { %v5189_v4 = vpop.permute.xlu1 %5188 }
 0x984   : > { %5265 = vst.msk [vmem:[%s9304_s17 + $0xa0] sm:$0xff] %vm5244_vm5, %v5189_v4 }
 0x985   : > { %v5191_v2 = vpop.permute.xlu0 %5190 }
 0x986   : > { %5266 = vst.msk [vmem:[%s9304_s17 + $0xa8] sm:$0xff] %vm5244_vm5, %v5191_v2 }
 0x987   : > { %v5201_v5 = vpop.permute.xlu1 %5200 }
 0x988   : > { %5271 = vst.msk [vmem:[%s9304_s17 + $0xd0] sm:$0xff] %vm5244_vm5, %v5201_v5 }
 0x989   : > { %v5203_v1 = vpop.permute.xlu0 %5202 }
 0x98a   : > { %5272 = vst.msk [vmem:[%s9304_s17 + $0xd8] sm:$0xff] %vm5244_vm5, %v5203_v1 }
 0x98b   : > { %v5197_v46 = vpop.permute.xlu1 %5196 }
 0x98c   : > { %5269 = vst.msk [vmem:[%s9304_s17 + $0xc0] sm:$0xff] %vm5244_vm5, %v5197_v46 }
 0x98d   : > { %v5199_v8 = vpop.permute.xlu0 %5198 }
 0x98e   : > { %5270 = vst.msk [vmem:[%s9304_s17 + $0xc8] sm:$0xff] %vm5244_vm5, %v5199_v8 }
 0x993   : > { %v5205_v55 = vpop.permute.xlu1 %5204 }
 0x994   : > { %5273 = vst.msk [vmem:[%s9304_s17 + $0xe0] sm:$0xff] %vm5244_vm5, %v5205_v55 }
 0x995   : > { %v5207_v20 = vpop.permute.xlu0 %5206 }
 0x996   : > { %5274 = vst.msk [vmem:[%s9304_s17 + $0xe8] sm:$0xff] %vm5244_vm5, %v5207_v20 }
 0x997   : > { %v5209_v10 = vpop.permute.xlu1 %5208 }
 0x998   : > { %5275 = vst.msk [vmem:[%s9304_s17 + $0xf0] sm:$0xff] %vm5244_vm5, %v5209_v10 }
 0x999   : > { %v5211_v39 = vpop.permute.xlu0 %5210 }
 0x99a   : > { %5276 = vst.msk [vmem:[%s9304_s17 + $0xf8] sm:$0xff] %vm5244_vm5, %v5211_v39 }
 0x99b PF: > { %s23_s25 = sadd.s32 1, %s6699_s25  }
 0x99c   : > { %p20_p4 = scmp.ge.s32.totalorder %s23_s25, 4  }
 0x99e   :  { %22 = sbr.rel (!%p20_p4) target bundleno = 1 (0x1), region = 111 }

</bundles_post_ra>
